<compile_context>
chip_gen: v5e
topology: v5e:2x2
jax: 0.10.0
libtpu: 0.0.40
codegen_flags: <defaults>
</compile_context>

<pallas_src>
import math

import jax
import jax.numpy as jnp
from jax.experimental import pallas as pl
from jax.experimental.pallas import tpu as pltpu


def _round_up(x: int, m: int) -> int:
    return (x + m - 1) // m * m


def _vmem_cap_bytes() -> int:
    """Per-TensorCore VMEM cap with headroom (v5e/v6e: 128 MiB, v7x: 64 MiB)."""
    try:
        info = pltpu.get_tpu_info()
        cap = getattr(info, "vmem_capacity_bytes", None) or 64 * 1024 * 1024
    except Exception:
        cap = 64 * 1024 * 1024
    return int(cap * 0.85)  # leave headroom for compiler scratch


def _make_kernel(scale: float, eps: float, d_real: int, d_pad: int):
    inv_d = 1.0 / d_real
    pad_d = d_pad - d_real

    def kernel(ids_ref, table_ref, pe_ref, gamma_ref, beta_ref, out_ref):
        # ids_ref   : (TM, 1)  int32   flattened-token ids for this tile (streamed)
        # table_ref : (V, Dp)          embedding table (constant index -> resident)
        # pe_ref    : (TM, Dp) f32     positional-encoding tile (constant index)
        # gamma/beta: (1, Dp)  f32     LayerNorm affine, zero-padded past D
        # out_ref   : (TM, Dp)
        v = table_ref.shape[0]

        ids = ids_ref[...]                                            # (TM, 1)
        vocab_iota = jax.lax.broadcasted_iota(jnp.int32, (1, v), 1)   # (1, V)
        one_hot = (ids == vocab_iota).astype(table_ref.dtype)         # (TM, V), 0/1

        # Embedding gather as (TM, V) @ (V, Dp) on the MXU, f32 accumulation
        # (row selection is exact; only the table dtype affects numerics).
        emb = jnp.dot(one_hot, table_ref[...],
                      preferred_element_type=jnp.float32)             # (TM, Dp) f32

        # PositionalEncoding: emb * sqrt(D) + pe   (dropout p=0.0 -> identity).
        # Padded lanes D..Dp stay exactly zero (table & PE zero-padded there).
        emb = emb * jnp.float32(scale) + pe_ref[...]

        # LayerNorm over the real D (biased variance, like torch). Because the
        # padded lanes are exactly zero, full-Dp sums equal real-D sums; only the
        # centered sum of squares needs a scalar pad_d * mean^2 correction.
        mean = jnp.sum(emb, axis=-1, keepdims=True) * jnp.float32(inv_d)
        centered = emb - mean
        sq = jnp.sum(centered * centered, axis=-1, keepdims=True)
        if pad_d:
            sq = sq - jnp.float32(pad_d) * mean * mean
        var = sq * jnp.float32(inv_d)
        normed = centered * jax.lax.rsqrt(var + jnp.float32(eps))
        out_ref[...] = (normed * gamma_ref[...] + beta_ref[...]).astype(out_ref.dtype)

    return kernel


def prepare_tab_word_embedding_params(table, pe, gamma, beta, *,
                                      table_dtype=jnp.float32,
                                      block_tokens=512,
                                      max_block_tokens=4096):
    """One-time parameter preprocessing. Call once at init, NOT per forward."""
    V, D = table.shape
    L = pe.shape[0]
    assert pe.shape == (L, D)

    # Lane-dense last dim. If D % 128 != 0 the kernel writes padded lanes
    # (write amplification); choose D as a multiple of 128 to make this free.
    Dp = _round_up(D, 128)
    pad_d = Dp - D

    # TM: tokens per grid step. Multiple of 8 (sublane constraint) AND of L so a
    # single resident (TM, Dp) PE tile lines up with token positions every step.
    lcm = 8 * L // math.gcd(8, L)
    if lcm > max_block_tokens:
        # TODO(synk): stream a per-token PE block (index_map lambda i: (i, 0))
        # for pathological sequence lengths instead of failing.
        raise NotImplementedError(
            f"seq_len={L} requires TM multiple of {lcm} > {max_block_tokens}")
    TM = lcm * max(1, block_tokens // lcm)

    table_p = jnp.pad(table.astype(jnp.float32),
                      ((0, 0), (0, pad_d))).astype(table_dtype)
    pe_tile = jnp.tile(jnp.pad(pe.astype(jnp.float32), ((0, 0), (0, pad_d))),
                       (TM // L, 1))                                   # (TM, Dp)
    gamma_p = jnp.pad(gamma.astype(jnp.float32).reshape(1, D), ((0, 0), (0, pad_d)))
    beta_p = jnp.pad(beta.astype(jnp.float32).reshape(1, D), ((0, 0), (0, pad_d)))

    return dict(table=table_p, pe=pe_tile, gamma=gamma_p, beta=beta_p,
                V=V, D=D, Dp=Dp, L=L, TM=TM)


def tab_word_embedding(x_ids, params, *, eps=1e-5, out_dtype=jnp.float32):
    """x_ids: [N, L] int -> [N, L, D] (TabWordEmbedding.forward)."""
    N, L = x_ids.shape
    assert L == params["L"], "x_ids seq length must match the prepared PE"
    V, D, Dp, TM = params["V"], params["D"], params["Dp"], params["TM"]
    table_p, pe_tile = params["table"], params["pe"]
    gamma_p, beta_p = params["gamma"], params["beta"]

    M = N * L
    Mp = _round_up(M, TM)
    grid = (Mp // TM,)
    t_item = jnp.dtype(table_p.dtype).itemsize
    o_item = jnp.dtype(out_dtype).itemsize

    # Token ids on the sublane axis. OOB ids are clamped (JAX gather semantics;
    # PyTorch nn.Embedding would raise). padding_idx only affects gradients in
    # the module, so the forward pass needs no special handling for it.
    ids_col = jnp.pad(jnp.clip(x_ids.reshape(M).astype(jnp.int32), 0, V - 1),
                      (0, Mp - M)).reshape(Mp, 1)

    # VMEM budget (conservative: constant-index blocks counted double-buffered,
    # the one-hot counted once as a kernel temporary).
    vmem_bytes = (2 * V * Dp * t_item                 # resident table
                  + 2 * TM * Dp * 4                   # resident PE tile
                  + 2 * TM * 128 * 4                  # ids tiles (lane-padded)
                  + 2 * TM * Dp * o_item              # output tiles
                  + TM * V * max(t_item, 4)           # one-hot temporary
                  + 3 * TM * Dp * 4                   # f32 temporaries
                  + 4 * 8 * Dp * 4)                   # gamma/beta blocks
    cap = _vmem_cap_bytes()
    if vmem_bytes > cap:
        # TODO(synk): DMA row-gather / vocab-tiled fallback for large V.
        raise NotImplementedError(
            f"resident table path needs ~{vmem_bytes >> 20} MiB VMEM > cap "
            f"{cap >> 20} MiB; implement the DMA-gather fallback for this vocab")
    vmem_limit = int(min(max(int(1.5 * vmem_bytes) + (4 << 20), 16 << 20), cap))

    kernel = _make_kernel(scale=math.sqrt(D), eps=eps, d_real=D, d_pad=Dp)

    out_p = pl.pallas_call(
        kernel,
        out_shape=jax.ShapeDtypeStruct((Mp, Dp), out_dtype),
        grid_spec=pltpu.PrefetchScalarGridSpec(
            num_scalar_prefetch=0,
            grid=grid,
            in_specs=[
                pl.BlockSpec((TM, 1), lambda i: (i, 0)),    # ids (streamed)
                pl.BlockSpec((V, Dp), lambda i: (0, 0)),    # table (resident)
                pl.BlockSpec((TM, Dp), lambda i: (0, 0)),   # PE tile (resident)
                pl.BlockSpec((1, Dp), lambda i: (0, 0)),    # gamma
                pl.BlockSpec((1, Dp), lambda i: (0, 0)),    # beta
            ],
            out_specs=pl.BlockSpec((TM, Dp), lambda i: (i, 0)),
        ),
        compiler_params=pltpu.CompilerParams(
            # "parallel" token axis shards the grid across the 2 TensorCores on
            # v7x; each TC then holds its own resident table/PE copy (per-TC
            # VMEM budget already enforced above).
            dimension_semantics=("parallel",),
            vmem_limit_bytes=vmem_limit,
        ),
    )(ids_col, table_p, pe_tile, gamma_p, beta_p)

    if Mp == M and Dp == D:
        return out_p.reshape(N, L, D)      # no extra copy when nothing was padded
    return out_p[:M, :D].reshape(N, L, D)


def make_positional_encoding(L, D):
    position = jnp.arange(L, dtype=jnp.float32)[:, None]                   # (L, 1)
    div_term = jnp.exp(jnp.arange(0, D, 2, dtype=jnp.float32)
                       * (-(math.log(10000.0) / D)))                       # (D/2,)
    pe = jnp.zeros((L, D), dtype=jnp.float32)
    pe = pe.at[:, 0::2].set(jnp.sin(position * div_term))
    pe = pe.at[:, 1::2].set(jnp.cos(position * div_term))
    return pe


def reference(x_ids, table, pe, gamma, beta, eps=1e-5):
    D = table.shape[1]
    emb = table[x_ids]                                  # (N, L, D)
    emb = emb * math.sqrt(D) + pe[None, :, :]
    mean = jnp.mean(emb, axis=-1, keepdims=True)
    var = jnp.mean((emb - mean) ** 2, axis=-1, keepdims=True)
    return (emb - mean) / jnp.sqrt(var + eps) * gamma + beta


if __name__ == "__main__":
    # Small shapes consistent with the module's forward: x_ids [N, L].
    N, L = 2, 8
    V, D = 64, 32

    key = jax.random.PRNGKey(0)
    k_ids, k_w = jax.random.split(key)

    # kaiming_normal_ on [V, D]: std = sqrt(2 / fan_in=D).
    table = jax.random.normal(k_w, (V, D), dtype=jnp.float32) * math.sqrt(2.0 / D)
    pe = make_positional_encoding(L, D)
    gamma = jnp.ones((D,), dtype=jnp.float32)
    beta = jnp.zeros((D,), dtype=jnp.float32)
    x_ids = jax.random.randint(k_ids, (N, L), 0, V, dtype=jnp.int32)

    # One-time init (hoisted preprocessing). Default f32 table = bit-close to torch.
    params_f32 = prepare_tab_word_embedding_params(table, pe, gamma, beta)
    out = jax.block_until_ready(tab_word_embedding(x_ids, params_f32))
    assert out.shape == (N, L, D)
    ref_f32 = reference(x_ids, table, pe, gamma, beta)
    assert jnp.allclose(out, ref_f32, atol=1e-4, rtol=1e-4), "mismatch vs f32 reference"

    # Optional bf16-table path (half resident VMEM, bf16 MXU); the gather itself
    # is exact, only the table values are quantized.
    params_bf16 = prepare_tab_word_embedding_params(table, pe, gamma, beta,
                                                    table_dtype=jnp.bfloat16)
    out_bf16 = jax.block_until_ready(tab_word_embedding(x_ids, params_bf16))
    ref_bf16 = reference(x_ids, table.astype(jnp.bfloat16).astype(jnp.float32),
                         pe, gamma, beta)
    assert jnp.allclose(out_bf16, ref_bf16, atol=1e-4, rtol=1e-4), \
        "mismatch vs bf16-weight reference"
    assert jnp.allclose(out_bf16, ref_f32, atol=3e-2, rtol=3e-2), \
        "bf16 path too far from f32 reference"

    print("KERNEL_OK")
</pallas_src>

<mosaic_0001>
module attributes {stable_mosaic.version = 11 : i64} {
  func.func @kernel(%arg0: i32, %arg1: memref<512x1xi32, #tpu.memory_space<vmem>>, %arg2: memref<64x128xf32, #tpu.memory_space<vmem>>, %arg3: memref<512x128xf32, #tpu.memory_space<vmem>>, %arg4: memref<1x128xf32, #tpu.memory_space<vmem>>, %arg5: memref<1x128xf32, #tpu.memory_space<vmem>>, %arg6: memref<512x128xf32, #tpu.memory_space<vmem>>) attributes {dimension_semantics = [#tpu.dimension_semantics<parallel>], iteration_bounds = array<i64: 1>, scalar_prefetch = 0 : i64, scratch_operands = 0 : i64, tpu.core_type = #tpu.core_type<tc>, window_params = [{transform_indices = @transform_0, window_bounds = array<i64: 512, 1>}, {pipeline_mode = #tpu.pipeline_mode<synchronous>, transform_indices = @transform_1, window_bounds = array<i64: 64, 128>}, {pipeline_mode = #tpu.pipeline_mode<synchronous>, transform_indices = @transform_2, window_bounds = array<i64: 512, 128>}, {pipeline_mode = #tpu.pipeline_mode<synchronous>, transform_indices = @transform_3, window_bounds = array<i64: 1, 128>}, {pipeline_mode = #tpu.pipeline_mode<synchronous>, transform_indices = @transform_4, window_bounds = array<i64: 1, 128>}, {transform_indices = @transform_5, window_bounds = array<i64: 512, 128>}]} {
    %c0 = arith.constant 0 : index
    %c0_0 = arith.constant 0 : index
    %0 = vector.load %arg1[%c0, %c0_0] : memref<512x1xi32, #tpu.memory_space<vmem>>, vector<512x1xi32>
    %1 = tpu.iota {dimensions = array<i32: 1>} : vector<1x64xi32>
    %2 = vector.broadcast %0 : vector<512x1xi32> to vector<512x64xi32>
    %3 = vector.broadcast %1 : vector<1x64xi32> to vector<512x64xi32>
    %4 = arith.cmpi eq, %2, %3 : vector<512x64xi32>
    %5 = arith.extui %4 : vector<512x64xi1> to vector<512x64xi32>
    %6 = arith.sitofp %5 : vector<512x64xi32> to vector<512x64xf32>
    %c0_1 = arith.constant 0 : index
    %c0_2 = arith.constant 0 : index
    %7 = vector.load %arg2[%c0_1, %c0_2] : memref<64x128xf32, #tpu.memory_space<vmem>>, vector<64x128xf32>
    %cst = arith.constant dense<0.000000e+00> : vector<512x128xf32>
    %8 = tpu.matmul %6, %7, %cst {dimension_numbers = #tpu.dot_dimension_numbers<[1], [0], [0], [1], [0, 0, 1, 1], [], []>} : vector<512x64xf32>, vector<64x128xf32>, vector<512x128xf32> -> vector<512x128xf32>
    %cst_3 = arith.constant 5.65685415 : f32
    %9 = vector.broadcast %cst_3 : f32 to vector<512x128xf32>
    %10 = arith.mulf %8, %9 : vector<512x128xf32>
    %c0_4 = arith.constant 0 : index
    %c0_5 = arith.constant 0 : index
    %11 = vector.load %arg3[%c0_4, %c0_5] : memref<512x128xf32, #tpu.memory_space<vmem>>, vector<512x128xf32>
    %12 = arith.addf %10, %11 : vector<512x128xf32>
    %cst_6 = arith.constant dense<0.000000e+00> : vector<512xf32>
    %13 = vector.multi_reduction <add>, %12, %cst_6 [1] : vector<512x128xf32> to vector<512xf32>
    %14 = vector.shape_cast %13 : vector<512xf32> to vector<512x1xf32>
    %cst_7 = arith.constant 3.125000e-02 : f32
    %15 = vector.broadcast %cst_7 : f32 to vector<512x1xf32>
    %16 = arith.mulf %14, %15 : vector<512x1xf32>
    %17 = vector.broadcast %16 : vector<512x1xf32> to vector<512x128xf32>
    %18 = arith.subf %12, %17 : vector<512x128xf32>
    %19 = arith.mulf %18, %18 : vector<512x128xf32>
    %cst_8 = arith.constant dense<0.000000e+00> : vector<512xf32>
    %20 = vector.multi_reduction <add>, %19, %cst_8 [1] : vector<512x128xf32> to vector<512xf32>
    %21 = vector.shape_cast %20 : vector<512xf32> to vector<512x1xf32>
    %cst_9 = arith.constant 9.600000e+01 : f32
    %22 = vector.broadcast %cst_9 : f32 to vector<512x1xf32>
    %23 = arith.mulf %22, %16 : vector<512x1xf32>
    %24 = arith.mulf %23, %16 : vector<512x1xf32>
    %25 = arith.subf %21, %24 : vector<512x1xf32>
    %cst_10 = arith.constant 3.125000e-02 : f32
    %26 = vector.broadcast %cst_10 : f32 to vector<512x1xf32>
    %27 = arith.mulf %25, %26 : vector<512x1xf32>
    %cst_11 = arith.constant 9.99999974E-6 : f32
    %28 = vector.broadcast %cst_11 : f32 to vector<512x1xf32>
    %29 = arith.addf %27, %28 : vector<512x1xf32>
    %30 = math.rsqrt %29 : vector<512x1xf32>
    %31 = vector.broadcast %30 : vector<512x1xf32> to vector<512x128xf32>
    %32 = arith.mulf %18, %31 : vector<512x128xf32>
    %c0_12 = arith.constant 0 : index
    %c0_13 = arith.constant 0 : index
    %33 = vector.load %arg4[%c0_12, %c0_13] : memref<1x128xf32, #tpu.memory_space<vmem>>, vector<1x128xf32>
    %34 = vector.broadcast %33 : vector<1x128xf32> to vector<512x128xf32>
    %35 = arith.mulf %32, %34 : vector<512x128xf32>
    %c0_14 = arith.constant 0 : index
    %c0_15 = arith.constant 0 : index
    %36 = vector.load %arg5[%c0_14, %c0_15] : memref<1x128xf32, #tpu.memory_space<vmem>>, vector<1x128xf32>
    %37 = vector.broadcast %36 : vector<1x128xf32> to vector<512x128xf32>
    %38 = arith.addf %35, %37 : vector<512x128xf32>
    %c0_16 = arith.constant 0 : index
    %c0_17 = arith.constant 0 : index
    %39 = vector.load %arg6[%c0_16, %c0_17] : memref<512x128xf32, #tpu.memory_space<vmem>>, vector<512x128xf32>
    tpu.vector_store %arg6[%c0_16, %c0_17], %38 {strides = array<i32>} : memref<512x128xf32, #tpu.memory_space<vmem>>, vector<512x128xf32>,
    return
  }
  func.func @transform_0(%arg0: i32) -> (i32, i32) {
    %c0_i32 = arith.constant 0 : i32
    %c0_i32_0 = arith.constant 0 : i32
    return %arg0, %c0_i32 : i32, i32
  }
  func.func @transform_1(%arg0: i32) -> (i32, i32) {
    %c0_i32 = arith.constant 0 : i32
    %c0_i32_0 = arith.constant 0 : i32
    %c0_i32_1 = arith.constant 0 : i32
    return %c0_i32, %c0_i32_0 : i32, i32
  }
  func.func @transform_2(%arg0: i32) -> (i32, i32) {
    %c0_i32 = arith.constant 0 : i32
    %c0_i32_0 = arith.constant 0 : i32
    %c0_i32_1 = arith.constant 0 : i32
    return %c0_i32, %c0_i32_0 : i32, i32
  }
  func.func @transform_3(%arg0: i32) -> (i32, i32) {
    %c0_i32 = arith.constant 0 : i32
    %c0_i32_0 = arith.constant 0 : i32
    %c0_i32_1 = arith.constant 0 : i32
    return %c0_i32, %c0_i32_0 : i32, i32
  }
  func.func @transform_4(%arg0: i32) -> (i32, i32) {
    %c0_i32 = arith.constant 0 : i32
    %c0_i32_0 = arith.constant 0 : i32
    %c0_i32_1 = arith.constant 0 : i32
    return %c0_i32, %c0_i32_0 : i32, i32
  }
  func.func @transform_5(%arg0: i32) -> (i32, i32) {
    %c0_i32 = arith.constant 0 : i32
    %c0_i32_0 = arith.constant 0 : i32
    return %arg0, %c0_i32 : i32, i32
  }
}

</mosaic_0001>

<bundles_post_ra>
// kernel: tpu_custom_call.1
= control target key start
LH: loop header
LB: loop body
LE: loop exit
PB: predicated region body
PF: predicated region fallthrough
CT: control target
= control target key end

     0   :  { %10 = vsyncpa [#allocation3], 0  ;;  %s6002_s0 = inlined_call_operand.vmem [shape: s32[512,1], index: 0, kind: input, shape index: {}]   ;;  %s6003_s1 = inlined_call_operand.hbm [shape: f32[64,128], index: 1, kind: input, shape index: {}]   ;;  %s6004_s2 = inlined_call_operand.vmem [shape: f32[512,128], index: 2, kind: input, shape index: {}]   ;;  %s6005_s3 = inlined_call_operand.vmem [shape: f32[1,128], index: 3, kind: input, shape index: {}]   ;;  %s6006_s4 = inlined_call_operand.vmem [shape: f32[1,128], index: 4, kind: input, shape index: {}]   ;;  %s6007_s5 = inlined_call_operand.hbm [shape: f32[512,128], index: 5, kind: output, shape index: {}]  }
   0x1   :  { %11 = vsyncpa [#allocation4], 0  ;;  %s18_s20 = sshll.u32 %s6003_s1, 4  ;;  %s3127_s21 = smov [#allocation2]   ;;  %s19_s20 = int_to_ptr.hbm [resolvable:$true] %s18_s20 }
   0x2   :  { %s20_s22 = sshll.u32 %s3127_s21, 4  ;;  %s3128_s23 = smov 128   ;;  %s21_s22 = int_to_ptr.vmem [resolvable:$true] %s20_s22 }
   0x3   :  { %s3129_s24 = smov 8  }
   0x4   :  { %26 = dma.hbm_to_vmem [thread:$0]  %s19_s20, 1024, %s21_s22, [#allocation3], %s3128_s23, %s3128_s23, %s3129_s24  }
   0x5   :  { %3123 = dma.done.wait [#allocation3], 1024  }
   0x6   :  { %3124 = vsyncadd [#allocation3], 4294966272  ;;  %v3130_v0 = vmov 0   ;;  %v41_v1 = vld [vmem:[%s6002_s0 + $0x20] sm:$0xff]  ;;  %v39_v2 = vld [vmem:[%s6002_s0 + $0x10] sm:$0xff]  ;;  %v101_v54 = vlaneseq  ;;  %vm495_vm0 = vcmask 523264  }
   0x7   :  { %2940 = vset.pattern.permute.xlu2 %v3130_v0  ;;  %2939 = vset.pattern.permute.xlu1 %v3130_v0  ;;  %v37_v3 = vld [vmem:[%s6002_s0] sm:$0xff]  ;;  %v42_v4 = vld [vmem:[%s6002_s0 + $0x28] sm:$0xff]  ;;  %v40_v5 = vld [vmem:[%s6002_s0 + $0x18] sm:$0xff]  ;;  %v3131_v62 = vmov 0.0   ;;  %s2767_s22 = sshll.u32 %s6007_s5, 4  ;;  %s2768_s22 = int_to_ptr.hbm [resolvable:$true] %s2767_s22 }
   0x8   :  { %2938 = vset.pattern.permute.xlu0 %v3130_v0  ;;  %116 = vperm.xlu2 %2940, %v41_v1   ;;  %v38_v6 = vld [vmem:[%s6002_s0 + $0x8] sm:$0xff]  ;;  %v45_v7 = vld [vmem:[%s6002_s0 + $0x40] sm:$0xff]  ;;  %v44_v8 = vld [vmem:[%s6002_s0 + $0x38] sm:$0xff]  ;;  %v3310_v58 = vand.u32 127, %v101_v54 }
   0x9   :  { %110 = vperm.xlu1 %2939, %v39_v2   ;;  %104 = vperm.xlu0 %2938, %v37_v3   ;;  %v43_v9 = vld [vmem:[%s6002_s0 + $0x30] sm:$0xff]  ;;  %v48_v10 = vld [vmem:[%s6002_s0 + $0x58] sm:$0xff]  ;;  %v46_v12 = vld [vmem:[%s6002_s0 + $0x48] sm:$0xff] }
   0xa   :  { %v47_v11 = vld [vmem:[%s6002_s0 + $0x50] sm:$0xff]  ;;  %v50_v14 = vld [vmem:[%s6002_s0 + $0x68] sm:$0xff]  ;;  %v49_v15 = vld [vmem:[%s6002_s0 + $0x60] sm:$0xff] }
   0xb   :  { %v51_v13 = vld [vmem:[%s6002_s0 + $0x70] sm:$0xff]  ;;  %v54_v16 = vld [vmem:[%s6002_s0 + $0x88] sm:$0xff]  ;;  %v53_v17 = vld [vmem:[%s6002_s0 + $0x80] sm:$0xff] }
   0xc   :  { %v52_v18 = vld [vmem:[%s6002_s0 + $0x78] sm:$0xff]  ;;  %v57_v19 = vld [vmem:[%s6002_s0 + $0xa0] sm:$0xff]  ;;  %v55_v21 = vld [vmem:[%s6002_s0 + $0x90] sm:$0xff] }
   0xd   :  { %v56_v20 = vld [vmem:[%s6002_s0 + $0x98] sm:$0xff]  ;;  %v59_v23 = vld [vmem:[%s6002_s0 + $0xb0] sm:$0xff]  ;;  %v58_v24 = vld [vmem:[%s6002_s0 + $0xa8] sm:$0xff] }
   0xe   :  { %v60_v22 = vld [vmem:[%s6002_s0 + $0xb8] sm:$0xff]  ;;  %v63_v25 = vld [vmem:[%s6002_s0 + $0xd0] sm:$0xff]  ;;  %v62_v26 = vld [vmem:[%s6002_s0 + $0xc8] sm:$0xff] }
   0xf   :  { %v61_v27 = vld [vmem:[%s6002_s0 + $0xc0] sm:$0xff]  ;;  %v494_v28 = vld [vmem:[#allocation2 + $0x38] sm:$0xff]  ;;  %v493_v29 = vld [vmem:[#allocation2 + $0x30] sm:$0xff] }
  0x10   :  { %119 = vperm.xlu2 %2940, %v42_v4   ;;  %696 = vmatpush.msra.mxu0 %v494_v28  ;;  %v66_v30 = vld [vmem:[%s6002_s0 + $0xe8] sm:$0xff]  ;;  %v65_v31 = vld [vmem:[%s6002_s0 + $0xe0] sm:$0xff]  ;;  %v64_v32 = vld [vmem:[%s6002_s0 + $0xd8] sm:$0xff] }
  0x11   :  { %113 = vperm.xlu1 %2939, %v40_v5   ;;  %107 = vperm.xlu0 %2938, %v38_v6   ;;  %v492_v33 = vld [vmem:[#allocation2 + $0x28] sm:$0xff]  ;;  %v491_v34 = vld [vmem:[#allocation2 + $0x20] sm:$0xff]  ;;  %v490_v35 = vld [vmem:[#allocation2 + $0x18] sm:$0xff] }
  0x12   :  { %2908 = vmatpush.msra.mxu1 %v494_v28  ;;  %2909 = vmatpush.msra.mxu2 %v494_v28  ;;  %v69_v36 = vld [vmem:[%s6002_s0 + $0x100] sm:$0xff]  ;;  %v68_v37 = vld [vmem:[%s6002_s0 + $0xf8] sm:$0xff]  ;;  %v67_v38 = vld [vmem:[%s6002_s0 + $0xf0] sm:$0xff] }
  0x13   :  { %2910 = vmatpush.msra.mxu3 %v494_v28  ;;  %697 = vmatpush.msra.mxu0 %v493_v29  ;;  %v489_v39 = vld [vmem:[#allocation2 + $0x10] sm:$0xff]  ;;  %v488_v40 = vld [vmem:[#allocation2 + $0x8] sm:$0xff]  ;;  %v487_v41 = vld [vmem:[#allocation2] sm:$0xff] }
  0x14   :  { %2911 = vmatpush.msra.mxu1 %v493_v29  ;;  %2912 = vmatpush.msra.mxu2 %v493_v29  ;;  %v72_v42 = vld [vmem:[%s6002_s0 + $0x118] sm:$0xff]  ;;  %v71_v43 = vld [vmem:[%s6002_s0 + $0x110] sm:$0xff]  ;;  %v70_v44 = vld [vmem:[%s6002_s0 + $0x108] sm:$0xff] }
  0x15   :  { %2913 = vmatpush.msra.mxu3 %v493_v29  ;;  %698 = vmatpush.msra.mxu0 %v492_v33  ;;  %v75_v46 = vld [vmem:[%s6002_s0 + $0x130] sm:$0xff]  ;;  %v74_v47 = vld [vmem:[%s6002_s0 + $0x128] sm:$0xff]  ;;  %v73_v48 = vld [vmem:[%s6002_s0 + $0x120] sm:$0xff] }
  0x16   :  { %2914 = vmatpush.msra.mxu1 %v492_v33  ;;  %2915 = vmatpush.msra.mxu2 %v492_v33  ;;  %v78_v50 = vld [vmem:[%s6002_s0 + $0x148] sm:$0xff]  ;;  %v77_v51 = vld [vmem:[%s6002_s0 + $0x140] sm:$0xff]  ;;  %v76_v52 = vld [vmem:[%s6002_s0 + $0x138] sm:$0xff] }
  0x17   :  { %2916 = vmatpush.msra.mxu3 %v492_v33  ;;  %699 = vmatpush.msra.mxu0 %v491_v34  ;;  %v81_v55 = vld [vmem:[%s6002_s0 + $0x160] sm:$0xff]  ;;  %v80_v56 = vld [vmem:[%s6002_s0 + $0x158] sm:$0xff]  ;;  %v79_v57 = vld [vmem:[%s6002_s0 + $0x150] sm:$0xff] }
  0x18   :  { %128 = vperm.xlu2 %2940, %v45_v7   ;;  %2917 = vmatpush.msra.mxu1 %v491_v34  ;;  %v84_v0 = vld [vmem:[%s6002_s0 + $0x178] sm:$0xff]  ;;  %v83_v1 = vld [vmem:[%s6002_s0 + $0x170] sm:$0xff]  ;;  %v82_v2 = vld [vmem:[%s6002_s0 + $0x168] sm:$0xff] }
  0x19   :  { %125 = vperm.xlu1 %2939, %v44_v8   ;;  %122 = vperm.xlu0 %2938, %v43_v9   ;;  %v87_v7 = vld [vmem:[%s6002_s0 + $0x190] sm:$0xff]  ;;  %v86_v8 = vld [vmem:[%s6002_s0 + $0x188] sm:$0xff]  ;;  %v85_v9 = vld [vmem:[%s6002_s0 + $0x180] sm:$0xff] }
  0x1a   :  { %2918 = vmatpush.msra.mxu2 %v491_v34  ;;  %2919 = vmatpush.msra.mxu3 %v491_v34  ;;  %v96_v28 = vld [vmem:[%s6002_s0 + $0x1d8] sm:$0xff]  ;;  %v95_v29 = vld [vmem:[%s6002_s0 + $0x1d0] sm:$0xff] }
  0x1b   :  { %700 = vmatpush.msra.mxu0 %v490_v35  ;;  %2920 = vmatpush.msra.mxu1 %v490_v35 }
  0x1c   :  { %2921 = vmatpush.msra.mxu2 %v490_v35  ;;  %2922 = vmatpush.msra.mxu3 %v490_v35 }
  0x1d   :  { %701 = vmatpush.msra.mxu0 %v489_v39  ;;  %2923 = vmatpush.msra.mxu1 %v489_v39 }
  0x1e   :  { %2924 = vmatpush.msra.mxu2 %v489_v39  ;;  %2925 = vmatpush.msra.mxu3 %v489_v39 }
  0x1f   :  { %702 = vmatpush.msra.mxu0 %v488_v40  ;;  %2926 = vmatpush.msra.mxu1 %v488_v40 }
  0x20   :  { %137 = vperm.xlu2 %2940, %v48_v10   ;;  %2927 = vmatpush.msra.mxu2 %v488_v40 }
  0x21   :  { %134 = vperm.xlu1 %2939, %v47_v11   ;;  %131 = vperm.xlu0 %2938, %v46_v12  }
  0x22   :  { %703 = vmatpush.msra.mxu0 %v487_v41  ;;  %2928 = vmatpush.msra.mxu3 %v488_v40 }
  0x23   :  { %2929 = vmatpush.msra.mxu1 %v487_v41  ;;  %2930 = vmatpush.msra.mxu2 %v487_v41 }
  0x24   :  { %2931 = vmatpush.msra.mxu3 %v487_v41 }
  0x28   :  { %146 = vperm.xlu2 %2940, %v51_v13  }
  0x29   :  { %143 = vperm.xlu1 %2939, %v50_v14   ;;  %140 = vperm.xlu0 %2938, %v49_v15   ;;  %v90_v14 = vld [vmem:[%s6002_s0 + $0x1a8] sm:$0xff]  ;;  %v89_v15 = vld [vmem:[%s6002_s0 + $0x1a0] sm:$0xff] }
  0x30   :  { %155 = vperm.xlu2 %2940, %v54_v16   ;;  %v88_v16 = vld [vmem:[%s6002_s0 + $0x198] sm:$0xff] }
  0x31   :  { %152 = vperm.xlu1 %2939, %v53_v17   ;;  %149 = vperm.xlu0 %2938, %v52_v18  }
  0x38   :  { %164 = vperm.xlu2 %2940, %v57_v19  }
  0x39   :  { %161 = vperm.xlu1 %2939, %v56_v20   ;;  %158 = vperm.xlu0 %2938, %v55_v21   ;;  %v93_v21 = vld [vmem:[%s6002_s0 + $0x1c0] sm:$0xff] }
  0x40   :  { %173 = vperm.xlu2 %2940, %v60_v22   ;;  %v92_v22 = vld [vmem:[%s6002_s0 + $0x1b8] sm:$0xff] }
  0x41   :  { %170 = vperm.xlu1 %2939, %v59_v23   ;;  %167 = vperm.xlu0 %2938, %v58_v24   ;;  %v91_v23 = vld [vmem:[%s6002_s0 + $0x1b0] sm:$0xff] }
  0x48   :  { %182 = vperm.xlu2 %2940, %v63_v25  }
  0x49   :  { %179 = vperm.xlu1 %2939, %v62_v26   ;;  %176 = vperm.xlu0 %2938, %v61_v27  }
  0x50   :  { %191 = vperm.xlu2 %2940, %v66_v30   ;;  %v94_v30 = vld [vmem:[%s6002_s0 + $0x1c8] sm:$0xff] }
  0x51   :  { %188 = vperm.xlu1 %2939, %v65_v31   ;;  %185 = vperm.xlu0 %2938, %v64_v32  }
  0x58   :  { %200 = vperm.xlu2 %2940, %v69_v36   ;;  %v99_v36 = vld [vmem:[%s6002_s0 + $0x1f0] sm:$0xff] }
  0x59   :  { %197 = vperm.xlu1 %2939, %v68_v37   ;;  %194 = vperm.xlu0 %2938, %v67_v38   ;;  %v98_v37 = vld [vmem:[%s6002_s0 + $0x1e8] sm:$0xff]  ;;  %v97_v38 = vld [vmem:[%s6002_s0 + $0x1e0] sm:$0xff] }
  0x60   :  { %209 = vperm.xlu2 %2940, %v72_v42  }
  0x61   :  { %206 = vperm.xlu1 %2939, %v71_v43   ;;  %203 = vperm.xlu0 %2938, %v70_v44   ;;  %v100_v44 = vld [vmem:[%s6002_s0 + $0x1f8] sm:$0xff] }
  0x62   :  { %v3277_v45 = vpop.permute.xlu2 %116 }
  0x63   :  { %vm299_vm5 = vcmp.eq.s32.totalorder %v3277_v45, %v3310_v58 }
  0x64   :  { %v2784_v27 = vsel %vm299_vm5, 1.0, %v3131_v62 }
  0x68   :  { %218 = vperm.xlu2 %2940, %v75_v46  }
  0x69   :  { %215 = vperm.xlu1 %2939, %v74_v47   ;;  %212 = vperm.xlu0 %2938, %v73_v48  }
  0x6a   :  { %v3288_v49 = vpop.permute.xlu2 %119 }
  0x6b   :  { %vm300_vm6 = vcmp.eq.s32.totalorder %v3288_v49, %v3310_v58 }
  0x6c   :  { %v2785_v35 = vsel %vm300_vm6, 1.0, %v3131_v62 }
  0x70   :  { %227 = vperm.xlu2 %2940, %v78_v50  }
  0x71   :  { %224 = vperm.xlu1 %2939, %v77_v51   ;;  %221 = vperm.xlu0 %2938, %v76_v52  }
  0x72   :  { %v3299_v53 = vpop.permute.xlu2 %128 }
  0x73   :  { %vm303_vm14 = vcmp.eq.s32.totalorder %v3299_v53, %v3310_v58 }
  0x78   :  { %236 = vperm.xlu2 %2940, %v81_v55   ;;  %v2788_v55 = vsel %vm303_vm14, 1.0, %v3131_v62 }
  0x79   :  { %233 = vperm.xlu1 %2939, %v80_v56   ;;  %230 = vperm.xlu0 %2938, %v79_v57  }
  0x7a   :  { %v3312_v59 = vpop.permute.xlu2 %137 }
  0x7b   :  { %v111_v60 = vpop.permute.xlu1 %110  ;;  %v105_v61 = vpop.permute.xlu0 %104  ;;  %vm306_vm5 = vcmp.eq.s32.totalorder %v3312_v59, %v3310_v58 }
  0x7c   :  { %vm295_vm1 = vcmp.eq.s32.totalorder %v105_v61, %v3310_v58  ;;  %vm297_vm3 = vcmp.eq.s32.totalorder %v111_v60, %v3310_v58 }
  0x7d   :  { %v2780_v63 = vsel %vm295_vm1, 1.0, %v3131_v62  ;;  %v2782_v13 = vsel %vm297_vm3, 1.0, %v3131_v62 }
  0x7e   :  { %2844 = vmatmul.msk.f32.vlgmr.msra.gmra.mxu0 %vm495_vm0, %v2780_v63 }
  0x80   :  { %245 = vperm.xlu2 %2940, %v84_v0  }
  0x81   :  { %242 = vperm.xlu1 %2939, %v83_v1   ;;  %239 = vperm.xlu0 %2938, %v82_v2  }
  0x82   :  { %v3326_v3 = vpop.permute.xlu2 %146 }
  0x83   :  { %v114_v4 = vpop.permute.xlu1 %113  ;;  %v108_v5 = vpop.permute.xlu0 %107  ;;  %vm309_vm14 = vcmp.eq.s32.totalorder %v3326_v3, %v3310_v58 }
  0x84   :  { %vm296_vm2 = vcmp.eq.s32.totalorder %v108_v5, %v3310_v58  ;;  %vm298_vm4 = vcmp.eq.s32.totalorder %v114_v4, %v3310_v58 }
  0x85   :  { %v2781_v6 = vsel %vm296_vm2, 1.0, %v3131_v62  ;;  %v2783_v20 = vsel %vm298_vm4, 1.0, %v3131_v62 }
  0x86   :  { %2845 = vmatmul.msk.f32.gmra.mxu0 %vm495_vm0, %v2781_v6 }
  0x88   :  { %254 = vperm.xlu2 %2940, %v87_v7   ;;  %v2791_v7 = vsel %vm306_vm5, 1.0, %v3131_v62 }
  0x89   :  { %251 = vperm.xlu1 %2939, %v86_v8   ;;  %248 = vperm.xlu0 %2938, %v85_v9  }
  0x8a   :  { %v156_v10 = vpop.permute.xlu2 %155 }
  0x8b   :  { %v3341_v11 = vpop.permute.xlu1 %125  ;;  %v123_v12 = vpop.permute.xlu0 %122  ;;  %vm312_vm8 = vcmp.eq.s32.totalorder %v156_v10, %v3310_v58 }
  0x8c   :  { %vm301_vm9 = vcmp.eq.s32.totalorder %v123_v12, %v3310_v58  ;;  %v2797_v42 = vsel %vm312_vm8, 1.0, %v3131_v62  ;;  %vm302_vm11 = vcmp.eq.s32.totalorder %v3341_v11, %v3310_v58 }
  0x8d   :  { %v2786_v43 = vsel %vm301_vm9, 1.0, %v3131_v62  ;;  %v2787_v50 = vsel %vm302_vm11, 1.0, %v3131_v62 }
  0x8e   :  { %2846 = vmatmul.msk.f32.gmra.mxu0 %vm495_vm0, %v2782_v13 }
  0x90   :  { %263 = vperm.xlu2 %2940, %v90_v14  }
  0x91   :  { %260 = vperm.xlu1 %2939, %v89_v15   ;;  %257 = vperm.xlu0 %2938, %v88_v16  }
  0x92   :  { %v3355_v17 = vpop.permute.xlu2 %164 }
  0x93   :  { %v3357_v18 = vpop.permute.xlu1 %134  ;;  %v3359_v19 = vpop.permute.xlu0 %131  ;;  %vm315_vm15 = vcmp.eq.s32.totalorder %v3355_v17, %v3310_v58 }
  0x94   :  { %vm304_vm1 = vcmp.eq.s32.totalorder %v3359_v19, %v3310_v58  ;;  %v2800_v57 = vsel %vm315_vm15, 1.0, %v3131_v62  ;;  %vm305_vm3 = vcmp.eq.s32.totalorder %v3357_v18, %v3310_v58 }
  0x95   :  { %v2789_v60 = vsel %vm304_vm1, 1.0, %v3131_v62  ;;  %v2790_v1 = vsel %vm305_vm3, 1.0, %v3131_v62 }
  0x96   :  { %2847 = vmatmul.msk.f32.gmra.mxu0 %vm495_vm0, %v2783_v20 }
  0x98   :  { %272 = vperm.xlu2 %2940, %v93_v21  }
  0x99   :  { %269 = vperm.xlu1 %2939, %v92_v22   ;;  %266 = vperm.xlu0 %2938, %v91_v23   ;;  %v2794_v23 = vsel %vm309_vm14, 1.0, %v3131_v62 }
  0x9a   :  { %v3374_v24 = vpop.permute.xlu2 %173 }
  0x9b   :  { %v3376_v25 = vpop.permute.xlu1 %143  ;;  %v3378_v26 = vpop.permute.xlu0 %140 }
  0x9c   :  { %vm307_vm8 = vcmp.eq.s32.totalorder %v3378_v26, %v3310_v58  ;;  %vm308_vm11 = vcmp.eq.s32.totalorder %v3376_v25, %v3310_v58 }
  0x9d   :  { %v2792_v11 = vsel %vm307_vm8, 1.0, %v3131_v62  ;;  %v2793_v17 = vsel %vm308_vm11, 1.0, %v3131_v62 }
  0x9e   :  { %2848 = vmatmul.msk.f32.gmra.mxu0 %vm495_vm0, %v2784_v27 }
  0xa0   :  { %281 = vperm.xlu2 %2940, %v96_v28  }
  0xa1   :  { %278 = vperm.xlu1 %2939, %v95_v29   ;;  %275 = vperm.xlu0 %2938, %v94_v30  }
  0xa2   :  { %v3393_v31 = vpop.permute.xlu2 %182 }
  0xa3   :  { %v153_v32 = vpop.permute.xlu1 %152  ;;  %v3396_v33 = vpop.permute.xlu0 %149  ;;  %vm321_vm1 = vcmp.eq.s32.totalorder %v3393_v31, %v3310_v58 }
  0xa4   :  { %vm311_vm7 = vcmp.eq.s32.totalorder %v153_v32, %v3310_v58  ;;  %v2806_v26 = vsel %vm321_vm1, 1.0, %v3131_v62  ;;  %v961_v32 = vld [vmem:[%s6004_s2] sm:$0xff] }
  0xa5   :  { %v2796_v34 = vsel %vm311_vm7, 1.0, %v3131_v62  ;;  %vm318_vm7 = vcmp.eq.s32.totalorder %v3374_v24, %v3310_v58 }
  0xa6   :  { %2860 = vmatmul.msk.f32.vlgmr.msra.gmra.mxu1 %vm495_vm0, %v2796_v34  ;;  %2849 = vmatmul.msk.f32.gmra.mxu0 %vm495_vm0, %v2785_v35  ;;  %v2803_v10 = vsel %vm318_vm7, 1.0, %v3131_v62 }
  0xa8   :  { %290 = vperm.xlu2 %2940, %v99_v36  }
  0xa9   :  { %287 = vperm.xlu1 %2939, %v98_v37   ;;  %284 = vperm.xlu0 %2938, %v97_v38  }
  0xaa   :  { %v3413_v39 = vpop.permute.xlu2 %191 }
  0xab   :  { %v162_v40 = vpop.permute.xlu1 %161  ;;  %v159_v41 = vpop.permute.xlu0 %158 }
  0xac   :  { %vm313_vm10 = vcmp.eq.s32.totalorder %v159_v41, %v3310_v58  ;;  %vm314_vm13 = vcmp.eq.s32.totalorder %v162_v40, %v3310_v58 }
  0xad   :  { %v2798_v48 = vsel %vm313_vm10, 1.0, %v3131_v62  ;;  %v2799_v54 = vsel %vm314_vm13, 1.0, %v3131_v62 }
  0xae   :  { %2861 = vmatmul.msk.f32.gmra.mxu1 %vm495_vm0, %v2797_v42  ;;  %2850 = vmatmul.msk.f32.gmra.mxu0 %vm495_vm0, %v2786_v43 }
  0xb1   :  { %293 = vperm.xlu0 %2938, %v100_v44  }
  0xb2   :  { %v201_v45 = vpop.permute.xlu2 %200 }
  0xb3   :  { %v171_v46 = vpop.permute.xlu1 %170  ;;  %vm327_vm12 = vcmp.eq.s32.totalorder %v201_v45, %v3310_v58  ;;  %v168_v47 = vpop.permute.xlu0 %167 }
  0xb4   :  { %v2812_v49 = vsel %vm327_vm12, 1.0, %v3131_v62  ;;  %vm316_vm2 = vcmp.eq.s32.totalorder %v168_v47, %v3310_v58  ;;  %vm317_vm4 = vcmp.eq.s32.totalorder %v171_v46, %v3310_v58 }
  0xb5   :  { %2876 = vmatmul.msk.f32.vlgmr.msra.gmra.mxu2 %vm495_vm0, %v2812_v49  ;;  %v2801_v0 = vsel %vm316_vm2, 1.0, %v3131_v62  ;;  %v2802_v5 = vsel %vm317_vm4, 1.0, %v3131_v62  ;;  %vm310_vm2 = vcmp.eq.s32.totalorder %v3396_v33, %v3310_v58 }
  0xb6   :  { %2862 = vmatmul.msk.f32.gmra.mxu1 %vm495_vm0, %v2798_v48  ;;  %2851 = vmatmul.msk.f32.gmra.mxu0 %vm495_vm0, %v2787_v50  ;;  %v2795_v28 = vsel %vm310_vm2, 1.0, %v3131_v62 }
  0xba   :  { %v210_v6 = vpop.permute.xlu2 %209 }
  0xbb   :  { %v3435_v51 = vpop.permute.xlu1 %179  ;;  %v177_v52 = vpop.permute.xlu0 %176  ;;  %vm330_vm12 = vcmp.eq.s32.totalorder %v210_v6, %v3310_v58 }
  0xbc   :  { %vm319_vm10 = vcmp.eq.s32.totalorder %v177_v52, %v3310_v58  ;;  %v2815_v18 = vsel %vm330_vm12, 1.0, %v3131_v62  ;;  %vm320_vm13 = vcmp.eq.s32.totalorder %v3435_v51, %v3310_v58 }
  0xbd   :  { %v2804_v16 = vsel %vm319_vm10, 1.0, %v3131_v62  ;;  %v2805_v22 = vsel %vm320_vm13, 1.0, %v3131_v62  ;;  %vm324_vm10 = vcmp.eq.s32.totalorder %v3413_v39, %v3310_v58 }
  0xbe   :  { %2863 = vmatmul.msk.f32.gmra.mxu1 %vm495_vm0, %v2799_v54  ;;  %2852 = vmatmul.msk.f32.gmra.mxu0 %vm495_vm0, %v2788_v55  ;;  %v2809_v45 = vsel %vm324_vm10, 1.0, %v3131_v62 }
  0xc2   :  { %v219_v13 = vpop.permute.xlu2 %218 }
  0xc3   :  { %v3445_v56 = vpop.permute.xlu1 %188  ;;  %v3447_v53 = vpop.permute.xlu0 %185  ;;  %vm333_vm5 = vcmp.eq.s32.totalorder %v219_v13, %v3310_v58 }
  0xc4   :  { %vm322_vm4 = vcmp.eq.s32.totalorder %v3447_v53, %v3310_v58  ;;  %v2818_v37 = vsel %vm333_vm5, 1.0, %v3131_v62  ;;  %vm323_vm7 = vcmp.eq.s32.totalorder %v3445_v56, %v3310_v58 }
  0xc5   :  { %v2807_v34 = vsel %vm322_vm4, 1.0, %v3131_v62  ;;  %v2808_v41 = vsel %vm323_vm7, 1.0, %v3131_v62 }
  0xc6   :  { %2864 = vmatmul.msk.f32.gmra.mxu1 %vm495_vm0, %v2800_v57  ;;  %2853 = vmatmul.msk.f32.gmra.mxu0 %vm495_vm0, %v2789_v60  ;;  %v977_v57 = vld [vmem:[%s6004_s2 + $0x80] sm:$0xff] }
  0xca   :  { %v3499_v19 = vpop.permute.xlu2 %227 }
  0xcb   :  { %v3456_v61 = vpop.permute.xlu1 %197  ;;  %v3458_v63 = vpop.permute.xlu0 %194  ;;  %vm336_vm14 = vcmp.eq.s32.totalorder %v3499_v19, %v3310_v58 }
  0xcc   :  { %vm325_vm13 = vcmp.eq.s32.totalorder %v3458_v63, %v3310_v58  ;;  %v2821_v50 = vsel %vm336_vm14, 1.0, %v3131_v62  ;;  %vm326_vm1 = vcmp.eq.s32.totalorder %v3456_v61, %v3310_v58 }
  0xcd   :  { %v2810_v39 = vsel %vm325_vm13, 1.0, %v3131_v62  ;;  %v2811_v52 = vsel %vm326_vm1, 1.0, %v3131_v62 }
  0xce   :  { %2865 = vmatmul.msk.f32.gmra.mxu1 %vm495_vm0, %v2801_v0  ;;  %2854 = vmatmul.msk.f32.gmra.mxu0 %vm495_vm0, %v2790_v1 }
  0xd2   :  { %v3519_v3 = vpop.permute.xlu2 %236 }
  0xd3   :  { %v207_v2 = vpop.permute.xlu1 %206  ;;  %v204_v4 = vpop.permute.xlu0 %203 }
  0xd4   :  { %vm328_vm6 = vcmp.eq.s32.totalorder %v204_v4, %v3310_v58  ;;  %vm329_vm9 = vcmp.eq.s32.totalorder %v207_v2, %v3310_v58 }
  0xd5   :  { %v2813_v8 = vsel %vm328_vm6, 1.0, %v3131_v62  ;;  %v2814_v12 = vsel %vm329_vm9, 1.0, %v3131_v62 }
  0xd6   :  { %2866 = vmatmul.msk.f32.gmra.mxu1 %vm495_vm0, %v2802_v5  ;;  %2855 = vmatmul.msk.f32.gmra.mxu0 %vm495_vm0, %v2791_v7 }
  0xd7   :  { %2877 = vmatmul.msk.f32.gmra.mxu2 %vm495_vm0, %v2813_v8 }
  0xda   :  { %v3539_v35 = vpop.permute.xlu2 %245 }
  0xdb   :  { %v216_v59 = vpop.permute.xlu1 %215  ;;  %v213_v9 = vpop.permute.xlu0 %212 }
  0xdc   :  { %vm331_vm15 = vcmp.eq.s32.totalorder %v213_v9, %v3310_v58  ;;  %vm332_vm3 = vcmp.eq.s32.totalorder %v216_v59, %v3310_v58  ;;  %v993_v9 = vld [vmem:[%s6004_s2 + $0x100] sm:$0xff] }
  0xdd   :  { %v2816_v24 = vsel %vm331_vm15, 1.0, %v3131_v62  ;;  %v2817_v29 = vsel %vm332_vm3, 1.0, %v3131_v62 }
  0xde   :  { %2867 = vmatmul.msk.f32.gmra.mxu1 %vm495_vm0, %v2803_v10  ;;  %2856 = vmatmul.msk.f32.gmra.mxu0 %vm495_vm0, %v2792_v11 }
  0xdf   :  { %2878 = vmatmul.msk.f32.gmra.mxu2 %vm495_vm0, %v2814_v12 }
  0xe2   :  { %v255_v44 = vpop.permute.xlu2 %254 }
  0xe3   :  { %v3489_v14 = vpop.permute.xlu1 %224  ;;  %v222_v15 = vpop.permute.xlu0 %221  ;;  %vm345_vm11 = vcmp.eq.s32.totalorder %v255_v44, %v3310_v58 }
  0xe4   :  { %vm334_vm8 = vcmp.eq.s32.totalorder %v222_v15, %v3310_v58  ;;  %vm335_vm12 = vcmp.eq.s32.totalorder %v3489_v14, %v3310_v58  ;;  %v2830_v46 = vsel %vm345_vm11, 1.0, %v3131_v62 }
  0xe5   :  { %v2819_v43 = vsel %vm334_vm8, 1.0, %v3131_v62  ;;  %v2820_v47 = vsel %vm335_vm12, 1.0, %v3131_v62  ;;  %vm342_vm12 = vcmp.eq.s32.totalorder %v3539_v35, %v3310_v58 }
  0xe6   :  { %2868 = vmatmul.msk.f32.gmra.mxu1 %vm495_vm0, %v2804_v16  ;;  %2857 = vmatmul.msk.f32.gmra.mxu0 %vm495_vm0, %v2793_v17  ;;  %v962_v17 = vld [vmem:[%s6004_s2 + $0x8] sm:$0xff] }
  0xe7   :  { %2879 = vmatmul.msk.f32.gmra.mxu2 %vm495_vm0, %v2815_v18 }
  0xea   :  { %v264_v56 = vpop.permute.xlu2 %263 }
  0xeb   :  { %v3504_v20 = vpop.permute.xlu1 %233  ;;  %v3506_v21 = vpop.permute.xlu0 %230  ;;  %vm348_vm4 = vcmp.eq.s32.totalorder %v264_v56, %v3310_v58  ;;  %v1011_v56 = vld [vmem:[%s6004_s2 + $0x190] sm:$0xff] }
  0xec   :  { %vm337_vm2 = vcmp.eq.s32.totalorder %v3506_v21, %v3310_v58  ;;  %vm338_vm5 = vcmp.eq.s32.totalorder %v3504_v20, %v3310_v58  ;;  %v2833_v61 = vsel %vm348_vm4, 1.0, %v3131_v62  ;;  %v2827_v20 = vsel %vm342_vm12, 1.0, %v3131_v62 }
  0xed   :  { %v2822_v55 = vsel %vm337_vm2, 1.0, %v3131_v62  ;;  %v2823_v63 = vsel %vm338_vm5, 1.0, %v3131_v62 }
  0xee   :  { %2869 = vmatmul.msk.f32.gmra.mxu1 %vm495_vm0, %v2805_v22  ;;  %2858 = vmatmul.msk.f32.gmra.mxu0 %vm495_vm0, %v2794_v23 }
  0xef   :  { %2880 = vmatmul.msk.f32.gmra.mxu2 %vm495_vm0, %v2816_v24  ;;  %v978_v24 = vld [vmem:[%s6004_s2 + $0x88] sm:$0xff] }
  0xf2   :  { %v273_v8 = vpop.permute.xlu2 %272 }
  0xf3   :  { %v3521_v25 = vpop.permute.xlu0 %239  ;;  %v3524_v27 = vpop.permute.xlu1 %242  ;;  %vm351_vm10 = vcmp.eq.s32.totalorder %v273_v8, %v3310_v58  ;;  %v980_v8 = vld [vmem:[%s6004_s2 + $0x98] sm:$0xff] }
  0xf4   :  { %vm340_vm8 = vcmp.eq.s32.totalorder %v3521_v25, %v3310_v58  ;;  %vm341_vm11 = vcmp.eq.s32.totalorder %v3524_v27, %v3310_v58  ;;  %v2836_v13 = vsel %vm351_vm10, 1.0, %v3131_v62 }
  0xf5   :  { %v2825_v6 = vsel %vm340_vm8, 1.0, %v3131_v62  ;;  %v2826_v14 = vsel %vm341_vm11, 1.0, %v3131_v62 }
  0xf6   :  { %2870 = vmatmul.msk.f32.gmra.mxu1 %vm495_vm0, %v2806_v26  ;;  %2859 = vmatmul.msk.f32.gmra.mxu0 %vm495_vm0, %v2795_v28 }
  0xf7   :  { %2881 = vmatmul.msk.f32.gmra.mxu2 %vm495_vm0, %v2817_v29 }
  0xfa   :  { %v282_v26 = vpop.permute.xlu2 %281 }
  0xfb   :  { %v705_v30 = vpop.f32.mrf.mxu0  ;;  %v249_v31 = vpop.permute.xlu0 %248 }
  0xfc   :  { %v897_v33 = vmul.f32 5.656854, %v705_v30  ;;  %vm343_vm6 = vcmp.eq.s32.totalorder %v249_v31, %v3310_v58  ;;  %v252_v40 = vpop.permute.xlu1 %251 }
  0xfd   :  { %v2828_v36 = vsel %vm343_vm6, 1.0, %v3131_v62  ;;  %vm344_vm9 = vcmp.eq.s32.totalorder %v252_v40, %v3310_v58  ;;  %vm339_vm6 = vcmp.eq.s32.totalorder %v3519_v3, %v3310_v58 }
  0xfe   :  { %2871 = vmatmul.msk.f32.gmra.mxu1 %vm495_vm0, %v2807_v34  ;;  %2892 = vmatmul.msk.f32.vlgmr.msra.gmra.mxu3 %vm495_vm0, %v2828_v36  ;;  %v3546_v38 = vadd.f32 %v961_v32, %v897_v33  ;;  %v2829_v42 = vsel %vm344_vm9, 1.0, %v3131_v62  ;;  %v2824_v4 = vsel %vm339_vm6, 1.0, %v3131_v62 }
  0xff   :  { %2882 = vmatmul.msk.f32.gmra.mxu2 %vm495_vm0, %v2818_v37  ;;  %v1009_v37 = vld [vmem:[%s6004_s2 + $0x180] sm:$0xff] }
 0x100   :  { %1089 = vadd.xlane.f32.xlu1 %v3546_v38 }
 0x102   :  { %v291_v32 = vpop.permute.xlu2 %290 }
 0x103   :  { %v258_v48 = vpop.permute.xlu0 %257  ;;  %v708_v12 = vpop.f32.mrf.mxu0 }
 0x104   :  { %vm346_vm15 = vcmp.eq.s32.totalorder %v258_v48, %v3310_v58  ;;  %v261_v51 = vpop.permute.xlu1 %260  ;;  %v898_v15 = vmul.f32 5.656854, %v708_v12 }
 0x105   :  { %v2831_v49 = vsel %vm346_vm15, 1.0, %v3131_v62  ;;  %vm347_vm3 = vcmp.eq.s32.totalorder %v261_v51, %v3310_v58  ;;  %vm354_vm15 = vcmp.eq.s32.totalorder %v282_v26, %v3310_v58 }
 0x106   :  { %2872 = vmatmul.msk.f32.gmra.mxu1 %vm495_vm0, %v2808_v41  ;;  %2893 = vmatmul.msk.f32.gmra.mxu3 %vm495_vm0, %v2829_v42  ;;  %v2832_v54 = vsel %vm347_vm3, 1.0, %v3131_v62  ;;  %v3638_v18 = vadd.f32 %v962_v17, %v898_v15  ;;  %v2839_v27 = vsel %vm354_vm15, 1.0, %v3131_v62  ;;  %vm357_vm3 = vcmp.eq.s32.totalorder %v291_v32, %v3310_v58  ;;  %v997_v32 = vld [vmem:[%s6004_s2 + $0x120] sm:$0xff] }
 0x107   :  { %2883 = vmatmul.msk.f32.gmra.mxu2 %vm495_vm0, %v2819_v43  ;;  %v2842_v33 = vsel %vm357_vm3, 1.0, %v3131_v62 }
 0x10b   :  { %v267_v1 = vpop.permute.xlu0 %266  ;;  %v711_v44 = vpop.f32.mrf.mxu0 }
 0x10c   :  { %vm349_vm7 = vcmp.eq.s32.totalorder %v267_v1, %v3310_v58  ;;  %v270_v5 = vpop.permute.xlu1 %269 }
 0x10d   :  { %v2834_v2 = vsel %vm349_vm7, 1.0, %v3131_v62  ;;  %vm350_vm9 = vcmp.eq.s32.totalorder %v270_v5, %v3310_v58 }
 0x10e   :  { %2873 = vmatmul.msk.f32.gmra.mxu1 %vm495_vm0, %v2809_v45  ;;  %2894 = vmatmul.msk.f32.gmra.mxu3 %vm495_vm0, %v2830_v46  ;;  %v2835_v7 = vsel %vm350_vm9, 1.0, %v3131_v62 }
 0x10f   :  { %2884 = vmatmul.msk.f32.gmra.mxu2 %vm495_vm0, %v2820_v47 }
 0x113   :  { %v276_v16 = vpop.permute.xlu0 %275 }
 0x114   :  { %vm352_vm13 = vcmp.eq.s32.totalorder %v276_v16, %v3310_v58  ;;  %v279_v22 = vpop.permute.xlu1 %278 }
 0x115   :  { %v2837_v21 = vsel %vm352_vm13, 1.0, %v3131_v62  ;;  %vm353_vm14 = vcmp.eq.s32.totalorder %v279_v22, %v3310_v58  ;;  %v996_v22 = vld [vmem:[%s6004_s2 + $0x118] sm:$0xff] }
 0x116   :  { %2874 = vmatmul.msk.f32.gmra.mxu1 %vm495_vm0, %v2810_v39  ;;  %2895 = vmatmul.msk.f32.gmra.mxu3 %vm495_vm0, %v2831_v49  ;;  %v2838_v25 = vsel %vm353_vm14, 1.0, %v3131_v62 }
 0x117   :  { %2885 = vmatmul.msk.f32.gmra.mxu2 %vm495_vm0, %v2821_v50  ;;  %v899_v50 = vmul.f32 5.656854, %v711_v44 }
 0x11b   :  { %v285_v28 = vpop.permute.xlu0 %284 }
 0x11c   :  { %vm355_vm1 = vcmp.eq.s32.totalorder %v285_v28, %v3310_v58  ;;  %v288_v30 = vpop.permute.xlu1 %287 }
 0x11d   :  { %v2840_v29 = vsel %vm355_vm1, 1.0, %v3131_v62  ;;  %vm356_vm2 = vcmp.eq.s32.totalorder %v288_v30, %v3310_v58 }
 0x11e   :  { %2875 = vmatmul.msk.f32.gmra.mxu1 %vm495_vm0, %v2811_v52  ;;  %2896 = vmatmul.msk.f32.gmra.mxu3 %vm495_vm0, %v2832_v54  ;;  %v2841_v31 = vsel %vm356_vm2, 1.0, %v3131_v62  ;;  %v963_v54 = vld [vmem:[%s6004_s2 + $0x10] sm:$0xff] }
 0x11f   :  { %2886 = vmatmul.msk.f32.gmra.mxu2 %vm495_vm0, %v2822_v55  ;;  %v995_v55 = vld [vmem:[%s6004_s2 + $0x110] sm:$0xff] }
 0x123   :  { %v753_v53 = vpop.f32.mrf.mxu1  ;;  %v294_v34 = vpop.permute.xlu0 %293 }
 0x124   :  { %v913_v60 = vmul.f32 5.656854, %v753_v53  ;;  %vm358_vm4 = vcmp.eq.s32.totalorder %v294_v34, %v3310_v58  ;;  %v994_v58 = vld [vmem:[%s6004_s2 + $0x108] sm:$0xff]  ;;  %v981_v34 = vld [vmem:[%s6004_s2 + $0xa0] sm:$0xff] }
 0x125   :  { %v2843_v35 = vsel %vm358_vm4, 1.0, %v3131_v62  ;;  %v1010_v62 = vld [vmem:[%s6004_s2 + $0x188] sm:$0xff] }
 0x126   :  { %v3600_v0 = vadd.f32 %v977_v57, %v913_v60  ;;  %2897 = vmatmul.msk.f32.gmra.mxu3 %vm495_vm0, %v2833_v61  ;;  %v714_v57 = vpop.f32.mrf.mxu0  ;;  %v3696_v60 = vadd.f32 %v963_v54, %v899_v50 }
 0x127   :  { %2887 = vmatmul.msk.f32.gmra.mxu2 %vm495_vm0, %v2823_v63  ;;  %v900_v5 = vmul.f32 5.656854, %v714_v57 }
 0x128   :  { %1121 = vadd.xlane.f32.xlu1 %v3600_v0 }
 0x12b   :  { %v756_v19 = vpop.f32.mrf.mxu1 }
 0x12c   :  { %v914_v23 = vmul.f32 5.656854, %v756_v19 }
 0x12e   :  { %2898 = vmatmul.msk.f32.gmra.mxu3 %vm495_vm0, %v2834_v2  ;;  %v3649_v3 = vadd.f32 %v978_v24, %v914_v23 }
 0x12f   :  { %2888 = vmatmul.msk.f32.gmra.mxu2 %vm495_vm0, %v2824_v4 }
 0x133   :  { %v759_v47 = vpop.f32.mrf.mxu1 }
 0x134   :  { %v915_v2 = vmul.f32 5.656854, %v759_v47  ;;  %v966_v47 = vld [vmem:[%s6004_s2 + $0x28] sm:$0xff] }
 0x136   :  { %2899 = vmatmul.msk.f32.gmra.mxu3 %vm495_vm0, %v2835_v7  ;;  %v979_v7 = vld [vmem:[%s6004_s2 + $0x90] sm:$0xff] }
 0x137   :  { %2889 = vmatmul.msk.f32.gmra.mxu2 %vm495_vm0, %v2825_v6 }
 0x138   :  { %v801_v59 = vpop.f32.mrf.mxu2 }
 0x139   :  { %v929_v10 = vmul.f32 5.656854, %v801_v59  ;;  %v964_v59 = vld [vmem:[%s6004_s2 + $0x18] sm:$0xff] }
 0x13b   :  { %v3625_v11 = vadd.f32 %v993_v9, %v929_v10  ;;  %v762_v1 = vpop.f32.mrf.mxu1  ;;  %v3714_v10 = vadd.f32 %v979_v7, %v915_v2  ;;  %v983_v2 = vld [vmem:[%s6004_s2 + $0xb0] sm:$0xff] }
 0x13c   :  { %v916_v4 = vmul.f32 5.656854, %v762_v1  ;;  %v967_v1 = vld [vmem:[%s6004_s2 + $0x30] sm:$0xff] }
 0x13d   :  { %1153 = vadd.xlane.f32.xlu2 %v3625_v11 }
 0x13e   :  { %2900 = vmatmul.msk.f32.gmra.mxu3 %vm495_vm0, %v2836_v13  ;;  %v3716_v12 = vadd.f32 %v980_v8, %v916_v4  ;;  %v717_v13 = vpop.f32.mrf.mxu0  ;;  %v1014_v4 = vld [vmem:[%s6004_s2 + $0x1a8] sm:$0xff] }
 0x13f   :  { %2890 = vmatmul.msk.f32.gmra.mxu2 %vm495_vm0, %v2826_v14  ;;  %v3718_v14 = vadd.f32 %v964_v59, %v900_v5  ;;  %v901_v15 = vmul.f32 5.656854, %v717_v13 }
 0x143   :  { %v765_v17 = vpop.f32.mrf.mxu1 }
 0x145   :  { %1091 = vadd.xlane.f32.xlu2 %v3638_v18 }
 0x146   :  { %2901 = vmatmul.msk.f32.gmra.mxu3 %vm495_vm0, %v2837_v21  ;;  %v1012_v21 = vld [vmem:[%s6004_s2 + $0x198] sm:$0xff]  ;;  %v720_v30 = vpop.f32.mrf.mxu0 }
 0x147   :  { %2891 = vmatmul.msk.f32.gmra.mxu2 %vm495_vm0, %v2827_v20  ;;  %v965_v20 = vld [vmem:[%s6004_s2 + $0x20] sm:$0xff] }
 0x148   :  { %v3732_v24 = vadd.f32 %v965_v20, %v901_v15  ;;  %v999_v20 = vld [vmem:[%s6004_s2 + $0x130] sm:$0xff] }
 0x14d   :  { %1123 = vadd.xlane.f32.xlu2 %v3649_v3 }
 0x14e   :  { %2902 = vmatmul.msk.f32.gmra.mxu3 %vm495_vm0, %v2838_v25 }
 0x156   :  { %2903 = vmatmul.msk.f32.gmra.mxu3 %vm495_vm0, %v2839_v27 }
 0x15a   :  { %v804_v41 = vpop.f32.mrf.mxu2 }
 0x15b   :  { %v930_v43 = vmul.f32 5.656854, %v804_v41 }
 0x15d   :  { %v3681_v48 = vadd.f32 %v994_v58, %v930_v43 }
 0x15e   :  { %2904 = vmatmul.msk.f32.gmra.mxu3 %vm495_vm0, %v2840_v29 }
 0x162   :  { %v807_v49 = vpop.f32.mrf.mxu2 }
 0x163   :  { %v931_v51 = vmul.f32 5.656854, %v807_v49  ;;  %v723_v49 = vpop.f32.mrf.mxu0 }
 0x165   :  { %v3698_v61 = vadd.f32 %v995_v55, %v931_v51  ;;  %v903_v55 = vmul.f32 5.656854, %v723_v49 }
 0x166   :  { %2905 = vmatmul.msk.f32.gmra.mxu3 %vm495_vm0, %v2841_v31  ;;  %v917_v31 = vmul.f32 5.656854, %v765_v17  ;;  %v968_v17 = vld [vmem:[%s6004_s2 + $0x38] sm:$0xff] }
 0x168   :  { %v3754_v41 = vadd.f32 %v981_v34, %v917_v31  ;;  %v1016_v34 = vld [vmem:[%s6004_s2 + $0x1b8] sm:$0xff] }
 0x16a   :  { %v810_v6 = vpop.f32.mrf.mxu2 }
 0x16b   :  { %v932_v19 = vmul.f32 5.656854, %v810_v6  ;;  %v3786_v6 = vadd.f32 %v967_v1, %v903_v55  ;;  %v726_v8 = vpop.f32.mrf.mxu0  ;;  %v1001_v55 = vld [vmem:[%s6004_s2 + $0x140] sm:$0xff] }
 0x16d   :  { %v3736_v27 = vadd.f32 %v996_v22, %v932_v19  ;;  %v1015_v19 = vld [vmem:[%s6004_s2 + $0x1b0] sm:$0xff] }
 0x16e   :  { %2906 = vmatmul.msk.f32.gmra.mxu3 %vm495_vm0, %v2842_v33  ;;  %v1013_v33 = vld [vmem:[%s6004_s2 + $0x1a0] sm:$0xff] }
 0x172   :  { %v813_v23 = vpop.f32.mrf.mxu2 }
 0x173   :  { %v933_v28 = vmul.f32 5.656854, %v813_v23  ;;  %v729_v31 = vpop.f32.mrf.mxu0 }
 0x176   :  { %2907 = vmatmul.msk.f32.gmra.mxu3 %vm495_vm0, %v2843_v35  ;;  %v768_v35 = vpop.f32.mrf.mxu1 }
 0x177   :  { %v918_v43 = vmul.f32 5.656854, %v768_v35  ;;  %v984_v35 = vld [vmem:[%s6004_s2 + $0xb8] sm:$0xff] }
 0x181   :  { %v849_v36 = vpop.f32.mrf.mxu3 }
 0x182   :  { %v945_v40 = vmul.f32 5.656854, %v849_v36  ;;  %v3750_v36 = vadd.f32 %v997_v32, %v933_v28 }
 0x184   :  { %v3672_v42 = vadd.f32 %v1009_v37, %v945_v40  ;;  %v816_v40 = vpop.f32.mrf.mxu2 }
 0x185   :  { %v934_v44 = vmul.f32 5.656854, %v816_v40 }
 0x186   :  { %6139 = vst [vmem:[#allocation8_spill] sm:$0xff] %v3672_v42  ;;  %1185 = vadd.xlane.f32.xlu0 %v3672_v42 }
 0x189   :  { %v852_v45 = vpop.f32.mrf.mxu3 }
 0x18a   :  { %v946_v46 = vmul.f32 5.656854, %v852_v45  ;;  %v902_v45 = vmul.f32 5.656854, %v720_v30 }
 0x18c   :  { %v3683_v39 = vadd.f32 %v1010_v62, %v946_v46  ;;  %v982_v62 = vld [vmem:[%s6004_s2 + $0xa8] sm:$0xff]  ;;  %v3772_v54 = vadd.f32 %v966_v47, %v902_v45  ;;  %v905_v47 = vmul.f32 5.656854, %v729_v31 }
 0x18d   :  { %v998_v46 = vld [vmem:[%s6004_s2 + $0x128] sm:$0xff]  ;;  %v3768_v50 = vadd.f32 %v982_v62, %v918_v43 }
 0x18e   :  { %6140 = vst [vmem:[#allocation9_spill] sm:$0xff] %v3683_v39  ;;  %1155 = vadd.xlane.f32.xlu0 %v3681_v48  ;;  %1187 = vadd.xlane.f32.xlu1 %v3683_v39  ;;  %v3770_v51 = vadd.f32 %v998_v46, %v934_v44 }
 0x191   :  { %v855_v52 = vpop.f32.mrf.mxu3 }
 0x192   :  { %v947_v53 = vmul.f32 5.656854, %v855_v52  ;;  %v771_v52 = vpop.f32.mrf.mxu1 }
 0x194   :  { %v3700_v63 = vadd.f32 %v1011_v56, %v947_v53  ;;  %v919_v56 = vmul.f32 5.656854, %v771_v52  ;;  %v819_v53 = vpop.f32.mrf.mxu2  ;;  %v985_v52 = vld [vmem:[%s6004_s2 + $0xc0] sm:$0xff] }
 0x196   :  { %6141 = vst [vmem:[#allocation10_spill] sm:$0xff] %v3700_v63  ;;  %1093 = vadd.xlane.f32.xlu0 %v3696_v60  ;;  %1157 = vadd.xlane.f32.xlu1 %v3698_v61  ;;  %v3788_v7 = vadd.f32 %v983_v2, %v919_v56  ;;  %v969_v56 = vld [vmem:[%s6004_s2 + $0x40] sm:$0xff] }
 0x197   :  { %1189 = vadd.xlane.f32.xlu2 %v3700_v63 }
 0x199   :  { %v858_v9 = vpop.f32.mrf.mxu3 }
 0x19a   :  { %v948_v16 = vmul.f32 5.656854, %v858_v9  ;;  %v904_v9 = vmul.f32 5.656854, %v726_v8  ;;  %v774_v15 = vpop.f32.mrf.mxu1 }
 0x19b   :  { %v920_v32 = vmul.f32 5.656854, %v774_v15  ;;  %v970_v15 = vld [vmem:[%s6004_s2 + $0x48] sm:$0xff] }
 0x19c   :  { %v3734_v25 = vadd.f32 %v1012_v21, %v948_v16  ;;  %v935_v16 = vmul.f32 5.656854, %v819_v53  ;;  %v822_v21 = vpop.f32.mrf.mxu2  ;;  %v3804_v22 = vadd.f32 %v968_v17, %v904_v9  ;;  %v732_v53 = vpop.f32.mrf.mxu0  ;;  %v1017_v17 = vld [vmem:[%s6004_s2 + $0x1c0] sm:$0xff] }
 0x19e   :  { %1125 = vadd.xlane.f32.xlu0 %v3714_v10  ;;  %1127 = vadd.xlane.f32.xlu1 %v3716_v12  ;;  %6142 = vst [vmem:[#allocation11_spill] sm:$0xff] %v3734_v25  ;;  %v3808_v28 = vadd.f32 %v999_v20, %v935_v16  ;;  %v986_v16 = vld [vmem:[%s6004_s2 + $0xc8] sm:$0xff] }
 0x19f   :  { %1095 = vadd.xlane.f32.xlu2 %v3718_v14 }
 0x1a1   :  { %v861_v26 = vpop.f32.mrf.mxu3 }
 0x1a2   :  { %v949_v29 = vmul.f32 5.656854, %v861_v26  ;;  %v777_v40 = vpop.f32.mrf.mxu1 }
 0x1a3   :  { %v921_v62 = vmul.f32 5.656854, %v777_v40  ;;  %v1002_v40 = vld [vmem:[%s6004_s2 + $0x148] sm:$0xff] }
 0x1a4   :  { %v3752_v37 = vadd.f32 %v1013_v33, %v949_v29  ;;  %v936_v29 = vmul.f32 5.656854, %v822_v21  ;;  %v1000_v33 = vld [vmem:[%s6004_s2 + $0x138] sm:$0xff]  ;;  %v825_v45 = vpop.f32.mrf.mxu2 }
 0x1a5   :  { %v937_v46 = vmul.f32 5.656854, %v825_v45 }
 0x1a6   :  { %1097 = vadd.xlane.f32.xlu1 %v3732_v24  ;;  %1191 = vadd.xlane.f32.xlu0 %v3734_v25  ;;  %6143 = vst [vmem:[#allocation12_spill] sm:$0xff] %v3752_v37  ;;  %v3822_v43 = vadd.f32 %v1000_v33, %v936_v29 }
 0x1a7   :  { %1159 = vadd.xlane.f32.xlu2 %v3736_v27  ;;  %v3842_v1 = vadd.f32 %v1001_v55, %v937_v46 }
 0x1a9   :  { %v864_v58 = vpop.f32.mrf.mxu3 }
 0x1aa   :  { %v950_v57 = vmul.f32 5.656854, %v864_v58  ;;  %v3826_v58 = vadd.f32 %v984_v35, %v920_v32  ;;  %v780_v2 = vpop.f32.mrf.mxu1  ;;  %v1018_v35 = vld [vmem:[%s6004_s2 + $0x1c8] sm:$0xff] }
 0x1ab   :  { %v922_v8 = vmul.f32 5.656854, %v780_v2  ;;  %v1003_v2 = vld [vmem:[%s6004_s2 + $0x150] sm:$0xff] }
 0x1ac   :  { %v3790_v59 = vadd.f32 %v1014_v4, %v950_v57  ;;  %v3840_v57 = vadd.f32 %v985_v52, %v921_v62  ;;  %v3844_v4 = vadd.f32 %v969_v56, %v905_v47  ;;  %v828_v9 = vpop.f32.mrf.mxu2 }
 0x1ad   :  { %v3860_v21 = vadd.f32 %v986_v16, %v922_v8  ;;  %v938_v33 = vmul.f32 5.656854, %v828_v9  ;;  %v987_v8 = vld [vmem:[%s6004_s2 + $0xd0] sm:$0xff] }
 0x1ae   :  { %1161 = vadd.xlane.f32.xlu0 %v3750_v36  ;;  %1193 = vadd.xlane.f32.xlu1 %v3752_v37  ;;  %6144 = vst [vmem:[#allocation13_spill] sm:$0xff] %v3790_v59 }
 0x1af   :  { %1129 = vadd.xlane.f32.xlu2 %v3754_v41 }
 0x1b1   :  { %v867_v5 = vpop.f32.mrf.mxu3 }
 0x1b2   :  { %v951_v13 = vmul.f32 5.656854, %v867_v5  ;;  %v906_v5 = vmul.f32 5.656854, %v732_v53  ;;  %v783_v32 = vpop.f32.mrf.mxu1 }
 0x1b3   :  { %v923_v53 = vmul.f32 5.656854, %v783_v32 }
 0x1b4   :  { %v3806_v23 = vadd.f32 %v1015_v19, %v951_v13  ;;  %v3858_v20 = vadd.f32 %v970_v15, %v906_v5  ;;  %v831_v45 = vpop.f32.mrf.mxu2  ;;  %v1019_v5 = vld [vmem:[%s6004_s2 + $0x1d0] sm:$0xff] }
 0x1b5   :  { %v939_v52 = vmul.f32 5.656854, %v831_v45 }
 0x1b6   :  { %1131 = vadd.xlane.f32.xlu0 %v3768_v50  ;;  %1163 = vadd.xlane.f32.xlu1 %v3770_v51  ;;  %6145 = vst [vmem:[#allocation14_spill] sm:$0xff] %v3806_v23 }
 0x1b7   :  { %1099 = vadd.xlane.f32.xlu2 %v3772_v54 }
 0x1b9   :  { %v870_v26 = vpop.f32.mrf.mxu3 }
 0x1ba   :  { %v952_v30 = vmul.f32 5.656854, %v870_v26  ;;  %v735_v26 = vpop.f32.mrf.mxu0  ;;  %v786_v9 = vpop.f32.mrf.mxu1 }
 0x1bc   :  { %v3824_v44 = vadd.f32 %v1016_v34, %v952_v30  ;;  %v907_v30 = vmul.f32 5.656854, %v735_v26  ;;  %v971_v34 = vld [vmem:[%s6004_s2 + $0x50] sm:$0xff]  ;;  %v834_v16 = vpop.f32.mrf.mxu2  ;;  %v3905_v26 = vpop.xlane.xlu1 %1089 }
 0x1be   :  { %1101 = vadd.xlane.f32.xlu0 %v3786_v6  ;;  %1133 = vadd.xlane.f32.xlu1 %v3788_v7  ;;  %6146 = vst [vmem:[#allocation15_spill] sm:$0xff] %v3824_v44  ;;  %v3876_v62 = vadd.f32 %v971_v34, %v907_v30  ;;  %v924_v30 = vmul.f32 5.656854, %v786_v9  ;;  %v988_v34 = vld [vmem:[%s6004_s2 + $0xd8] sm:$0xff] }
 0x1bf   :  { %1195 = vadd.xlane.f32.xlu2 %v3790_v59 }
 0x1c0   :  { %6148 = vst [vmem:[#allocation17_spill] sm:$0xff] %v3876_v62 }
 0x1c1   :  { %v873_v49 = vpop.f32.mrf.mxu3 }
 0x1c2   :  { %v953_v13 = vmul.f32 5.656854, %v873_v49  ;;  %v3880_v49 = vadd.f32 %v1002_v40, %v938_v33  ;;  %v738_v56 = vpop.f32.mrf.mxu0  ;;  %v972_v40 = vld [vmem:[%s6004_s2 + $0x58] sm:$0xff] }
 0x1c3   :  { %v908_v32 = vmul.f32 5.656854, %v738_v56 }
 0x1c4   :  { %v3862_v29 = vadd.f32 %v1017_v17, %v953_v13  ;;  %6150 = vst [vmem:[#allocation19_spill] sm:$0xff] %v3880_v49  ;;  %v3894_v13 = vadd.f32 %v1003_v2, %v939_v52  ;;  %v3898_v17 = vadd.f32 %v987_v8, %v923_v53  ;;  %v837_v9 = vpop.f32.mrf.mxu2 }
 0x1c5   :  { %v3920_v56 = vadd.f32 %v972_v40, %v908_v32  ;;  %v989_v32 = vld [vmem:[%s6004_s2 + $0xe0] sm:$0xff] }
 0x1c6   :  { %1103 = vadd.xlane.f32.xlu1 %v3804_v22  ;;  %1197 = vadd.xlane.f32.xlu0 %v3806_v23  ;;  %6147 = vst [vmem:[#allocation16_spill] sm:$0xff] %v3862_v29 }
 0x1c7   :  { %1165 = vadd.xlane.f32.xlu2 %v3808_v28 }
 0x1c9   :  { %v876_v19 = vpop.f32.mrf.mxu3 }
 0x1ca   :  { %v954_v31 = vmul.f32 5.656854, %v876_v19  ;;  %v3900_v19 = vpop.xlane.xlu2 %1153  ;;  %v741_v45 = vpop.f32.mrf.mxu0 }
 0x1cb   :  { %v909_v53 = vmul.f32 5.656854, %v741_v45 }
 0x1cc   :  { %v3878_v46 = vadd.f32 %v1018_v35, %v954_v31  ;;  %v940_v31 = vmul.f32 5.656854, %v834_v16  ;;  %v1004_v35 = vld [vmem:[%s6004_s2 + $0x158] sm:$0xff] }
 0x1ce   :  { %1167 = vadd.xlane.f32.xlu0 %v3822_v43  ;;  %1199 = vadd.xlane.f32.xlu1 %v3824_v44  ;;  %6149 = vst [vmem:[#allocation18_spill] sm:$0xff] %v3878_v46  ;;  %v3918_v52 = vadd.f32 %v1004_v35, %v940_v31  ;;  %v973_v31 = vld [vmem:[%s6004_s2 + $0x60] sm:$0xff]  ;;  %v941_v44 = vmul.f32 5.656854, %v837_v9 }
 0x1cf   :  { %1135 = vadd.xlane.f32.xlu2 %v3826_v58  ;;  %v3940_v40 = vadd.f32 %v973_v31, %v909_v53  ;;  %v974_v53 = vld [vmem:[%s6004_s2 + $0x68] sm:$0xff]  ;;  %v1005_v31 = vld [vmem:[%s6004_s2 + $0x160] sm:$0xff] }
 0x1d0   :  { %6152 = vst [vmem:[#allocation21_spill] sm:$0xff] %v3918_v52 }
 0x1d1   :  { %v879_v47 = vpop.f32.mrf.mxu3  ;;  %6153 = vst [vmem:[#allocation22_spill] sm:$0xff] %v3940_v40 }
 0x1d2   :  { %v955_v55 = vmul.f32 5.656854, %v879_v47  ;;  %v3916_v47 = vadd.f32 %v988_v34, %v924_v30  ;;  %v3927_v8 = vpop.xlane.xlu2 %1091  ;;  %v1020_v34 = vld [vmem:[%s6004_s2 + $0x1d8] sm:$0xff] }
 0x1d4   :  { %v3896_v15 = vadd.f32 %v1019_v5, %v955_v55  ;;  %v789_v55 = vpop.f32.mrf.mxu1  ;;  %v3925_v5 = vpop.xlane.xlu1 %1121 }
 0x1d5   :  { %v925_v2 = vmul.f32 5.656854, %v789_v55 }
 0x1d6   :  { %1137 = vadd.xlane.f32.xlu0 %v3840_v57  ;;  %1169 = vadd.xlane.f32.xlu1 %v3842_v1  ;;  %6151 = vst [vmem:[#allocation20_spill] sm:$0xff] %v3896_v15 }
 0x1d7   :  { %1105 = vadd.xlane.f32.xlu2 %v3844_v4  ;;  %v3942_v45 = vadd.f32 %v989_v32, %v925_v2  ;;  %v1021_v2 = vld [vmem:[%s6004_s2 + $0x1e0] sm:$0xff]  ;;  %v840_v32 = vpop.f32.mrf.mxu2 }
 0x1d9   :  { %v882_v33 = vpop.f32.mrf.mxu3  ;;  %6154 = vst [vmem:[#allocation23_spill] sm:$0xff] %v3942_v45 }
 0x1da   :  { %v956_v16 = vmul.f32 5.656854, %v882_v33  ;;  %v744_v33 = vpop.f32.mrf.mxu0 }
 0x1dc   :  { %v3944_v55 = vadd.f32 %v1020_v34, %v956_v16  ;;  %v3959_v16 = vpop.xlane.xlu2 %1123 }
 0x1de   :  { %1107 = vadd.xlane.f32.xlu0 %v3858_v20  ;;  %1139 = vadd.xlane.f32.xlu1 %v3860_v21  ;;  %6155 = vst [vmem:[#allocation24_spill] sm:$0xff] %v3944_v55 }
 0x1df   :  { %1201 = vadd.xlane.f32.xlu2 %v3862_v29 }
 0x1e1   :  { %v885_v35 = vpop.f32.mrf.mxu3 }
 0x1e2   :  { %v957_v29 = vmul.f32 5.656854, %v885_v35 }
 0x1e4   :  { %v3966_v34 = vadd.f32 %v1021_v2, %v957_v29  ;;  %v1006_v29 = vld [vmem:[%s6004_s2 + $0x168] sm:$0xff]  ;;  %v747_v2 = vpop.f32.mrf.mxu0 }
 0x1e6   :  { %1109 = vadd.xlane.f32.xlu1 %v3876_v62  ;;  %1203 = vadd.xlane.f32.xlu0 %v3878_v46  ;;  %v792_v46 = vpop.f32.mrf.mxu1  ;;  %6157 = vst [vmem:[#allocation26_spill] sm:$0xff] %v3966_v34 }
 0x1e7   :  { %1171 = vadd.xlane.f32.xlu2 %v3880_v49  ;;  %v926_v37 = vmul.f32 5.656854, %v792_v46 }
 0x1e9   :  { %v888_v35 = vpop.f32.mrf.mxu3 }
 0x1ee   :  { %1173 = vadd.xlane.f32.xlu0 %v3894_v13  ;;  %1205 = vadd.xlane.f32.xlu1 %v3896_v15  ;;  %v910_v15 = vmul.f32 5.656854, %v744_v33  ;;  %v3968_v33 = vadd.f32 %v1005_v31, %v941_v44  ;;  %v1022_v44 = vld [vmem:[%s6004_s2 + $0x1e8] sm:$0xff]  ;;  %v795_v46 = vpop.f32.mrf.mxu1 }
 0x1ef   :  { %1141 = vadd.xlane.f32.xlu2 %v3898_v17 }
 0x1f0   :  { %v3964_v9 = vadd.f32 %v974_v53, %v910_v15  ;;  %6158 = vst [vmem:[#allocation27_spill] sm:$0xff] %v3968_v33  ;;  %v990_v53 = vld [vmem:[%s6004_s2 + $0xe8] sm:$0xff] }
 0x1f2   :  { %6156 = vst [vmem:[#allocation25_spill] sm:$0xff] %v3964_v9 }
 0x1f6   :  { %1143 = vadd.xlane.f32.xlu0 %v3916_v47  ;;  %1175 = vadd.xlane.f32.xlu1 %v3918_v52 }
 0x1f7   :  { %1111 = vadd.xlane.f32.xlu2 %v3920_v56 }
 0x1f9   :  { %v3929_v30 = vpop.xlane.xlu0 %1185 }
 0x1fe   :  { %1113 = vadd.xlane.f32.xlu0 %v3940_v40  ;;  %1145 = vadd.xlane.f32.xlu1 %v3942_v45  ;;  %v958_v45 = vmul.f32 5.656854, %v888_v35  ;;  %v843_v35 = vpop.f32.mrf.mxu2  ;;  %v911_v40 = vmul.f32 5.656854, %v747_v2 }
 0x1ff   :  { %1207 = vadd.xlane.f32.xlu2 %v3944_v55  ;;  %v942_v55 = vmul.f32 5.656854, %v840_v32 }
 0x200   :  { %v3990_v32 = vadd.f32 %v1022_v44, %v958_v45  ;;  %v991_v45 = vld [vmem:[%s6004_s2 + $0xf0] sm:$0xff]  ;;  %v891_v44 = vpop.f32.mrf.mxu3 }
 0x201   :  { %v3949_v23 = vpop.xlane.xlu1 %1187  ;;  %v3951_v59 = vpop.xlane.xlu0 %1155  ;;  %v3988_v31 = vadd.f32 %v1006_v29, %v942_v55  ;;  %v975_v29 = vld [vmem:[%s6004_s2 + $0x70] sm:$0xff]  ;;  %v959_v39 = vmul.f32 5.656854, %v891_v44 }
 0x202   :  { %6160 = vst [vmem:[#allocation29_spill] sm:$0xff] %v3990_v32 }
 0x203   :  { %6159 = vst [vmem:[#allocation28_spill] sm:$0xff] %v3988_v31 }
 0x206   :  { %1115 = vadd.xlane.f32.xlu1 %v3964_v9  ;;  %1209 = vadd.xlane.f32.xlu0 %v3966_v34  ;;  %v3992_v34 = vadd.f32 %v990_v53, %v926_v37  ;;  %v943_v9 = vmul.f32 5.656854, %v843_v35  ;;  %v1007_v37 = vld [vmem:[%s6004_s2 + $0x170] sm:$0xff]  ;;  %v798_v35 = vpop.f32.mrf.mxu1 }
 0x207   :  { %1177 = vadd.xlane.f32.xlu2 %v3968_v33  ;;  %v927_v33 = vmul.f32 5.656854, %v795_v46  ;;  %v750_v46 = vpop.f32.mrf.mxu0 }
 0x208   :  { %6161 = vst [vmem:[#allocation30_spill] sm:$0xff] %v3992_v34  ;;  %v4012_v2 = vadd.f32 %v1007_v37, %v943_v9  ;;  %v976_v9 = vld [vmem:[%s6004_s2 + $0x78] sm:$0xff]  ;;  %v4035_v37 = vmul.f32 0.03125, %v3905_v26 }
 0x209   :  { %v3973_v25 = vpop.xlane.xlu1 %1157  ;;  %v3975_v52 = vpop.xlane.xlu0 %1093  ;;  %v4010_v53 = vadd.f32 %v991_v45, %v927_v33  ;;  %v1023_v45 = vld [vmem:[%s6004_s2 + $0x1f0] sm:$0xff] }
 0x20a   :  { %v3983_v15 = vpop.xlane.xlu2 %1189  ;;  %6163 = vst [vmem:[#allocation32_spill] sm:$0xff] %v4012_v2  ;;  %v4051_v26 = vsub.f32 %v3546_v38, %v4035_v37 }
 0x20b   :  { %6162 = vst [vmem:[#allocation31_spill] sm:$0xff] %v4010_v53 }
 0x20c   :  { %6167 = vst [vmem:[#allocation36_spill] sm:$0xff] %v4051_v26  ;;  %v1345_v38 = vmul.f32 %v4051_v26, %v4051_v26 }
 0x20e   :  { %1179 = vadd.xlane.f32.xlu0 %v3988_v31  ;;  %1211 = vadd.xlane.f32.xlu1 %v3990_v32  ;;  %v4014_v32 = vadd.f32 %v975_v29, %v911_v40  ;;  %v912_v31 = vmul.f32 5.656854, %v750_v46  ;;  %v992_v40 = vld [vmem:[%s6004_s2 + $0xf8] sm:$0xff]  ;;  %v4042_v46 = vmul.f32 0.03125, %v3925_v5 }
 0x20f   :  { %1147 = vadd.xlane.f32.xlu2 %v3992_v34  ;;  %v928_v34 = vmul.f32 5.656854, %v798_v35  ;;  %v894_v35 = vpop.f32.mrf.mxu3 }
 0x210   :  { %v4037_v29 = vadd.f32 %v976_v9, %v912_v31  ;;  %v4057_v5 = vsub.f32 %v3600_v0, %v4042_v46 }
 0x211   :  { %v3997_v49 = vpop.xlane.xlu1 %1127  ;;  %v1126_v63 = vpop.xlane.xlu0 %1125  ;;  %v4039_v44 = vadd.f32 %v992_v40, %v928_v34  ;;  %v4063_v40 = vmul.f32 0.03125, %v3959_v16 }
 0x212   :  { %v4005_v55 = vpop.xlane.xlu2 %1095  ;;  %6164 = vst [vmem:[#allocation33_spill] sm:$0xff] %v4037_v29  ;;  %v1361_v0 = vmul.f32 %v4057_v5, %v4057_v5 }
 0x213   :  { %6165 = vst [vmem:[#allocation34_spill] sm:$0xff] %v4039_v44  ;;  %v4077_v16 = vsub.f32 %v3649_v3, %v4063_v40 }
 0x214   :  { %6168 = vst [vmem:[#allocation37_spill] sm:$0xff] %v4057_v5  ;;  %v4089_v5 = vmul.f32 0.03125, %v3975_v52 }
 0x215   :  { %6170 = vst [vmem:[#allocation39_spill] sm:$0xff] %v4077_v16  ;;  %v1362_v3 = vmul.f32 %v4077_v16, %v4077_v16 }
 0x216   :  { %1149 = vadd.xlane.f32.xlu0 %v4010_v53  ;;  %1181 = vadd.xlane.f32.xlu1 %v4012_v2  ;;  %v4044_v2 = vadd.f32 %v1023_v45, %v959_v39  ;;  %v960_v53 = vmul.f32 5.656854, %v894_v35  ;;  %v1024_v39 = vld [vmem:[%s6004_s2 + $0x1f8] sm:$0xff]  ;;  %v4066_v45 = vmul.f32 0.03125, %v3951_v59  ;;  %v4105_v52 = vsub.f32 %v3696_v60, %v4089_v5 }
 0x217   :  { %1117 = vadd.xlane.f32.xlu2 %v4014_v32 }
 0x218   :  { %6166 = vst [vmem:[#allocation35_spill] sm:$0xff] %v4044_v2  ;;  %v4070_v35 = vadd.f32 %v1024_v39, %v960_v53  ;;  %v4081_v59 = vsub.f32 %v3681_v48, %v4066_v45  ;;  %v1347_v60 = vmul.f32 %v4105_v52, %v4105_v52 }
 0x219   :  { %v4019_v42 = vpop.xlane.xlu1 %1097  ;;  %v4021_v62 = vpop.xlane.xlu0 %1191  ;;  %6173 = vst [vmem:[#allocation42_spill] sm:$0xff] %v4105_v52 }
 0x21a   :  { %v4029_v33 = vpop.xlane.xlu2 %1159  ;;  %6169 = vst [vmem:[#allocation38_spill] sm:$0xff] %v4070_v35  ;;  %v1378_v48 = vmul.f32 %v4081_v59, %v4081_v59 }
 0x21b   :  { %6171 = vst [vmem:[#allocation40_spill] sm:$0xff] %v4081_v59 }
 0x21e   :  { %1119 = vadd.xlane.f32.xlu0 %v4037_v29  ;;  %1151 = vadd.xlane.f32.xlu1 %v4039_v44 }
 0x21f   :  { %1213 = vadd.xlane.f32.xlu2 %v4044_v2  ;;  %v846_v2 = vpop.f32.mrf.mxu2 }
 0x220   :  { %v944_v44 = vmul.f32 5.656854, %v846_v2  ;;  %v4098_v2 = vmul.f32 0.03125, %v3927_v8 }
 0x221   :  { %v4053_v31 = vpop.xlane.xlu1 %1193  ;;  %v1162_v34 = vpop.xlane.xlu0 %1161 }
 0x222   :  { %v1130_v9 = vpop.xlane.xlu2 %1129  ;;  %v4115_v8 = vsub.f32 %v3638_v18, %v4098_v2 }
 0x224   :  { %6175 = vst [vmem:[#allocation44_spill] sm:$0xff] %v4115_v8  ;;  %v1346_v18 = vmul.f32 %v4115_v8, %v4115_v8 }
 0x226   :  { %1409 = vadd.xlane.f32.xlu1 %v1345_v38  ;;  %1215 = vadd.xlane.f32.xlu0 %v4070_v35  ;;  %v1008_v38 = vld [vmem:[%s6004_s2 + $0x178] sm:$0xff] }
 0x227   :  { %1441 = vadd.xlane.f32.xlu2 %v1361_v0  ;;  %v4091_v0 = vmul.f32 0.03125, %v1126_v63  ;;  %v4100_v35 = vadd.f32 %v1008_v38, %v944_v44  ;;  %v4120_v38 = vmul.f32 0.03125, %v3900_v19 }
 0x229   :  { %v4083_v26 = vpop.xlane.xlu1 %1163  ;;  %v1132_v53 = vpop.xlane.xlu0 %1131  ;;  %6172 = vst [vmem:[#allocation41_spill] sm:$0xff] %v4100_v35  ;;  %v4109_v63 = vsub.f32 %v3714_v10, %v4091_v0  ;;  %v4136_v19 = vsub.f32 %v3625_v11, %v4120_v38 }
 0x22a   :  { %v1100_v39 = vpop.xlane.xlu2 %1099 }
 0x22b   :  { %6174 = vst [vmem:[#allocation43_spill] sm:$0xff] %v4109_v63  ;;  %v1363_v10 = vmul.f32 %v4109_v63, %v4109_v63  ;;  %v1377_v11 = vmul.f32 %v4136_v19, %v4136_v19 }
 0x22c   :  { %6176 = vst [vmem:[#allocation45_spill] sm:$0xff] %v4136_v19 }
 0x22e   :  { %1443 = vadd.xlane.f32.xlu0 %v1362_v3  ;;  %1475 = vadd.xlane.f32.xlu1 %v1378_v48  ;;  %v4123_v3 = vmul.f32 0.03125, %v4005_v55  ;;  %v4130_v48 = vmul.f32 0.03125, %v3973_v25 }
 0x22f   :  { %1183 = vadd.xlane.f32.xlu2 %v4100_v35 }
 0x230   :  { %v4140_v55 = vsub.f32 %v3718_v14, %v4123_v3  ;;  %v4148_v25 = vsub.f32 %v3698_v61, %v4130_v48 }
 0x231   :  { %v4111_v16 = vpop.xlane.xlu1 %1133  ;;  %v1102_v59 = vpop.xlane.xlu0 %1101 }
 0x232   :  { %v4117_v44 = vpop.xlane.xlu2 %1195  ;;  %6177 = vst [vmem:[#allocation46_spill] sm:$0xff] %v4140_v55  ;;  %v1348_v14 = vmul.f32 %v4140_v55, %v4140_v55  ;;  %v1379_v35 = vmul.f32 %v4148_v25, %v4148_v25 }
 0x233   :  { %6178 = vst [vmem:[#allocation47_spill] sm:$0xff] %v4148_v25  ;;  %v4179_v25 = vmul.f32 0.03125, %v1100_v39 }
 0x236   :  { %1413 = vadd.xlane.f32.xlu0 %v1347_v60  ;;  %1445 = vadd.xlane.f32.xlu1 %v1363_v10  ;;  %v4152_v60 = vmul.f32 0.03125, %v1130_v9  ;;  %v4154_v10 = vmul.f32 0.03125, %v1162_v34 }
 0x237   :  { %1411 = vadd.xlane.f32.xlu2 %v1346_v18  ;;  %v4161_v18 = vmul.f32 0.03125, %v3997_v49 }
 0x238   :  { %v4167_v61 = vsub.f32 %v3754_v41, %v4152_v60  ;;  %v4171_v34 = vsub.f32 %v3750_v36, %v4154_v10  ;;  %v4188_v36 = vmul.f32 0.03125, %v4019_v42 }
 0x239   :  { %v4142_v52 = vpop.xlane.xlu1 %1103  ;;  %v4144_v63 = vpop.xlane.xlu0 %1197  ;;  %v4177_v49 = vsub.f32 %v3716_v12, %v4161_v18  ;;  %v4194_v12 = vsub.f32 %v3772_v54, %v4179_v25 }
 0x23a   :  { %v4150_v8 = vpop.xlane.xlu2 %1165  ;;  %6179 = vst [vmem:[#allocation48_spill] sm:$0xff] %v4167_v61  ;;  %v1365_v41 = vmul.f32 %v4167_v61, %v4167_v61  ;;  %v4202_v42 = vsub.f32 %v3732_v24, %v4188_v36 }
 0x23b   :  { %6180 = vst [vmem:[#allocation49_spill] sm:$0xff] %v4171_v34  ;;  %v1350_v54 = vmul.f32 %v4194_v12, %v4194_v12 }
 0x23c   :  { %6181 = vst [vmem:[#allocation50_spill] sm:$0xff] %v4177_v49 }
 0x23d   :  { %6182 = vst [vmem:[#allocation51_spill] sm:$0xff] %v4194_v12 }
 0x23e   :  { %1473 = vadd.xlane.f32.xlu0 %v1377_v11  ;;  %1415 = vadd.xlane.f32.xlu1 %v1348_v14  ;;  %v4181_v11 = vmul.f32 0.03125, %v1132_v53  ;;  %v1364_v14 = vmul.f32 %v4177_v49, %v4177_v49  ;;  %6184 = vst [vmem:[#allocation53_spill] sm:$0xff] %v4202_v42  ;;  %v4205_v49 = vmul.f32 0.03125, %v4029_v33 }
 0x23f   :  { %1477 = vadd.xlane.f32.xlu2 %v1379_v35  ;;  %v1381_v35 = vmul.f32 %v4171_v34, %v4171_v34 }
 0x240   :  { %v4198_v53 = vsub.f32 %v3768_v50, %v4181_v11  ;;  %v4214_v50 = vmul.f32 0.03125, %v4083_v26  ;;  %v4220_v24 = vsub.f32 %v3736_v27, %v4205_v49 }
 0x241   :  { %v4173_v9 = vpop.xlane.xlu1 %1199  ;;  %v1168_v19 = vpop.xlane.xlu0 %1167 }
 0x242   :  { %v1136_v55 = vpop.xlane.xlu2 %1135  ;;  %6183 = vst [vmem:[#allocation52_spill] sm:$0xff] %v4198_v53  ;;  %v4228_v26 = vsub.f32 %v3770_v51, %v4214_v50  ;;  %v1380_v27 = vmul.f32 %v4220_v24, %v4220_v24 }
 0x243   :  { %6185 = vst [vmem:[#allocation54_spill] sm:$0xff] %v4220_v24 }
 0x244   :  { %6187 = vst [vmem:[#allocation56_spill] sm:$0xff] %v4228_v26 }
 0x246   :  { %1449 = vadd.xlane.f32.xlu0 %v1365_v41  ;;  %1481 = vadd.xlane.f32.xlu1 %v1381_v35  ;;  %v4207_v41 = vmul.f32 0.03125, %v1102_v59  ;;  %v1366_v35 = vmul.f32 %v4198_v53, %v4198_v53 }
 0x247   :  { %1447 = vadd.xlane.f32.xlu2 %v1364_v14  ;;  %v1349_v14 = vmul.f32 %v4202_v42, %v4202_v42  ;;  %v4232_v42 = vmul.f32 0.03125, %v1136_v55 }
 0x248   :  { %v4224_v33 = vsub.f32 %v3786_v6, %v4207_v41  ;;  %v4241_v6 = vmul.f32 0.03125, %v4111_v16 }
 0x249   :  { %v1170_v39 = vpop.xlane.xlu1 %1169  ;;  %v1138_v61 = vpop.xlane.xlu0 %1137  ;;  %v4247_v51 = vsub.f32 %v3826_v58, %v4232_v42 }
 0x24a   :  { %v1106_v34 = vpop.xlane.xlu2 %1105  ;;  %6186 = vst [vmem:[#allocation55_spill] sm:$0xff] %v4224_v33  ;;  %v4255_v55 = vsub.f32 %v3788_v7, %v4241_v6 }
 0x24b   :  { %6188 = vst [vmem:[#allocation57_spill] sm:$0xff] %v4247_v51  ;;  %v1368_v58 = vmul.f32 %v4247_v51, %v4247_v51 }
 0x24c   :  { %6190 = vst [vmem:[#allocation59_spill] sm:$0xff] %v4255_v55  ;;  %v1367_v7 = vmul.f32 %v4255_v55, %v4255_v55 }
 0x24e   :  { %1419 = vadd.xlane.f32.xlu0 %v1350_v54  ;;  %1451 = vadd.xlane.f32.xlu1 %v1366_v35  ;;  %v4234_v54 = vmul.f32 0.03125, %v1168_v19  ;;  %v1351_v35 = vmul.f32 %v4224_v33, %v4224_v33 }
 0x24f   :  { %1417 = vadd.xlane.f32.xlu2 %v1349_v14  ;;  %v1382_v14 = vmul.f32 %v4228_v26, %v4228_v26 }
 0x250   :  { %v4251_v19 = vsub.f32 %v3822_v43, %v4234_v54 }
 0x251   :  { %v1140_v59 = vpop.xlane.xlu1 %1139  ;;  %v1108_v12 = vpop.xlane.xlu0 %1107 }
 0x252   :  { %v4230_v53 = vpop.xlane.xlu2 %1201  ;;  %6189 = vst [vmem:[#allocation58_spill] sm:$0xff] %v4251_v19  ;;  %v1384_v43 = vmul.f32 %v4251_v19, %v4251_v19 }
 0x256   :  { %1479 = vadd.xlane.f32.xlu0 %v1380_v27  ;;  %1421 = vadd.xlane.f32.xlu1 %v1351_v35  ;;  %v4261_v27 = vmul.f32 0.03125, %v1106_v34  ;;  %v4263_v35 = vmul.f32 0.03125, %v1138_v61 }
 0x257   :  { %1483 = vadd.xlane.f32.xlu2 %v1382_v14  ;;  %v4270_v14 = vmul.f32 0.03125, %v4142_v52 }
 0x258   :  { %v4276_v34 = vsub.f32 %v3844_v4, %v4261_v27  ;;  %v4280_v61 = vsub.f32 %v3840_v57, %v4263_v35 }
 0x259   :  { %v1110_v16 = vpop.xlane.xlu1 %1109  ;;  %v4257_v24 = vpop.xlane.xlu0 %1203  ;;  %v4284_v51 = vsub.f32 %v3804_v22, %v4270_v14 }
 0x25a   :  { %v4259_v33 = vpop.xlane.xlu2 %1171  ;;  %6191 = vst [vmem:[#allocation60_spill] sm:$0xff] %v4276_v34  ;;  %v1353_v4 = vmul.f32 %v4276_v34, %v4276_v34  ;;  %v1369_v57 = vmul.f32 %v4280_v61, %v4280_v61 }
 0x25b   :  { %6192 = vst [vmem:[#allocation61_spill] sm:$0xff] %v4280_v61  ;;  %v1352_v22 = vmul.f32 %v4284_v51, %v4284_v51 }
 0x25c   :  { %6193 = vst [vmem:[#allocation62_spill] sm:$0xff] %v4284_v51 }
 0x25e   :  { %1455 = vadd.xlane.f32.xlu0 %v1368_v58  ;;  %1487 = vadd.xlane.f32.xlu1 %v1384_v43  ;;  %v4289_v58 = vmul.f32 0.03125, %v4150_v8  ;;  %v4291_v43 = vmul.f32 0.03125, %v1108_v12 }
 0x25f   :  { %1453 = vadd.xlane.f32.xlu2 %v1367_v7  ;;  %v4297_v7 = vmul.f32 0.03125, %v1170_v39 }
 0x260   :  { %v4303_v8 = vsub.f32 %v3808_v28, %v4289_v58  ;;  %v4307_v12 = vsub.f32 %v3858_v20, %v4291_v43 }
 0x261   :  { %v4286_v52 = vpop.xlane.xlu1 %1205  ;;  %v1174_v19 = vpop.xlane.xlu0 %1173  ;;  %v4311_v34 = vsub.f32 %v3842_v1, %v4297_v7 }
 0x262   :  { %v1142_v26 = vpop.xlane.xlu2 %1141  ;;  %6194 = vst [vmem:[#allocation63_spill] sm:$0xff] %v4303_v8  ;;  %v1354_v28 = vmul.f32 %v4307_v12, %v4307_v12 }
 0x263   :  { %6195 = vst [vmem:[#allocation64_spill] sm:$0xff] %v4307_v12  ;;  %v4313_v29 = vmul.f32 0.03125, %v1142_v26  ;;  %v1385_v20 = vmul.f32 %v4311_v34, %v4311_v34 }
 0x264   :  { %6196 = vst [vmem:[#allocation65_spill] sm:$0xff] %v4311_v34  ;;  %v4351_v34 = vmul.f32 0.03125, %v1110_v16 }
 0x265   :  { %6197 = vst [vmem:[#allocation66_spill] sm:$0xff] %v4313_v29  ;;  %v4327_v1 = vsub.f32 %v3898_v17, %v4313_v29  ;;  %v1538_v29 = vmul.f32 96.0, %v4098_v2 }
 0x266   :  { %1425 = vadd.xlane.f32.xlu0 %v1353_v4  ;;  %1457 = vadd.xlane.f32.xlu1 %v1369_v57  ;;  %v4315_v4 = vmul.f32 0.03125, %v1174_v19  ;;  %v1383_v57 = vmul.f32 %v4303_v8, %v4303_v8 }
 0x267   :  { %1423 = vadd.xlane.f32.xlu2 %v1352_v22  ;;  %v4321_v22 = vmul.f32 0.03125, %v1140_v59  ;;  %6198 = vst [vmem:[#allocation67_spill] sm:$0xff] %v4327_v1 }
 0x268   :  { %v4331_v26 = vsub.f32 %v3894_v13, %v4315_v4  ;;  %v1371_v13 = vmul.f32 %v4327_v1, %v4327_v1  ;;  %v4362_v1 = vmul.f32 0.03125, %v3983_v15 }
 0x269   :  { %v1176_v39 = vpop.xlane.xlu1 %1175  ;;  %v1144_v61 = vpop.xlane.xlu0 %1143  ;;  %v4335_v19 = vsub.f32 %v3860_v21, %v4321_v22 }
 0x26a   :  { %v1112_v55 = vpop.xlane.xlu2 %1111  ;;  %6199 = vst [vmem:[#allocation68_spill] sm:$0xff] %v4331_v26  ;;  %v4345_v17 = vmul.f32 0.03125, %v1144_v61  ;;  %v1387_v21 = vmul.f32 %v4331_v26, %v4331_v26  ;;  %v4359_v61 = vmul.f32 0.03125, %v3949_v23 }
 0x26b   :  { %6200 = vst [vmem:[#allocation69_spill] sm:$0xff] %v4335_v19  ;;  %v1370_v51 = vmul.f32 %v4335_v19, %v4335_v19 }
 0x26c   :  { %6203 = vst [vmem:[#allocation72_spill] sm:$0xff] %v4345_v17  ;;  %v4370_v26 = vsub.f32 %v3916_v47, %v4345_v17  ;;  %v6218_v17 = vld [vmem:[#allocation10_spill] sm:$0xff] }
 0x26d   :  { %6204 = vst [vmem:[#allocation73_spill] sm:$0xff] %v4359_v61 }
 0x26e   :  { %1485 = vadd.xlane.f32.xlu0 %v1383_v57  ;;  %1427 = vadd.xlane.f32.xlu1 %v1354_v28  ;;  %v1537_v57 = vmul.f32 96.0, %v4035_v37  ;;  %v1553_v28 = vmul.f32 96.0, %v4042_v46  ;;  %6205 = vst [vmem:[#allocation74_spill] sm:$0xff] %v4362_v1 }
 0x26f   :  { %1489 = vadd.xlane.f32.xlu2 %v1385_v20  ;;  %v4343_v20 = vmul.f32 0.03125, %v1112_v55  ;;  %v1265_v55 = vmul.f32 0.03125, %v3929_v30  ;;  %6207 = vst [vmem:[#allocation76_spill] sm:$0xff] %v4370_v26  ;;  %v6210_v30 = vld [vmem:[#allocation17_spill] sm:$0xff] }
 0x270   :  { %v4373_v19 = vmul.f32 %v1537_v57, %v4035_v37  ;;  %v4376_v23 = vmul.f32 %v1553_v28, %v4042_v46  ;;  %v6214_v37 = vld [vmem:[#allocation8_spill] sm:$0xff]  ;;  %v6216_v46 = vld [vmem:[#allocation9_spill] sm:$0xff] }
 0x271   :  { %v4337_v59 = vpop.xlane.xlu1 %1145  ;;  %v1114_v8 = vpop.xlane.xlu0 %1113  ;;  %6202 = vst [vmem:[#allocation71_spill] sm:$0xff] %v4343_v20  ;;  %v4366_v16 = vsub.f32 %v3920_v56, %v4343_v20  ;;  %v1554_v56 = vmul.f32 96.0, %v4063_v40  ;;  %v4394_v57 = vsub.f32 %v6214_v37, %v1265_v55  ;;  %v4398_v28 = vsub.f32 %v6216_v46, %v4359_v61 }
 0x272   :  { %v4339_v12 = vpop.xlane.xlu2 %1207  ;;  %6208 = vst [vmem:[#allocation77_spill] sm:$0xff] %v4373_v19  ;;  %v1539_v20 = vmul.f32 96.0, %v4089_v5  ;;  %v4411_v37 = vmul.f32 0.03125, %v4259_v33  ;;  %v4413_v46 = vmul.f32 0.03125, %v1114_v8  ;;  %v4419_v61 = vmul.f32 0.03125, %v1176_v39 }
 0x273   :  { %6201 = vst [vmem:[#allocation70_spill] sm:$0xff] %v4339_v12  ;;  %v1569_v12 = vmul.f32 96.0, %v4120_v38  ;;  %v1556_v19 = vmul.f32 96.0, %v4161_v18  ;;  %v4426_v33 = vmul.f32 0.03125, %v4021_v62  ;;  %v4436_v39 = vmul.f32 %v4394_v57, %v4394_v57 }
 0x274   :  { %6206 = vst [vmem:[#allocation75_spill] sm:$0xff] %v4366_v16  ;;  %v4446_v62 = vmul.f32 %v4398_v28, %v4398_v28 }
 0x275   :  { %6209 = vst [vmem:[#allocation78_spill] sm:$0xff] %v4376_v23  ;;  %v4391_v47 = vmul.f32 %v1569_v12, %v4120_v38  ;;  %v1570_v23 = vmul.f32 96.0, %v4066_v45  ;;  %v1571_v38 = vmul.f32 96.0, %v4130_v48  ;;  %v1585_v12 = vmul.f32 96.0, %v1265_v55 }
 0x276   :  { %1461 = vadd.xlane.f32.xlu0 %v1371_v13  ;;  %1493 = vadd.xlane.f32.xlu1 %v1387_v21  ;;  %v4380_v13 = vsub.f32 %v6210_v30, %v4351_v34  ;;  %v4388_v21 = vmul.f32 %v1538_v29, %v4098_v2  ;;  %6215 = vst [vmem:[#allocation8_spill] sm:$0xff] %v4394_v57  ;;  %v1555_v2 = vmul.f32 96.0, %v4091_v0  ;;  %v1572_v57 = vmul.f32 96.0, %v4205_v49 }
 0x277   :  { %1459 = vadd.xlane.f32.xlu2 %v1370_v51  ;;  %6213 = vst [vmem:[#allocation80_spill] sm:$0xff] %v4391_v47  ;;  %v4406_v29 = vsub.f32 %v6218_v17, %v4362_v1  ;;  %v1356_v47 = vmul.f32 %v4366_v16, %v4366_v16  ;;  %v1540_v1 = vmul.f32 96.0, %v4123_v3  ;;  %v4429_v8 = vmul.f32 %v1570_v23, %v4066_v45 }
 0x278   :  { %6211 = vst [vmem:[#allocation17_spill] sm:$0xff] %v4380_v13  ;;  %v1355_v17 = vmul.f32 %v4380_v13, %v4380_v13  ;;  %v4432_v16 = vmul.f32 %v1554_v56, %v4063_v40  ;;  %v4442_v13 = vmul.f32 %v1539_v20, %v4089_v5  ;;  %v6222_v40 = vld [vmem:[#allocation19_spill] sm:$0xff]  ;;  %v6224_v56 = vld [vmem:[#allocation22_spill] sm:$0xff]  ;;  %v4463_v5 = vmul.f32 %v1585_v12, %v1265_v55  ;;  %v6228_v20 = vld [vmem:[#allocation21_spill] sm:$0xff] }
 0x279   :  { %v4382_v15 = vpop.xlane.xlu1 %1115  ;;  %v4384_v51 = vpop.xlane.xlu0 %1209  ;;  %6212 = vst [vmem:[#allocation79_spill] sm:$0xff] %v4388_v21  ;;  %v1372_v21 = vmul.f32 %v4370_v26, %v4370_v26  ;;  %v4439_v26 = vmul.f32 0.03125, %v4053_v31  ;;  %v4450_v45 = vmul.f32 %v4406_v29, %v4406_v29  ;;  %v4454_v23 = vsub.f32 %v6222_v40, %v4411_v37 }
 0x27a   :  { %6217 = vst [vmem:[#allocation9_spill] sm:$0xff] %v4398_v28  ;;  %v4400_v30 = vpop.xlane.xlu2 %1177  ;;  %v4458_v31 = vsub.f32 %v6224_v56, %v4413_v46  ;;  %v4472_v28 = vmul.f32 %v1555_v2, %v4091_v0  ;;  %v4475_v40 = vmul.f32 %v1540_v1, %v4123_v3  ;;  %v4478_v56 = vmul.f32 %v1556_v19, %v4161_v18  ;;  %v6235_v0 = vld [vmem:[#allocation12_spill] sm:$0xff] }
 0x27b   :  { %6219 = vst [vmem:[#allocation10_spill] sm:$0xff] %v4406_v29  ;;  %v4491_v2 = vsub.f32 %v6235_v0, %v4439_v26  ;;  %v1573_v3 = vmul.f32 96.0, %v4154_v10  ;;  %v1557_v18 = vmul.f32 96.0, %v4152_v60  ;;  %v1558_v1 = vmul.f32 96.0, %v4181_v11 }
 0x27c   :  { %6220 = vst [vmem:[#allocation81_spill] sm:$0xff] %v4426_v33 }
 0x27d   :  { %6221 = vst [vmem:[#allocation82_spill] sm:$0xff] %v4439_v26  ;;  %v1542_v26 = vmul.f32 96.0, %v4179_v25 }
 0x27e   :  { %1431 = vadd.xlane.f32.xlu0 %v1356_v47  ;;  %1463 = vadd.xlane.f32.xlu1 %v1372_v21  ;;  %6223 = vst [vmem:[#allocation19_spill] sm:$0xff] %v4454_v23  ;;  %v4461_v21 = vmul.f32 %v1571_v38, %v4130_v48  ;;  %v4467_v47 = vsub.f32 %v6228_v20, %v4419_v61  ;;  %v6232_v48 = vld [vmem:[#allocation11_spill] sm:$0xff]  ;;  %v4485_v38 = vmul.f32 0.03125, %v4117_v44  ;;  %v1541_v20 = vmul.f32 96.0, %v4188_v36 }
 0x27f   :  { %1429 = vadd.xlane.f32.xlu2 %v1355_v17  ;;  %6225 = vst [vmem:[#allocation22_spill] sm:$0xff] %v4458_v31  ;;  %v4482_v55 = vsub.f32 %v6232_v48, %v4426_v33  ;;  %v1386_v44 = vmul.f32 %v4454_v23, %v4454_v23  ;;  %v1543_v23 = vmul.f32 96.0, %v4207_v41 }
 0x280   :  { %6226 = vst [vmem:[#allocation83_spill] sm:$0xff] %v4461_v21  ;;  %v1388_v0 = vmul.f32 %v4467_v47, %v4467_v47  ;;  %v4516_v21 = vmul.f32 0.03125, %v4144_v63  ;;  %v4534_v63 = vmul.f32 %v1572_v57, %v4205_v49 }
 0x281   :  { %6227 = vst [vmem:[#allocation84_spill] sm:$0xff] %v4463_v5  ;;  %v4469_v17 = vpop.xlane.xlu1 %1211  ;;  %v1180_v29 = vpop.xlane.xlu0 %1179  ;;  %v1357_v5 = vmul.f32 %v4458_v31, %v4458_v31  ;;  %v4524_v31 = vmul.f32 0.03125, %v4173_v9  ;;  %v4545_v9 = vmul.f32 %v1573_v3, %v4154_v10  ;;  %v6248_v10 = vld [vmem:[#allocation14_spill] sm:$0xff] }
 0x282   :  { %6229 = vst [vmem:[#allocation21_spill] sm:$0xff] %v4467_v47  ;;  %v1148_v12 = vpop.xlane.xlu2 %1147  ;;  %v4498_v48 = vmul.f32 0.03125, %v1180_v29  ;;  %v4528_v47 = vmul.f32 %v4491_v2, %v4491_v2  ;;  %v4565_v3 = vsub.f32 %v6248_v10, %v4516_v21 }
 0x283   :  { %6230 = vst [vmem:[#allocation85_spill] sm:$0xff] %v4475_v40  ;;  %v4496_v19 = vmul.f32 0.03125, %v1148_v12  ;;  %v1574_v40 = vmul.f32 96.0, %v4214_v50  ;;  %v6237_v12 = vld [vmem:[#allocation13_spill] sm:$0xff] }
 0x284   :  { %6231 = vst [vmem:[#allocation86_spill] sm:$0xff] %v4478_v56  ;;  %v4505_v56 = vmul.f32 0.03125, %v4337_v59  ;;  %v4513_v29 = vsub.f32 %v6237_v12, %v4485_v38  ;;  %v4520_v59 = vmul.f32 %v4482_v55, %v4482_v55  ;;  %v4531_v12 = vmul.f32 %v1541_v20, %v4188_v36  ;;  %v6246_v36 = vld [vmem:[#allocation23_spill] sm:$0xff] }
 0x285   :  { %6233 = vst [vmem:[#allocation11_spill] sm:$0xff] %v4482_v55  ;;  %v6244_v55 = vld [vmem:[#allocation28_spill] sm:$0xff] }
 0x286   :  { %6234 = vst [vmem:[#allocation87_spill] sm:$0xff] %v4485_v38  ;;  %1491 = vadd.xlane.f32.xlu0 %v1386_v44  ;;  %1433 = vadd.xlane.f32.xlu1 %v1357_v5  ;;  %v6242_v5 = vld [vmem:[#allocation30_spill] sm:$0xff]  ;;  %v4542_v38 = vsub.f32 %v6244_v55, %v4498_v48  ;;  %v4552_v20 = vsub.f32 %v6246_v36, %v4505_v56 }
 0x287   :  { %6236 = vst [vmem:[#allocation12_spill] sm:$0xff] %v4491_v2  ;;  %1495 = vadd.xlane.f32.xlu2 %v1388_v0  ;;  %v4538_v44 = vsub.f32 %v6242_v5, %v4496_v19  ;;  %v4548_v0 = vmul.f32 %v1557_v18, %v4152_v60  ;;  %v4555_v2 = vmul.f32 %v1558_v1, %v4181_v11  ;;  %v1559_v11 = vmul.f32 96.0, %v4241_v6 }
 0x288   :  { %6238 = vst [vmem:[#allocation13_spill] sm:$0xff] %v4513_v29  ;;  %v4558_v5 = vmul.f32 %v1542_v26, %v4179_v25  ;;  %v4561_v55 = vmul.f32 %v1574_v40, %v4214_v50  ;;  %v4569_v18 = vmul.f32 %v4513_v29, %v4513_v29  ;;  %v4572_v36 = vmul.f32 %v1543_v23, %v4207_v41  ;;  %v6251_v25 = vld [vmem:[#allocation15_spill] sm:$0xff] }
 0x289   :  { %6239 = vst [vmem:[#allocation88_spill] sm:$0xff] %v4516_v21  ;;  %v1182_v49 = vpop.xlane.xlu1 %1181  ;;  %v1150_v57 = vpop.xlane.xlu0 %1149  ;;  %v4577_v26 = vsub.f32 %v6251_v25, %v4524_v31  ;;  %v1576_v50 = vmul.f32 96.0, %v4234_v54  ;;  %v1544_v40 = vmul.f32 96.0, %v4270_v14  ;;  %v1575_v1 = vmul.f32 96.0, %v4289_v58 }
 0x28a   :  { %6240 = vst [vmem:[#allocation89_spill] sm:$0xff] %v4524_v31  ;;  %v1118_v60 = vpop.xlane.xlu2 %1117  ;;  %v4584_v21 = vmul.f32 0.03125, %v1150_v57  ;;  %v1374_v41 = vmul.f32 %v4538_v44, %v4538_v44  ;;  %v1390_v23 = vmul.f32 %v4542_v38, %v4542_v38  ;;  %v4591_v29 = vmul.f32 0.03125, %v4382_v15 }
 0x28b   :  { %6241 = vst [vmem:[#allocation90_spill] sm:$0xff] %v4534_v63  ;;  %v4582_v10 = vmul.f32 0.03125, %v1118_v60  ;;  %v1373_v25 = vmul.f32 %v4552_v20, %v4552_v20  ;;  %v1560_v31 = vmul.f32 96.0, %v4232_v42  ;;  %v1561_v63 = vmul.f32 96.0, %v4263_v35 }
 0x28c   :  { %6243 = vst [vmem:[#allocation30_spill] sm:$0xff] %v4538_v44  ;;  %v4598_v60 = vmul.f32 0.03125, %v4230_v53  ;;  %v4602_v57 = vmul.f32 %v4565_v3, %v4565_v3  ;;  %v4605_v44 = vmul.f32 %v1559_v11, %v4241_v6  ;;  %v1545_v15 = vmul.f32 96.0, %v4261_v27  ;;  %v6259_v6 = vld [vmem:[#allocation31_spill] sm:$0xff] }
 0x28d   :  { %6245 = vst [vmem:[#allocation28_spill] sm:$0xff] %v4542_v38  ;;  %v4609_v38 = vmul.f32 0.03125, %v4257_v24  ;;  %v1577_v53 = vmul.f32 96.0, %v4297_v7  ;;  %v4624_v11 = vsub.f32 %v6259_v6, %v4584_v21  ;;  %v4628_v24 = vmul.f32 %v4577_v26, %v4577_v26 }
 0x28e   :  { %6247 = vst [vmem:[#allocation23_spill] sm:$0xff] %v4552_v20  ;;  %1467 = vadd.xlane.f32.xlu0 %v1374_v41  ;;  %1499 = vadd.xlane.f32.xlu1 %v1390_v23  ;;  %v4612_v20 = vmul.f32 %v1544_v40, %v4270_v14  ;;  %v4616_v41 = vmul.f32 %v1575_v1, %v4289_v58  ;;  %v4634_v40 = vmul.f32 0.03125, %v4286_v52  ;;  %v6263_v58 = vld [vmem:[#allocation25_spill] sm:$0xff] }
 0x28f   :  { %6249 = vst [vmem:[#allocation14_spill] sm:$0xff] %v4565_v3  ;;  %1465 = vadd.xlane.f32.xlu2 %v1373_v25  ;;  %v4620_v23 = vsub.f32 %v4014_v32, %v4582_v10  ;;  %v4631_v14 = vmul.f32 %v1576_v50, %v4234_v54  ;;  %v4638_v1 = vsub.f32 %v6263_v58, %v4591_v29  ;;  %v1546_v50 = vmul.f32 96.0, %v4291_v43 }
 0x290   :  { %6250 = vst [vmem:[#allocation91_spill] sm:$0xff] %v4572_v36  ;;  %v4641_v3 = vmul.f32 %v1560_v31, %v4232_v42  ;;  %v4644_v6 = vmul.f32 %v1561_v63, %v4263_v35  ;;  %v4653_v52 = vmul.f32 %v1545_v15, %v4261_v27  ;;  %v1562_v58 = vmul.f32 96.0, %v4321_v22 }
 0x291   :  { %6252 = vst [vmem:[#allocation15_spill] sm:$0xff] %v4577_v26  ;;  %v1152_v32 = vpop.xlane.xlu1 %1151  ;;  %v1120_v25 = vpop.xlane.xlu0 %1119  ;;  %v6267_v26 = vld [vmem:[#allocation16_spill] sm:$0xff]  ;;  %v4662_v35 = vmul.f32 %v1577_v53, %v4297_v7  ;;  %v1547_v31 = vmul.f32 96.0, %v4351_v34  ;;  %v1578_v63 = vmul.f32 96.0, %v4411_v37  ;;  %v1359_v15 = vmul.f32 %v4620_v23, %v4620_v23 }
 0x292   :  { %6253 = vst [vmem:[#allocation92_spill] sm:$0xff] %v4598_v60  ;;  %v4650_v54 = vpop.xlane.xlu2 %1213  ;;  %v4669_v27 = vmul.f32 0.03125, %v1120_v25  ;;  %v4679_v7 = vmul.f32 0.03125, %v1182_v49  ;;  %v1358_v53 = vmul.f32 %v4638_v1, %v4638_v1 }
 0x293   :  { %6254 = vst [vmem:[#allocation93_spill] sm:$0xff] %v4605_v44 }
 0x294   :  { %6255 = vst [vmem:[#allocation94_spill] sm:$0xff] %v4609_v38 }
 0x295   :  { %6256 = vst [vmem:[#allocation95_spill] sm:$0xff] %v4612_v20  ;;  %v6270_v20 = vld [vmem:[#allocation18_spill] sm:$0xff] }
 0x296   :  { %6257 = vst [vmem:[#allocation96_spill] sm:$0xff] %v4616_v41  ;;  %v4648_v41 = vsub.f32 %v6267_v26, %v4598_v60  ;;  %v4659_v42 = vsub.f32 %v6270_v20, %v4609_v38  ;;  %v4667_v26 = vmul.f32 0.03125, %v4400_v30  ;;  %v1375_v60 = vmul.f32 %v4624_v11, %v4624_v11  ;;  %v6273_v20 = vld [vmem:[#allocation20_spill] sm:$0xff]  ;;  %1437 = vadd.xlane.f32.xlu0 %v1359_v15 }
 0x297   :  { %6258 = vst [vmem:[#allocation97_spill] sm:$0xff] %v4620_v23  ;;  %v4677_v38 = vsub.f32 %v6273_v20, %v4634_v40  ;;  %v1579_v30 = vmul.f32 96.0, %v4315_v4  ;;  %v4689_v23 = vmul.f32 %v1546_v50, %v4291_v43  ;;  %v6277_v20 = vld [vmem:[#allocation70_spill] sm:$0xff]  ;;  %1435 = vadd.xlane.f32.xlu2 %v1358_v53  ;;  %v4705_v15 = vmul.f32 %v1578_v63, %v4411_v37  ;;  %v6281_v43 = vld [vmem:[#allocation27_spill] sm:$0xff] }
 0x298   :  { %6260 = vst [vmem:[#allocation31_spill] sm:$0xff] %v4624_v11  ;;  %1469 = vadd.xlane.f32.xlu1 %v1375_v60  ;;  %v4686_v25 = vmul.f32 %v4648_v41, %v4648_v41  ;;  %v4692_v11 = vmul.f32 %v1562_v58, %v4321_v22  ;;  %v4695_v49 = vmul.f32 0.03125, %v6277_v20  ;;  %v4702_v60 = vmul.f32 %v1547_v31, %v4351_v34  ;;  %v6284_v58 = vld [vmem:[#allocation33_spill] sm:$0xff]  ;;  %v6286_v20 = vld [vmem:[#allocation66_spill] sm:$0xff]  ;;  %v6288_v34 = vld [vmem:[#allocation32_spill] sm:$0xff] }
 0x299   :  { %6261 = vst [vmem:[#allocation98_spill] sm:$0xff] %v4631_v14  ;;  %v4709_v50 = vsub.f32 %v6281_v43, %v4667_v26  ;;  %v4712_v22 = vmul.f32 0.03125, %v4384_v51  ;;  %v4716_v53 = vsub.f32 %v6284_v58, %v4669_v27  ;;  %v4724_v37 = vsub.f32 %v6288_v34, %v4679_v7  ;;  %v1410_v31 = vpop.xlane.xlu1 %1409  ;;  %v1216_v63 = vpop.xlane.xlu0 %1215  ;;  %v6291_v58 = vld [vmem:[#allocation77_spill] sm:$0xff]  ;;  %v6294_v34 = vld [vmem:[#allocation24_spill] sm:$0xff] }
 0x29a   :  { %6262 = vst [vmem:[#allocation99_spill] sm:$0xff] %v4634_v40  ;;  %v4699_v40 = vmul.f32 %v4659_v42, %v4659_v42  ;;  %v4728_v43 = vmul.f32 %v4677_v38, %v4677_v38  ;;  %v4731_v51 = vmul.f32 %v1579_v30, %v4315_v4  ;;  %v1565_v4 = vmul.f32 96.0, %v4505_v56  ;;  %v6297_v30 = vld [vmem:[#allocation26_spill] sm:$0xff] }
 0x29b   :  { %6264 = vst [vmem:[#allocation25_spill] sm:$0xff] %v4638_v1  ;;  %v1665_v1 = vsub.f32 %v1410_v31, %v6291_v58  ;;  %v4746_v31 = vsub.f32 %v6297_v30, %v4712_v22  ;;  %v1360_v14 = vmul.f32 %v4716_v53, %v4716_v53  ;;  %v1391_v44 = vmul.f32 %v4724_v37, %v4724_v37 }
 0x29c   :  { %6265 = vst [vmem:[#allocation100_spill] sm:$0xff] %v4641_v3 }
 0x29d   :  { %6266 = vst [vmem:[#allocation101_spill] sm:$0xff] %v4644_v6  ;;  %v6296_v6 = vld [vmem:[#allocation78_spill] sm:$0xff]  ;;  %v1729_v58 = vmul.f32 0.03125, %v1665_v1 }
 0x29e   :  { %6268 = vst [vmem:[#allocation16_spill] sm:$0xff] %v4648_v41  ;;  %v1563_v41 = vmul.f32 96.0, %v6286_v20 }
 0x29f   :  { %6269 = vst [vmem:[#allocation102_spill] sm:$0xff] %v4653_v52  ;;  %v4739_v52 = vsub.f32 %v6294_v34, %v4695_v49  ;;  %v6299_v34 = vld [vmem:[#allocation29_spill] sm:$0xff]  ;;  %v4760_v36 = vadd.f32 1e-05, %v1729_v58  ;;  %1501 = vadd.xlane.f32.xlu2 %v1391_v44  ;;  %v6302_v44 = vld [vmem:[#allocation34_spill] sm:$0xff] }
 0x2a0   :  { %6271 = vst [vmem:[#allocation18_spill] sm:$0xff] %v4659_v42  ;;  %v4720_v42 = vmul.f32 0.03125, %v4469_v17  ;;  %v6293_v17 = vld [vmem:[#allocation71_spill] sm:$0xff]  ;;  %1439 = vadd.xlane.f32.xlu1 %v1360_v14  ;;  %v4763_v1 = vmul.f32 %v1563_v41, %v6286_v20  ;;  %v6301_v58 = vld [vmem:[#allocation73_spill] sm:$0xff] }
 0x2a1   :  { %6272 = vst [vmem:[#allocation103_spill] sm:$0xff] %v4662_v35  ;;  %v1580_v35 = vmul.f32 96.0, %v4419_v61  ;;  %2943 = vrsqrt.f32 %v4760_v36  ;;  %v4781_v41 = vmul.f32 %v4739_v52, %v4739_v52  ;;  %v1476_v14 = vpop.xlane.xlu1 %1475  ;;  %vm1863_vm5 = vweird.f32 %v4760_v36 }
 0x2a2   :  { %6274 = vst [vmem:[#allocation20_spill] sm:$0xff] %v4677_v38  ;;  %v1549_v38 = vmul.f32 96.0, %v4413_v46 }
 0x2a3   :  { %6275 = vst [vmem:[#allocation104_spill] sm:$0xff] %v4689_v23  ;;  %v1548_v23 = vmul.f32 96.0, %v6293_v17 }
 0x2a4   :  { %6276 = vst [vmem:[#allocation105_spill] sm:$0xff] %v4692_v11 }
 0x2a5   :  { %6278 = vst [vmem:[#allocation70_spill] sm:$0xff] %v4695_v49  ;;  %v4754_v49 = vsub.f32 %v6299_v34, %v4720_v42 }
 0x2a6   :  { %6279 = vst [vmem:[#allocation106_spill] sm:$0xff] %v4702_v60  ;;  %v6292_v60 = vld [vmem:[#allocation72_spill] sm:$0xff] }
 0x2a7   :  { %6280 = vst [vmem:[#allocation107_spill] sm:$0xff] %v4705_v15  ;;  %v1442_v15 = vpop.xlane.xlu2 %1441  ;;  %v1564_v11 = vmul.f32 96.0, %v6292_v60  ;;  %v4800_v20 = vmul.f32 %v4754_v49, %v4754_v49 }
 0x2a8   :  { %6282 = vst [vmem:[#allocation27_spill] sm:$0xff] %v4709_v50  ;;  %v1681_v3 = vsub.f32 %v1442_v15, %v6296_v6  ;;  %v4756_v6 = vmul.f32 0.03125, %v1152_v32  ;;  %v1550_v32 = vmul.f32 96.0, %v4591_v29  ;;  %1505 = vadd.xlane.f32.xlu1 %v4436_v39 }
 0x2a9   :  { %6283 = vst [vmem:[#allocation108_spill] sm:$0xff] %v4712_v22  ;;  %v4766_v30 = vmul.f32 %v1564_v11, %v6292_v60  ;;  %v4769_v22 = vmul.f32 %v1548_v23, %v6293_v17  ;;  %v4784_v11 = vmul.f32 %v1549_v38, %v4413_v46  ;;  %v4787_v23 = vmul.f32 %v1565_v4, %v4505_v56 }
 0x2aa   :  { %6285 = vst [vmem:[#allocation33_spill] sm:$0xff] %v4716_v53  ;;  %v1745_v15 = vmul.f32 0.03125, %v1681_v3  ;;  %v4774_v3 = vmul.f32 %v1580_v35, %v4419_v61  ;;  %v4791_v61 = vsub.f32 %v6302_v44, %v4756_v6  ;;  %v1444_v35 = vpop.xlane.xlu0 %1443  ;;  %v4796_v60 = vmul.f32 %v4746_v31, %v4746_v31 }
 0x2ab   :  { %6287 = vst [vmem:[#allocation66_spill] sm:$0xff] %v4720_v42  ;;  %v4803_v46 = vmul.f32 0.03125, %v4650_v54  ;;  %v1698_v38 = vsub.f32 %v1476_v14, %v4429_v8  ;;  %v1682_v17 = vsub.f32 %v1444_v35, %v4432_v16  ;;  %v1582_v4 = vmul.f32 96.0, %v4498_v48  ;;  %v6309_v16 = vld [vmem:[#allocation41_spill] sm:$0xff] }
 0x2ac   :  { %6289 = vst [vmem:[#allocation32_spill] sm:$0xff] %v4724_v37  ;;  %v4771_v34 = vadd.f32 1e-05, %v1745_v15  ;;  %v1566_v44 = vmul.f32 96.0, %v4496_v19  ;;  %v1581_v42 = vmul.f32 96.0, %v4667_v26  ;;  %v4819_v14 = vmul.f32 0.03125, %v1216_v63 }
 0x2ad   :  { %6290 = vst [vmem:[#allocation109_spill] sm:$0xff] %v4731_v51  ;;  %v1389_v51 = vmul.f32 %v4709_v50, %v4709_v50  ;;  %v1746_v54 = vmul.f32 0.03125, %v1682_v17  ;;  %v6307_v50 = vld [vmem:[#allocation74_spill] sm:$0xff]  ;;  %v4840_v63 = vmul.f32 %v1582_v4, %v4498_v48 }
 0x2ae   :  { %6295 = vst [vmem:[#allocation77_spill] sm:$0xff] %v4739_v52  ;;  %2945 = vrsqrt.f32 %v4771_v34  ;;  %v4812_v52 = vmul.f32 %v1550_v32, %v4591_v29  ;;  %v1587_v8 = vmul.f32 96.0, %v6307_v50  ;;  %v1567_v29 = vmul.f32 96.0, %v4584_v21  ;;  %v4828_v32 = vpop.eup %2943 }
 0x2af   :  { %6298 = vst [vmem:[#allocation72_spill] sm:$0xff] %v4746_v31  ;;  %1497 = vadd.xlane.f32.xlu0 %v1389_v51  ;;  %v1586_v51 = vmul.f32 96.0, %v6301_v58  ;;  %v1184_v56 = vpop.xlane.xlu2 %1183  ;;  %v1762_v31 = vmul.f32 0.03125, %v1698_v38  ;;  %v4836_v17 = vadd.f32 1e-05, %v1746_v54  ;;  %v4856_v48 = vmul.f32 %v1581_v42, %v4667_v26 }
 0x2b0   :  { %6300 = vst [vmem:[#allocation71_spill] sm:$0xff] %v4754_v49  ;;  %v4808_v15 = vmul.f32 0.03125, %v1184_v56  ;;  %v1376_v56 = vmul.f32 %v4791_v61, %v4791_v61  ;;  %v4859_v4 = vmul.f32 %v1587_v8, %v6307_v50  ;;  %vm1864_vm0 = vweird.f32 %v4828_v32  ;;  %1511 = vadd.xlane.f32.xlu1 %v4520_v59 }
 0x2b1   :  { %6303 = vst [vmem:[#allocation24_spill] sm:$0xff] %v4791_v61  ;;  %v4815_v49 = vmul.f32 %v1586_v51, %v6301_v58  ;;  %v6311_v58 = vld [vmem:[#allocation35_spill] sm:$0xff]  ;;  %v4834_v38 = vadd.f32 1e-05, %v1762_v31  ;;  %v1858_v61 = vmul.f32 %v4828_v32, %v4760_v36  ;;  %v1551_v31 = vmul.f32 96.0, %v4582_v10  ;;  %vm1865_vm7 = vmor %vm1863_vm5, %vm1864_vm0 }
 0x2b2   :  { %6304 = vst [vmem:[#allocation78_spill] sm:$0xff] %v4803_v46  ;;  %v4823_v35 = vsub.f32 %v6309_v16, %v4808_v15  ;;  %v4832_v51 = vsub.f32 %v6311_v58, %v4803_v46  ;;  %1471 = vadd.xlane.f32.xlu2 %v1376_v56  ;;  %v4849_v58 = vmul.f32 %v1566_v44, %v4496_v19  ;;  %v6314_v56 = vld [vmem:[#allocation38_spill] sm:$0xff]  ;;  %v1446_v19 = vpop.xlane.xlu1 %1445  ;;  %v1414_v44 = vpop.xlane.xlu0 %1413  ;;  %v4910_v36 = vld [vmem:[%s6005_s3] ss:$0 sm:$0xff]  ;;  %vm2023_vm8 = vweird.f32 %v4771_v34 }
 0x2b3   :  { %6305 = vst [vmem:[#allocation26_spill] sm:$0xff] %v4808_v15  ;;  %2947 = vrsqrt.f32 %v4834_v38  ;;  %v1859_v54 = vmul.f32 %v4828_v32, %v1858_v61  ;;  %v4864_v46 = vsub.f32 %v6314_v56, %v4819_v14  ;;  %v1683_v50 = vsub.f32 %v1446_v19, %v4472_v28 }
 0x2b4   :  { %6306 = vst [vmem:[#allocation29_spill] sm:$0xff] %v4815_v49  ;;  %v4842_v16 = vpop.eup %2945  ;;  %v1392_v53 = vmul.f32 %v4823_v35, %v4823_v35  ;;  %2949 = vrsqrt.f32 %v4836_v17  ;;  %v1667_v8 = vsub.f32 %v1414_v44, %v4442_v13  ;;  %v4875_v61 = vmul.f32 %v4832_v51, %v4832_v51 }
 0x2b5   :  { %6308 = vst [vmem:[#allocation73_spill] sm:$0xff] %v4819_v14  ;;  %v2018_v39 = vmul.f32 %v4842_v16, %v4771_v34  ;;  %v1860_v56 = vmul.f32 0.5, %v1859_v54  ;;  %v6316_v14 = vld [vmem:[#allocation79_spill] sm:$0xff]  ;;  %v1747_v37 = vmul.f32 0.03125, %v1683_v50  ;;  %v4883_v49 = vmul.f32 96.0, %v4426_v33 }
 0x2b6   :  { %6310 = vst [vmem:[#allocation34_spill] sm:$0xff] %v4823_v35  ;;  %v4868_v35 = vmul.f32 %v1567_v29, %v4584_v21  ;;  %v1583_v21 = vmul.f32 96.0, %v4679_v7  ;;  %v4888_v54 = vmul.f32 %v4864_v46, %v4864_v46  ;;  %vm2024_vm6 = vweird.f32 %v4842_v16  ;;  %v4931_v34 = vld [vmem:[%s6006_s4] ss:$0 sm:$0xff] }
 0x2b7   :  { %6312 = vst [vmem:[#allocation74_spill] sm:$0xff] %v4832_v51  ;;  %1503 = vadd.xlane.f32.xlu0 %v1392_v53  ;;  %v2019_v42 = vmul.f32 %v4842_v16, %v2018_v39  ;;  %v1412_v26 = vpop.xlane.xlu2 %1411  ;;  %v4879_v53 = vmul.f32 %v1551_v31, %v4582_v10  ;;  %v1731_v39 = vmul.f32 0.03125, %v1667_v8  ;;  %v1861_v28 = vsub.f32 1.5, %v1860_v56  ;;  %vm2025_vm9 = vmor %vm2023_vm8, %vm2024_vm6  ;;  %v6320_v51 = vld [vmem:[#allocation83_spill] sm:$0xff] }
 0x2b8   :  { %6313 = vst [vmem:[#allocation41_spill] sm:$0xff] %v4859_v4  ;;  %v1666_v4 = vsub.f32 %v1412_v26, %v6316_v14  ;;  %v4894_v31 = vadd.f32 1e-05, %v1747_v37  ;;  %v4926_v56 = vmul.f32 %v1583_v21, %v4679_v7  ;;  %vm2193_vm10 = vweird.f32 %v4834_v38  ;;  %1517 = vadd.xlane.f32.xlu1 %v4602_v57 }
 0x2b9   :  { %6315 = vst [vmem:[#allocation35_spill] sm:$0xff] %v4864_v46  ;;  %v2020_v29 = vmul.f32 0.5, %v2019_v42  ;;  %v4890_v14 = vpop.eup %2947  ;;  %v1862_v44 = vmul.f32 %v4828_v32, %v1861_v28  ;;  %v4904_v26 = vadd.f32 1e-05, %v1731_v39  ;;  %vm2033_vm13 = vweird.f32 %v4836_v17 }
 0x2ba   :  { %6317 = vst [vmem:[#allocation38_spill] sm:$0xff] %v4883_v49  ;;  %v1730_v13 = vmul.f32 0.03125, %v1666_v4  ;;  %v4897_v19 = vpop.eup %2949  ;;  %v2188_v4 = vmul.f32 %v4890_v14, %v4834_v38  ;;  %1507 = vadd.xlane.f32.xlu2 %v4446_v62  ;;  %2951 = vrsqrt.f32 %v4894_v31  ;;  %v1416_v8 = vpop.xlane.xlu1 %1415  ;;  %vm2194_vm11 = vweird.f32 %v4890_v14 }
 0x2bb   :  { %v2021_v10 = vsub.f32 1.5, %v2020_v29  ;;  %v2028_v37 = vmul.f32 %v4897_v19, %v4836_v17  ;;  %v1866_v50 = vsel %vm1865_vm7, %v4828_v32, %v1862_v44  ;;  %v6318_v29 = vld [vmem:[#allocation36_spill] sm:$0xff]  ;;  %vm2034_vm12 = vweird.f32 %v4897_v19  ;;  %vm2195_vm14 = vmor %vm2193_vm10, %vm2194_vm11 }
 0x2bc   :  { %v4902_v42 = vadd.f32 1e-05, %v1730_v13  ;;  %v2189_v62 = vmul.f32 %v4890_v14, %v2188_v4  ;;  %v2497_v32 = vmul.f32 %v1866_v50, %v6318_v29  ;;  %v6321_v29 = vld [vmem:[#allocation85_spill] sm:$0xff]  ;;  %vm2035_vm1 = vmor %vm2033_vm13, %vm2034_vm12  ;;  %vm2043_vm2 = vweird.f32 %v4894_v31 }
 0x2bd   :  { %v2022_v59 = vmul.f32 %v4842_v16, %v2021_v10  ;;  %v2029_v28 = vmul.f32 %v4897_v19, %v2028_v37  ;;  %v1474_v10 = vpop.xlane.xlu0 %1473  ;;  %v6322_v37 = vld [vmem:[#allocation80_spill] sm:$0xff]  ;;  %vm1883_vm7 = vweird.f32 %v4904_v26 }
 0x2be   :  { %2953 = vrsqrt.f32 %v4902_v42  ;;  %v2190_v4 = vmul.f32 0.5, %v2189_v62  ;;  %v2565_v7 = vmul.f32 %v4910_v36, %v2497_v32  ;;  %v1697_v49 = vsub.f32 %v1474_v10, %v6322_v37 }
 0x2bf   :  { %1509 = vadd.xlane.f32.xlu0 %v4450_v45  ;;  %v2026_v39 = vsel %vm2025_vm9, %v4842_v16, %v2022_v59  ;;  %v1478_v13 = vpop.xlane.xlu2 %1477  ;;  %v6319_v45 = vld [vmem:[#allocation37_spill] sm:$0xff]  ;;  %2955 = vrsqrt.f32 %v4904_v26  ;;  %v2030_v21 = vmul.f32 0.5, %v2029_v28  ;;  %v1668_v16 = vsub.f32 %v1416_v8, %v6321_v29 }
 0x2c0   :  { %v2513_v44 = vmul.f32 %v2026_v39, %v6319_v45  ;;  %v1699_v50 = vsub.f32 %v1478_v13, %v6320_v51  ;;  %v2191_v46 = vsub.f32 1.5, %v2190_v4  ;;  %v4946_v39 = vpop.eup %2951  ;;  %v2633_v62 = vadd.f32 %v4931_v34, %v2565_v7  ;;  %v6323_v4 = vld [vmem:[#allocation40_spill] sm:$0xff]  ;;  %1523 = vadd.xlane.f32.xlu1 %v4699_v40 }
 0x2c1   :  { %v2031_v45 = vsub.f32 1.5, %v2030_v21  ;;  %v1732_v15 = vmul.f32 0.03125, %v1668_v16  ;;  %v2038_v28 = vmul.f32 %v4946_v39, %v4894_v31  ;;  %vm1873_vm15 = vweird.f32 %v4902_v42  ;;  %v6324_v16 = vld [vmem:[#allocation39_spill] sm:$0xff] }
 0x2c2   :  { %v2581_v59 = vmul.f32 %v4910_v36, %v2513_v44  ;;  %v1763_v33 = vmul.f32 0.03125, %v1699_v50  ;;  %v2192_v8 = vmul.f32 %v4890_v14, %v2191_v46  ;;  %1513 = vadd.xlane.f32.xlu2 %v4528_v47  ;;  %2697 = vst [vmem:[#allocation5] sm:$0xff] %v2633_v62  ;;  %v1761_v44 = vmul.f32 0.03125, %v1697_v49  ;;  %v1482_v29 = vpop.xlane.xlu1 %1481 }
 0x2c3   :  { %v2032_v57 = vmul.f32 %v4897_v19, %v2031_v45  ;;  %v2039_v38 = vmul.f32 %v4946_v39, %v2038_v28  ;;  %v4974_v10 = vadd.f32 1e-05, %v1732_v15  ;;  %vm2044_vm3 = vweird.f32 %v4946_v39 }
 0x2c4   :  { %v4950_v32 = vpop.eup %2953  ;;  %v2649_v51 = vadd.f32 %v4931_v34, %v2581_v59  ;;  %v4966_v46 = vadd.f32 1e-05, %v1763_v33  ;;  %v2196_v47 = vsel %vm2195_vm14, %v4890_v14, %v2192_v8  ;;  %v4992_v28 = vadd.f32 1e-05, %v1761_v44  ;;  %vm2045_vm0 = vmor %vm2043_vm2, %vm2044_vm3 }
 0x2c5   :  { %v1868_v13 = vmul.f32 %v4950_v32, %v4902_v42  ;;  %v4968_v17 = vpop.eup %2955  ;;  %v2530_v7 = vmul.f32 %v2196_v47, %v6323_v4  ;;  %v2036_v33 = vsel %vm2035_vm1, %v4897_v19, %v2032_v57  ;;  %v2040_v37 = vmul.f32 0.5, %v2039_v38  ;;  %v6325_v47 = vld [vmem:[#allocation86_spill] sm:$0xff] }
 0x2c6   :  { %2713 = vst [vmem:[#allocation5 + $0x80] sm:$0xff] %v2649_v51  ;;  %v1878_v50 = vmul.f32 %v4968_v17, %v4904_v26  ;;  %v2514_v59 = vmul.f32 %v2036_v33, %v6324_v16  ;;  %2957 = vrsqrt.f32 %v4966_v46  ;;  %vm1874_vm4 = vweird.f32 %v4950_v32 }
 0x2c7   :  { %1515 = vadd.xlane.f32.xlu0 %v4569_v18  ;;  %v1869_v21 = vmul.f32 %v4950_v32, %v1868_v13  ;;  %v1448_v14 = vpop.xlane.xlu2 %1447  ;;  %v2598_v18 = vmul.f32 %v4910_v36, %v2530_v7  ;;  %v2041_v62 = vsub.f32 1.5, %v2040_v37  ;;  %2959 = vrsqrt.f32 %v4974_v10  ;;  %v1450_v7 = vpop.xlane.xlu0 %1449  ;;  %vm1875_vm6 = vmor %vm1873_vm15, %vm1874_vm4  ;;  %v6327_v37 = vld [vmem:[#allocation44_spill] sm:$0xff] }
 0x2c8   :  { %v1879_v15 = vmul.f32 %v4968_v17, %v1878_v50  ;;  %v2582_v19 = vmul.f32 %v4910_v36, %v2514_v59  ;;  %v1684_v38 = vsub.f32 %v1448_v14, %v6325_v47  ;;  %v1701_v4 = vsub.f32 %v1482_v29, %v4545_v9  ;;  %v6326_v50 = vld [vmem:[#allocation43_spill] sm:$0xff]  ;;  %1529 = vadd.xlane.f32.xlu1 %v4796_v60 }
 0x2c9   :  { %v1870_v49 = vmul.f32 0.5, %v1869_v21  ;;  %v2666_v45 = vadd.f32 %v4931_v34, %v2598_v18  ;;  %v2042_v13 = vmul.f32 %v4946_v39, %v2041_v62  ;;  %vm1884_vm5 = vweird.f32 %v4968_v17 }
 0x2ca   :  { %v1880_v8 = vmul.f32 0.5, %v1879_v15  ;;  %v2650_v57 = vadd.f32 %v4931_v34, %v2582_v19  ;;  %1519 = vadd.xlane.f32.xlu2 %v4628_v24  ;;  %2961 = vrsqrt.f32 %v4992_v28  ;;  %v1748_v24 = vmul.f32 0.03125, %v1684_v38  ;;  %vm1885_vm8 = vmor %vm1883_vm7, %vm1884_vm5  ;;  %v1452_v19 = vpop.xlane.xlu1 %1451 }
 0x2cb   :  { %v1871_v51 = vsub.f32 1.5, %v1870_v49  ;;  %2730 = vst [vmem:[#allocation5 + $0x108] sm:$0xff] %v2666_v45  ;;  %v2046_v9 = vsel %vm2045_vm0, %v4946_v39, %v2042_v13  ;;  %v1765_v31 = vmul.f32 0.03125, %v1701_v4  ;;  %vm2203_vm9 = vweird.f32 %v4966_v46  ;;  %v6328_v45 = vld [vmem:[#allocation42_spill] sm:$0xff] }
 0x2cc   :  { %v1881_v40 = vsub.f32 1.5, %v1880_v8  ;;  %v5007_v44 = vpop.eup %2957  ;;  %2714 = vst [vmem:[#allocation5 + $0x88] sm:$0xff] %v2650_v57  ;;  %v2515_v14 = vmul.f32 %v2046_v9, %v6326_v50  ;;  %v1685_v8 = vsub.f32 %v1450_v7, %v4548_v0  ;;  %vm1893_vm10 = vweird.f32 %v4974_v10 }
 0x2cd   :  { %v1872_v33 = vmul.f32 %v4950_v32, %v1871_v51  ;;  %v2198_v16 = vmul.f32 %v5007_v44, %v4966_v46  ;;  %v5021_v42 = vpop.eup %2959  ;;  %v5029_v26 = vadd.f32 1e-05, %v1765_v31  ;;  %vm2183_vm11 = vweird.f32 %v4992_v28 }
 0x2ce   :  { %v1882_v29 = vmul.f32 %v4968_v17, %v1881_v40  ;;  %v1888_v15 = vmul.f32 %v5021_v42, %v4974_v10  ;;  %vm2204_vm12 = vweird.f32 %v5007_v44  ;;  %v1749_v9 = vmul.f32 0.03125, %v1685_v8 }
 0x2cf   :  { %1521 = vadd.xlane.f32.xlu0 %v4686_v25  ;;  %v1876_v21 = vsel %vm1875_vm6, %v4950_v32, %v1872_v33  ;;  %v1418_v59 = vpop.xlane.xlu2 %1417  ;;  %v5027_v25 = vadd.f32 1e-05, %v1748_v24  ;;  %v2583_v32 = vmul.f32 %v4910_v36, %v2515_v14  ;;  %v2199_v49 = vmul.f32 %v5007_v44, %v2198_v16  ;;  %v1420_v31 = vpop.xlane.xlu0 %1419  ;;  %vm2205_vm14 = vmor %vm2203_vm9, %vm2204_vm12 }
 0x2d0   :  { %v2498_v39 = vmul.f32 %v1876_v21, %v6327_v37  ;;  %v1886_v18 = vsel %vm1885_vm8, %v4968_v17, %v1882_v29  ;;  %v5040_v57 = vpop.eup %2961  ;;  %v1889_v17 = vmul.f32 %v5021_v42, %v1888_v15  ;;  %v1669_v24 = vsub.f32 %v1418_v59, %v4531_v12  ;;  %1535 = vadd.xlane.f32.xlu1 %v4888_v54 }
 0x2d1   :  { %v2499_v51 = vmul.f32 %v1886_v18, %v6328_v45  ;;  %2963 = vrsqrt.f32 %v5027_v25  ;;  %v2651_v13 = vadd.f32 %v4931_v34, %v2583_v32  ;;  %v2200_v47 = vmul.f32 0.5, %v2199_v49  ;;  %v6329_v32 = vld [vmem:[#allocation47_spill] sm:$0xff] }
 0x2d2   :  { %v2566_v62 = vmul.f32 %v4910_v36, %v2498_v39  ;;  %v2178_v33 = vmul.f32 %v5040_v57, %v4992_v28  ;;  %1525 = vadd.xlane.f32.xlu2 %v4728_v43  ;;  %v1890_v7 = vmul.f32 0.5, %v1889_v17  ;;  %2965 = vrsqrt.f32 %v5029_v26  ;;  %v1422_v45 = vpop.xlane.xlu1 %1421  ;;  %v6331_v28 = vld [vmem:[#allocation45_spill] sm:$0xff] }
 0x2d3   :  { %v2567_v4 = vmul.f32 %v4910_v36, %v2499_v51  ;;  %2715 = vst [vmem:[#allocation5 + $0x90] sm:$0xff] %v2651_v13  ;;  %v2201_v0 = vsub.f32 1.5, %v2200_v47  ;;  %vm1894_vm13 = vweird.f32 %v5021_v42  ;;  %v1686_v50 = vsub.f32 %v1452_v19, %v4555_v2  ;;  %v6330_v51 = vld [vmem:[#allocation46_spill] sm:$0xff] }
 0x2d4   :  { %v2634_v38 = vadd.f32 %v4931_v34, %v2566_v62  ;;  %v2179_v40 = vmul.f32 %v5040_v57, %v2178_v33  ;;  %v1891_v21 = vsub.f32 1.5, %v1890_v7  ;;  %vm2184_vm15 = vweird.f32 %v5040_v57  ;;  %vm1895_vm1 = vmor %vm1893_vm10, %vm1894_vm13 }
 0x2d5   :  { %v2635_v60 = vadd.f32 %v4931_v34, %v2567_v4  ;;  %v2202_v43 = vmul.f32 %v5007_v44, %v2201_v0  ;;  %v1733_v16 = vmul.f32 0.03125, %v1669_v24  ;;  %v1670_v39 = vsub.f32 %v1420_v31, %v4558_v5  ;;  %vm2185_vm2 = vmor %vm2183_vm11, %vm2184_vm15 }
 0x2d6   :  { %2698 = vst [vmem:[#allocation5 + $0x8] sm:$0xff] %v2634_v38  ;;  %v2180_v12 = vmul.f32 0.5, %v2179_v40  ;;  %v1892_v37 = vmul.f32 %v5021_v42, %v1891_v21  ;;  %v1750_v5 = vmul.f32 0.03125, %v1686_v50  ;;  %v5102_v54 = vmul.f32 96.0, %v4669_v27 }
 0x2d7   :  { %1527 = vadd.xlane.f32.xlu0 %v4781_v41  ;;  %v1484_v14 = vpop.xlane.xlu2 %1483  ;;  %v5061_v29 = vpop.eup %2963  ;;  %2699 = vst [vmem:[#allocation5 + $0x10] sm:$0xff] %v2635_v60  ;;  %v5068_v41 = vadd.f32 1e-05, %v1749_v9  ;;  %v2206_v59 = vsel %vm2205_vm14, %v5007_v44, %v2202_v43  ;;  %v5086_v62 = vadd.f32 1e-05, %v1733_v16  ;;  %v1734_v7 = vmul.f32 0.03125, %v1670_v39 }
 0x2d8   :  { %v2048_v2 = vmul.f32 %v5061_v29, %v5027_v25  ;;  %v2531_v18 = vmul.f32 %v2206_v59, %v6329_v32  ;;  %v2181_v46 = vsub.f32 1.5, %v2180_v12  ;;  %v1702_v49 = vsub.f32 %v1484_v14, %v4561_v55  ;;  %v5082_v44 = vpop.eup %2965  ;;  %v6333_v39 = vld [vmem:[#allocation50_spill] sm:$0xff] }
 0x2d9   :  { %2967 = vrsqrt.f32 %v5068_v41  ;;  %v1896_v15 = vsel %vm1895_vm1, %v5021_v42, %v1892_v37  ;;  %v2218_v55 = vmul.f32 %v5082_v44, %v5029_v26  ;;  %vm2054_vm3 = vweird.f32 %v5061_v29 }
 0x2da   :  { %v2049_v19 = vmul.f32 %v5061_v29, %v2048_v2  ;;  %v2599_v10 = vmul.f32 %v4910_v36, %v2531_v18  ;;  %v2500_v8 = vmul.f32 %v1896_v15, %v6330_v51  ;;  %v2182_v13 = vmul.f32 %v5040_v57, %v2181_v46  ;;  %1531 = vadd.xlane.f32.xlu2 %v4800_v20  ;;  %v1480_v2 = vpop.xlane.xlu0 %1479  ;;  %v1488_v15 = vpop.xlane.xlu1 %1487 }
 0x2db   :  { %2969 = vrsqrt.f32 %v5086_v62  ;;  %v2219_v20 = vmul.f32 %v5082_v44, %v2218_v55  ;;  %v5110_v0 = vadd.f32 1e-05, %v1750_v5  ;;  %vm2053_vm4 = vweird.f32 %v5027_v25  ;;  %v6332_v25 = vld [vmem:[#allocation91_spill] sm:$0xff] }
 0x2dc   :  { %v2050_v42 = vmul.f32 0.5, %v2049_v19  ;;  %v2667_v47 = vadd.f32 %v4931_v34, %v2599_v10  ;;  %v2568_v17 = vmul.f32 %v4910_v36, %v2500_v8  ;;  %v2186_v38 = vsel %vm2185_vm2, %v5040_v57, %v2182_v13  ;;  %vm2055_vm5 = vmor %vm2053_vm4, %vm2054_vm3  ;;  %v6335_v13 = vld [vmem:[#allocation90_spill] sm:$0xff] }
 0x2dd   :  { %v2529_v4 = vmul.f32 %v2186_v38, %v6331_v28  ;;  %v2220_v9 = vmul.f32 0.5, %v2219_v20  ;;  %v1766_v24 = vmul.f32 0.03125, %v1702_v49  ;;  %vm2224_vm0 = vweird.f32 %v5082_v44  ;;  %v6336_v38 = vld [vmem:[#allocation93_spill] sm:$0xff]  ;;  %v6337_v28 = vld [vmem:[#allocation98_spill] sm:$0xff] }
 0x2de   :  { %v2051_v33 = vsub.f32 1.5, %v2050_v42  ;;  %2731 = vst [vmem:[#allocation5 + $0x110] sm:$0xff] %v2667_v47  ;;  %v2636_v40 = vadd.f32 %v4931_v34, %v2568_v17  ;;  %2971 = vrsqrt.f32 %v5110_v0  ;;  %v5124_v21 = vadd.f32 1e-05, %v1734_v7 }
 0x2df   :  { %1533 = vadd.xlane.f32.xlu0 %v4875_v61  ;;  %v5112_v60 = vpop.eup %2967  ;;  %v2597_v57 = vmul.f32 %v4910_v36, %v2529_v4  ;;  %v2221_v43 = vsub.f32 1.5, %v2220_v9  ;;  %v1671_v50 = vsub.f32 %v1422_v45, %v6332_v25  ;;  %v5132_v37 = vadd.f32 1e-05, %v1766_v24  ;;  %v6334_v45 = vld [vmem:[#allocation49_spill] sm:$0xff] }
 0x2e0   :  { %v2052_v31 = vmul.f32 %v5061_v29, %v2051_v33  ;;  %v2058_v61 = vmul.f32 %v5112_v60, %v5068_v41  ;;  %2700 = vst [vmem:[#allocation5 + $0x18] sm:$0xff] %v2636_v40  ;;  %vm2223_vm6 = vweird.f32 %v5029_v26  ;;  %vm2063_vm8 = vweird.f32 %v5068_v41 }
 0x2e1   :  { %v5127_v14 = vpop.eup %2969  ;;  %v2665_v12 = vadd.f32 %v4931_v34, %v2597_v57  ;;  %v2222_v18 = vmul.f32 %v5082_v44, %v2221_v43  ;;  %vm2225_vm7 = vmor %vm2223_vm6, %vm2224_vm0  ;;  %vm2064_vm9 = vweird.f32 %v5112_v60  ;;  %2973 = vrsqrt.f32 %v5124_v21 }
 0x2e2   :  { %v2056_v16 = vsel %vm2055_vm5, %v5061_v29, %v2052_v31  ;;  %v2059_v59 = vmul.f32 %v5112_v60, %v2058_v61  ;;  %v1898_v46 = vmul.f32 %v5127_v14, %v5086_v62  ;;  %v1454_v29 = vpop.xlane.xlu2 %1453  ;;  %2975 = vrsqrt.f32 %v5132_v37  ;;  %vm2065_vm11 = vmor %vm2063_vm8, %vm2064_vm9 }
 0x2e3   :  { %v2516_v32 = vmul.f32 %v2056_v16, %v6333_v39  ;;  %2729 = vst [vmem:[#allocation5 + $0x100] sm:$0xff] %v2665_v12  ;;  %v2226_v26 = vsel %vm2225_vm7, %v5082_v44, %v2222_v18  ;;  %v1735_v8 = vmul.f32 0.03125, %v1671_v50  ;;  %v1700_v55 = vsub.f32 %v1480_v2, %v6335_v13  ;;  %v6338_v12 = vld [vmem:[#allocation48_spill] sm:$0xff] }
 0x2e4   :  { %v2060_v49 = vmul.f32 0.5, %v2059_v59  ;;  %v1899_v5 = vmul.f32 %v5127_v14, %v1898_v46  ;;  %v2533_v10 = vmul.f32 %v2226_v26, %v6334_v45  ;;  %v2972_v42 = vpop.eup %2971  ;;  %v1687_v20 = vsub.f32 %v1454_v29, %v6336_v38  ;;  %v6339_v29 = vld [vmem:[#allocation53_spill] sm:$0xff] }
 0x2e5   :  { %v2584_v19 = vmul.f32 %v4910_v36, %v2516_v32  ;;  %v1704_v4 = vsub.f32 %v1488_v15, %v6337_v28  ;;  %vm1903_vm10 = vweird.f32 %v5086_v62  ;;  %v2068_v7 = vmul.f32 %v2972_v42, %v5110_v0  ;;  %v1456_v32 = vpop.xlane.xlu0 %1455 }
 0x2e6   :  { %v2061_v51 = vsub.f32 1.5, %v2060_v49  ;;  %v1900_v17 = vmul.f32 0.5, %v1899_v5  ;;  %v2601_v44 = vmul.f32 %v4910_v36, %v2533_v10  ;;  %vm1904_vm12 = vweird.f32 %v5127_v14 }
 0x2e7   :  { %v2652_v47 = vadd.f32 %v4931_v34, %v2584_v19  ;;  %v5162_v9 = vadd.f32 1e-05, %v1735_v8  ;;  %v1764_v24 = vmul.f32 0.03125, %v1700_v55  ;;  %v5164_v57 = vpop.eup %2973  ;;  %v2069_v43 = vmul.f32 %v2972_v42, %v2068_v7  ;;  %vm1905_vm13 = vmor %vm1903_vm10, %vm1904_vm12 }
 0x2e8   :  { %v2062_v33 = vmul.f32 %v5112_v60, %v2061_v51  ;;  %v1901_v40 = vsub.f32 1.5, %v1900_v17  ;;  %v2669_v31 = vadd.f32 %v4931_v34, %v2601_v44  ;;  %v1751_v25 = vmul.f32 0.03125, %v1687_v20  ;;  %v5168_v50 = vpop.eup %2975 }
 0x2e9   :  { %2716 = vst [vmem:[#allocation5 + $0x98] sm:$0xff] %v2652_v47  ;;  %v1908_v59 = vmul.f32 %v5164_v57, %v5124_v21  ;;  %v1768_v2 = vmul.f32 0.03125, %v1704_v4  ;;  %v2070_v39 = vmul.f32 0.5, %v2069_v43  ;;  %vm2073_vm14 = vweird.f32 %v5110_v0  ;;  %v6340_v4 = vld [vmem:[#allocation52_spill] sm:$0xff] }
 0x2ea   :  { %v2066_v61 = vsel %vm2065_vm11, %v5112_v60, %v2062_v33  ;;  %v1902_v41 = vmul.f32 %v5127_v14, %v1901_v40  ;;  %2733 = vst [vmem:[#allocation5 + $0x120] sm:$0xff] %v2669_v31  ;;  %v2228_v60 = vmul.f32 %v5168_v50, %v5132_v37  ;;  %2977 = vrsqrt.f32 %v5162_v9  ;;  %v1424_v47 = vpop.xlane.xlu2 %1423  ;;  %v6341_v40 = vld [vmem:[#allocation100_spill] sm:$0xff] }
 0x2eb   :  { %v2517_v16 = vmul.f32 %v2066_v61, %v6338_v12  ;;  %vm2074_vm15 = vweird.f32 %v2972_v42  ;;  %v1909_v49 = vmul.f32 %v5164_v57, %v1908_v59  ;;  %v2071_v62 = vsub.f32 1.5, %v2070_v39  ;;  %v1458_v61 = vpop.xlane.xlu1 %1457 }
 0x2ec   :  { %v1906_v46 = vsel %vm1905_vm13, %v5127_v14, %v1902_v41  ;;  %v2229_v19 = vmul.f32 %v5168_v50, %v2228_v60  ;;  %v5185_v26 = vadd.f32 1e-05, %v1764_v24  ;;  %v5188_v10 = vadd.f32 1e-05, %v1751_v25  ;;  %vm2075_vm1 = vmor %vm2073_vm14, %vm2074_vm15  ;;  %v6342_v24 = vld [vmem:[#allocation95_spill] sm:$0xff]  ;;  %v6344_v60 = vld [vmem:[#allocation56_spill] sm:$0xff] }
 0x2ed   :  { %v2585_v18 = vmul.f32 %v4910_v36, %v2517_v16  ;;  %v2501_v15 = vmul.f32 %v1906_v46, %v6339_v29  ;;  %v1910_v45 = vmul.f32 0.5, %v1909_v49  ;;  %v5190_v51 = vadd.f32 1e-05, %v1768_v2  ;;  %v6343_v16 = vld [vmem:[#allocation51_spill] sm:$0xff]  ;;  %v1426_v2 = vpop.xlane.xlu0 %1425 }
 0x2ee   :  { %v2072_v14 = vmul.f32 %v2972_v42, %v2071_v62  ;;  %v2230_v13 = vmul.f32 0.5, %v2229_v19  ;;  %2979 = vrsqrt.f32 %v5185_v26  ;;  %vm1914_vm2 = vweird.f32 %v5164_v57  ;;  %v6345_v62 = vld [vmem:[#allocation101_spill] sm:$0xff] }
 0x2ef   :  { %v2653_v5 = vadd.f32 %v4931_v34, %v2585_v18  ;;  %v2569_v8 = vmul.f32 %v4910_v36, %v2501_v15  ;;  %v1911_v55 = vsub.f32 1.5, %v1910_v45  ;;  %vm2234_vm3 = vweird.f32 %v5168_v50 }
 0x2f0   :  { %2981 = vrsqrt.f32 %v5188_v10  ;;  %v5200_v17 = vpop.eup %2977  ;;  %v2076_v20 = vsel %vm2075_vm1, %v2972_v42, %v2072_v14  ;;  %v2231_v28 = vsub.f32 1.5, %v2230_v13  ;;  %vm1913_vm4 = vweird.f32 %v5124_v21 }
 0x2f1   :  { %2717 = vst [vmem:[#allocation5 + $0xa0] sm:$0xff] %v2653_v5  ;;  %v2637_v38 = vadd.f32 %v4931_v34, %v2569_v8  ;;  %2983 = vrsqrt.f32 %v5190_v51  ;;  %v2518_v44 = vmul.f32 %v2076_v20, %v6340_v4  ;;  %v1912_v0 = vmul.f32 %v5164_v57, %v1911_v55  ;;  %vm1915_vm0 = vmor %vm1913_vm4, %vm1914_vm2 }
 0x2f2   :  { %v1918_v33 = vmul.f32 %v5200_v17, %v5162_v9  ;;  %v2232_v7 = vmul.f32 %v5168_v50, %v2231_v28  ;;  %vm2233_vm5 = vweird.f32 %v5132_v37  ;;  %v1688_v42 = vsub.f32 %v1456_v32, %v6341_v40 }
 0x2f3   :  { %2701 = vst [vmem:[#allocation5 + $0x20] sm:$0xff] %v2637_v38  ;;  %v1672_v31 = vsub.f32 %v1424_v47, %v6342_v24  ;;  %v2586_v43 = vmul.f32 %v4910_v36, %v2518_v44  ;;  %v1916_v25 = vsel %vm1915_vm0, %v5164_v57, %v1912_v0  ;;  %vm2235_vm6 = vmor %vm2233_vm5, %vm2234_vm3  ;;  %vm1923_vm7 = vweird.f32 %v5162_v9  ;;  %v1490_v24 = vpop.xlane.xlu2 %1489  ;;  %v1428_v9 = vpop.xlane.xlu1 %1427 }
 0x2f4   :  { %v1919_v21 = vmul.f32 %v5200_v17, %v1918_v33  ;;  %v5219_v12 = vpop.eup %2979  ;;  %v2502_v37 = vmul.f32 %v1916_v25, %v6343_v16  ;;  %v2236_v41 = vsel %vm2235_vm6, %v5168_v50, %v2232_v7  ;;  %vm1924_vm8 = vweird.f32 %v5200_v17 }
 0x2f5   :  { %v1752_v59 = vmul.f32 0.03125, %v1688_v42  ;;  %v2654_v57 = vadd.f32 %v4931_v34, %v2586_v43  ;;  %v2534_v32 = vmul.f32 %v2236_v41, %v6344_v60  ;;  %v2208_v46 = vmul.f32 %v5219_v12, %v5185_v26  ;;  %vm1925_vm11 = vmor %vm1923_vm7, %vm1924_vm8 }
 0x2f6   :  { %v5224_v39 = vpop.eup %2981  ;;  %v1920_v18 = vmul.f32 0.5, %v1919_v21  ;;  %vm2213_vm9 = vweird.f32 %v5185_v26  ;;  %v2570_v50 = vmul.f32 %v4910_v36, %v2502_v37  ;;  %v1736_v15 = vmul.f32 0.03125, %v1672_v31  ;;  %v6346_v31 = vld [vmem:[#allocation55_spill] sm:$0xff]  ;;  %v6347_v37 = vld [vmem:[#allocation102_spill] sm:$0xff] }
 0x2f7   :  { %v5231_v49 = vpop.eup %2983  ;;  %v2078_v29 = vmul.f32 %v5224_v39, %v5188_v10  ;;  %v1689_v19 = vsub.f32 %v1458_v61, %v6345_v62  ;;  %2718 = vst [vmem:[#allocation5 + $0xa8] sm:$0xff] %v2654_v57  ;;  %v2602_v5 = vmul.f32 %v4910_v36, %v2534_v32  ;;  %v2209_v8 = vmul.f32 %v5219_v12, %v2208_v46  ;;  %v6348_v57 = vld [vmem:[#allocation103_spill] sm:$0xff]  ;;  %v1486_v32 = vpop.xlane.xlu0 %1485 }
 0x2f8   :  { %v1921_v45 = vsub.f32 1.5, %v1920_v18  ;;  %v2248_v14 = vmul.f32 %v5231_v49, %v5190_v51  ;;  %v2638_v13 = vadd.f32 %v4931_v34, %v2570_v50  ;;  %vm2214_vm10 = vweird.f32 %v5219_v12  ;;  %v6349_v50 = vld [vmem:[#allocation54_spill] sm:$0xff] }
 0x2f9   :  { %v2079_v55 = vmul.f32 %v5224_v39, %v2078_v29  ;;  %v5244_v47 = vadd.f32 1e-05, %v1752_v59  ;;  %v2670_v38 = vadd.f32 %v4931_v34, %v2602_v5  ;;  %v2210_v28 = vmul.f32 0.5, %v2209_v8  ;;  %vm2215_vm14 = vmor %vm2213_vm9, %vm2214_vm10 }
 0x2fa   :  { %v1922_v20 = vmul.f32 %v5200_v17, %v1921_v45  ;;  %v2249_v4 = vmul.f32 %v5231_v49, %v2248_v14  ;;  %2702 = vst [vmem:[#allocation5 + $0x28] sm:$0xff] %v2638_v13  ;;  %vm2084_vm12 = vweird.f32 %v5224_v39  ;;  %v5255_v0 = vadd.f32 1e-05, %v1736_v15  ;;  %v6350_v15 = vld [vmem:[#allocation59_spill] sm:$0xff]  ;;  %v6352_v13 = vld [vmem:[#allocation58_spill] sm:$0xff] }
 0x2fb   :  { %v2080_v44 = vmul.f32 0.5, %v2079_v55  ;;  %2985 = vrsqrt.f32 %v5244_v47  ;;  %2734 = vst [vmem:[#allocation5 + $0x128] sm:$0xff] %v2670_v38  ;;  %v2211_v7 = vsub.f32 1.5, %v2210_v28  ;;  %v1753_v42 = vmul.f32 0.03125, %v1689_v19 }
 0x2fc   :  { %v1926_v33 = vsel %vm1925_vm11, %v5200_v17, %v1922_v20  ;;  %v2250_v40 = vmul.f32 0.5, %v2249_v4  ;;  %vm2254_vm13 = vweird.f32 %v5231_v49  ;;  %2987 = vrsqrt.f32 %v5255_v0 }
 0x2fd   :  { %v2503_v61 = vmul.f32 %v1926_v33, %v6346_v31  ;;  %v2081_v43 = vsub.f32 1.5, %v2080_v44  ;;  %v2212_v25 = vmul.f32 %v5219_v12, %v2211_v7  ;;  %v5262_v16 = vadd.f32 1e-05, %v1753_v42 }
 0x2fe   :  { %v2251_v21 = vsub.f32 1.5, %v2250_v40  ;;  %v1673_v41 = vsub.f32 %v1426_v2, %v6347_v37  ;;  %vm2083_vm15 = vweird.f32 %v5188_v10  ;;  %v1705_v60 = vsub.f32 %v1490_v24, %v6348_v57  ;;  %v6353_v57 = vld [vmem:[#allocation96_spill] sm:$0xff] }
 0x2ff   :  { %v2571_v17 = vmul.f32 %v4910_v36, %v2503_v61  ;;  %v2082_v59 = vmul.f32 %v5224_v39, %v2081_v43  ;;  %v2216_v18 = vsel %vm2215_vm14, %v5219_v12, %v2212_v25  ;;  %vm2085_vm1 = vmor %vm2083_vm15, %vm2084_vm12  ;;  %vm2253_vm2 = vweird.f32 %v5190_v51  ;;  %v6351_v51 = vld [vmem:[#allocation104_spill] sm:$0xff]  ;;  %v1460_v61 = vpop.xlane.xlu2 %1459 }
 0x300   :  { %v2252_v2 = vmul.f32 %v5231_v49, %v2251_v21  ;;  %2989 = vrsqrt.f32 %v5262_v16  ;;  %v2532_v29 = vmul.f32 %v2216_v18, %v6349_v50  ;;  %vm2255_vm3 = vmor %vm2253_vm2, %vm2254_vm13  ;;  %v1737_v12 = vmul.f32 0.03125, %v1673_v41  ;;  %v1494_v21 = vpop.xlane.xlu1 %1493  ;;  %v1462_v18 = vpop.xlane.xlu0 %1461  ;;  %v6354_v50 = vld [vmem:[#allocation105_spill] sm:$0xff] }
 0x301   :  { %v2986_v26 = vpop.eup %2985  ;;  %v2639_v46 = vadd.f32 %v4931_v34, %v2571_v17  ;;  %v2086_v10 = vsel %vm2085_vm1, %v5224_v39, %v2082_v59  ;;  %v1674_v45 = vsub.f32 %v1428_v9, %v6351_v51  ;;  %v1769_v38 = vmul.f32 0.03125, %v1705_v60 }
 0x302   :  { %v2519_v62 = vmul.f32 %v2086_v10, %v6350_v15  ;;  %v2256_v19 = vsel %vm2255_vm3, %v5231_v49, %v2252_v2  ;;  %v2088_v5 = vmul.f32 %v2986_v26, %v5244_v47  ;;  %v5288_v8 = vpop.eup %2987  ;;  %v2600_v14 = vmul.f32 %v4910_v36, %v2532_v29  ;;  %v6355_v10 = vld [vmem:[#allocation109_spill] sm:$0xff] }
 0x303   :  { %2703 = vst [vmem:[#allocation5 + $0x30] sm:$0xff] %v2639_v46  ;;  %v2536_v55 = vmul.f32 %v2256_v19, %v6352_v13  ;;  %v5292_v39 = vadd.f32 1e-05, %v1737_v12  ;;  %v1928_v49 = vmul.f32 %v5288_v8, %v5255_v0  ;;  %v5298_v4 = vmul.f32 96.0, %v4756_v6 }
 0x304   :  { %v2587_v20 = vmul.f32 %v4910_v36, %v2519_v62  ;;  %v2089_v28 = vmul.f32 %v2986_v26, %v2088_v5  ;;  %v2668_v44 = vadd.f32 %v4931_v34, %v2600_v14  ;;  %vm2093_vm4 = vweird.f32 %v5244_v47  ;;  %v6356_v14 = vld [vmem:[#allocation57_spill] sm:$0xff] }
 0x305   :  { %v2604_v33 = vmul.f32 %v4910_v36, %v2536_v55  ;;  %2991 = vrsqrt.f32 %v5292_v39  ;;  %v1929_v24 = vmul.f32 %v5288_v8, %v1928_v49  ;;  %v5308_v31 = vadd.f32 1e-05, %v1769_v38 }
 0x306   :  { %v5304_v7 = vpop.eup %2989  ;;  %v2655_v40 = vadd.f32 %v4931_v34, %v2587_v20  ;;  %v2090_v42 = vmul.f32 0.5, %v2089_v28  ;;  %2732 = vst [vmem:[#allocation5 + $0x118] sm:$0xff] %v2668_v44  ;;  %vm1933_vm0 = vweird.f32 %v5255_v0  ;;  %v1738_v25 = vmul.f32 0.03125, %v1674_v45  ;;  %v6357_v44 = vld [vmem:[#allocation62_spill] sm:$0xff] }
 0x307   :  { %v2672_v43 = vadd.f32 %v4931_v34, %v2604_v33  ;;  %v2098_v9 = vmul.f32 %v5304_v7, %v5262_v16  ;;  %vm2094_vm5 = vweird.f32 %v2986_v26  ;;  %v1930_v41 = vmul.f32 0.5, %v1929_v24  ;;  %v1430_v24 = vpop.xlane.xlu2 %1429 }
 0x308   :  { %2719 = vst [vmem:[#allocation5 + $0xb0] sm:$0xff] %v2655_v40  ;;  %v2091_v37 = vsub.f32 1.5, %v2090_v42  ;;  %2993 = vrsqrt.f32 %v5308_v31  ;;  %vm1934_vm6 = vweird.f32 %v5288_v8  ;;  %v5317_v59 = vadd.f32 1e-05, %v1738_v25  ;;  %vm2095_vm7 = vmor %vm2093_vm4, %vm2094_vm5 }
 0x309   :  { %2736 = vst [vmem:[#allocation5 + $0x138] sm:$0xff] %v2672_v43  ;;  %v2099_v17 = vmul.f32 %v5304_v7, %v2098_v9  ;;  %v1703_v60 = vsub.f32 %v1486_v32, %v6353_v57  ;;  %v1931_v46 = vsub.f32 1.5, %v1930_v41  ;;  %v1690_v29 = vsub.f32 %v1460_v61, %v6354_v50  ;;  %vm1935_vm9 = vmor %vm1933_vm0, %vm1934_vm6 }
 0x30a   :  { %v2092_v2 = vmul.f32 %v2986_v26, %v2091_v37  ;;  %v1707_v12 = vsub.f32 %v1494_v21, %v6355_v10  ;;  %vm2103_vm8 = vweird.f32 %v5262_v16  ;;  %2995 = vrsqrt.f32 %v5317_v59  ;;  %v6358_v37 = vld [vmem:[#allocation61_spill] sm:$0xff] }
 0x30b   :  { %v2992_v15 = vpop.eup %2991  ;;  %v2100_v62 = vmul.f32 0.5, %v2099_v17  ;;  %v1767_v19 = vmul.f32 0.03125, %v1703_v60  ;;  %v1932_v32 = vmul.f32 %v5288_v8, %v1931_v46  ;;  %v1691_v45 = vsub.f32 %v1462_v18, %v4763_v1 }
 0x30c   :  { %v2096_v5 = vsel %vm2095_vm7, %v2986_v26, %v2092_v2  ;;  %v1938_v51 = vmul.f32 %v2992_v15, %v5292_v39  ;;  %vm2104_vm10 = vweird.f32 %v5304_v7  ;;  %v1754_v28 = vmul.f32 0.03125, %v1690_v29 }
 0x30d   :  { %v2520_v13 = vmul.f32 %v2096_v5, %v6356_v14  ;;  %v2101_v47 = vsub.f32 1.5, %v2100_v62  ;;  %v5335_v55 = vadd.f32 1e-05, %v1767_v19  ;;  %v1936_v26 = vsel %vm1935_vm9, %v5288_v8, %v1932_v32  ;;  %vm2105_vm11 = vmor %vm2103_vm8, %vm2104_vm10  ;;  %v1464_v32 = vpop.xlane.xlu1 %1463 }
 0x30e   :  { %v2994_v38 = vpop.eup %2993  ;;  %v1939_v20 = vmul.f32 %v2992_v15, %v1938_v51  ;;  %v1771_v49 = vmul.f32 0.03125, %v1707_v12  ;;  %v2504_v33 = vmul.f32 %v1936_v26, %v6357_v44  ;;  %vm1943_vm12 = vweird.f32 %v5292_v39  ;;  %v6359_v51 = vld [vmem:[#allocation60_spill] sm:$0xff]  ;;  %v6361_v44 = vld [vmem:[#allocation65_spill] sm:$0xff] }
 0x30f   :  { %v2588_v1 = vmul.f32 %v4910_v36, %v2520_v13  ;;  %v2102_v40 = vmul.f32 %v5304_v7, %v2101_v47  ;;  %v2258_v0 = vmul.f32 %v2994_v38, %v5308_v31  ;;  %2997 = vrsqrt.f32 %v5335_v55  ;;  %v5375_v13 = vpop.xlane.xlu0 %1431 }
 0x310   :  { %v1940_v42 = vmul.f32 0.5, %v1939_v20  ;;  %v1755_v8 = vmul.f32 0.03125, %v1691_v45  ;;  %v5346_v61 = vpop.eup %2995  ;;  %v2572_v9 = vmul.f32 %v4910_v36, %v2504_v33  ;;  %vm1944_vm13 = vweird.f32 %v2992_v15 }
 0x311   :  { %v2656_v43 = vadd.f32 %v4931_v34, %v2588_v1  ;;  %v2106_v25 = vsel %vm2105_vm11, %v5304_v7, %v2102_v40  ;;  %v2259_v21 = vmul.f32 %v2994_v38, %v2258_v0  ;;  %v1948_v17 = vmul.f32 %v5346_v61, %v5317_v59  ;;  %vm1945_vm14 = vmor %vm1943_vm12, %vm1944_vm13  ;;  %v1496_v0 = vpop.xlane.xlu2 %1495 }
 0x312   :  { %v2521_v41 = vmul.f32 %v2106_v25, %v6358_v37  ;;  %v1941_v16 = vsub.f32 1.5, %v1940_v42  ;;  %v2640_v57 = vadd.f32 %v4931_v34, %v2572_v9  ;;  %v5355_v18 = vadd.f32 1e-05, %v1754_v28 }
 0x313   :  { %2720 = vst [vmem:[#allocation5 + $0xb8] sm:$0xff] %v2656_v43  ;;  %v2260_v60 = vmul.f32 0.5, %v2259_v21  ;;  %v5357_v2 = vadd.f32 1e-05, %v1771_v49  ;;  %v1949_v7 = vmul.f32 %v5346_v61, %v1948_v17  ;;  %v5361_v29 = vadd.f32 1e-05, %v1755_v8 }
 0x314   :  { %v2589_v46 = vmul.f32 %v4910_v36, %v2521_v41  ;;  %v1942_v50 = vmul.f32 %v2992_v15, %v1941_v16  ;;  %2704 = vst [vmem:[#allocation5 + $0x38] sm:$0xff] %v2640_v57  ;;  %vm2263_vm15 = vweird.f32 %v5308_v31  ;;  %vm2264_vm1 = vweird.f32 %v2994_v38 }
 0x315   :  { %v2261_v10 = vsub.f32 1.5, %v2260_v60  ;;  %2999 = vrsqrt.f32 %v5355_v18  ;;  %v5367_v12 = vpop.eup %2997  ;;  %v1950_v5 = vmul.f32 0.5, %v1949_v7  ;;  %vm1953_vm2 = vweird.f32 %v5317_v59  ;;  %vm2265_vm3 = vmor %vm2263_vm15, %vm2264_vm1  ;;  %v6362_v59 = vld [vmem:[#allocation64_spill] sm:$0xff] }
 0x316   :  { %v2657_v62 = vadd.f32 %v4931_v34, %v2589_v46  ;;  %v1946_v19 = vsel %vm1945_vm14, %v2992_v15, %v1942_v50  ;;  %3001 = vrsqrt.f32 %v5357_v2  ;;  %v2238_v39 = vmul.f32 %v5367_v12, %v5335_v55  ;;  %v6360_v15 = vld [vmem:[#allocation106_spill] sm:$0xff] }
 0x317   :  { %v2505_v45 = vmul.f32 %v1946_v19, %v6359_v51  ;;  %v2262_v14 = vmul.f32 %v2994_v38, %v2261_v10  ;;  %v1951_v47 = vsub.f32 1.5, %v1950_v5  ;;  %vm1954_vm4 = vweird.f32 %v5346_v61  ;;  %v5435_v19 = vld [vmem:[%s6006_s4] ss:$0 sm:$0xff] }
 0x318   :  { %2721 = vst [vmem:[#allocation5 + $0xc0] sm:$0xff] %v2657_v62  ;;  %3003 = vrsqrt.f32 %v5361_v29  ;;  %v1675_v26 = vsub.f32 %v1430_v24, %v6360_v15  ;;  %v2239_v49 = vmul.f32 %v5367_v12, %v2238_v39  ;;  %v1692_v1 = vsub.f32 %v1464_v32, %v4766_v30  ;;  %vm1955_vm5 = vmor %vm1953_vm2, %vm1954_vm4  ;;  %v1434_v62 = vpop.xlane.xlu1 %1433 }
 0x319   :  { %v2573_v20 = vmul.f32 %v4910_v36, %v2505_v45  ;;  %v2266_v28 = vsel %vm2265_vm3, %v2994_v38, %v2262_v14  ;;  %v1952_v40 = vmul.f32 %v5346_v61, %v1951_v47  ;;  %vm2243_vm0 = vweird.f32 %v5335_v55  ;;  %v1492_v45 = vpop.xlane.xlu0 %1491  ;;  %v6363_v14 = vld [vmem:[#allocation63_spill] sm:$0xff] }
 0x31a   :  { %v2537_v33 = vmul.f32 %v2266_v28, %v6361_v44  ;;  %v1739_v31 = vmul.f32 0.03125, %v1675_v26  ;;  %v2240_v38 = vmul.f32 0.5, %v2239_v49  ;;  %vm2244_vm6 = vweird.f32 %v5367_v12 }
 0x31b   :  { %v5388_v42 = vpop.eup %2999  ;;  %v2641_v8 = vadd.f32 %v4931_v34, %v2573_v20  ;;  %v1756_v24 = vmul.f32 0.03125, %v1692_v1  ;;  %v1956_v9 = vsel %vm1955_vm5, %v5346_v61, %v1952_v40  ;;  %vm2113_vm7 = vweird.f32 %v5355_v18  ;;  %vm2245_vm8 = vmor %vm2243_vm0, %vm2244_vm6  ;;  %v6364_v1 = vld [vmem:[#allocation107_spill] sm:$0xff] }
 0x31c   :  { %v5394_v30 = vpop.eup %3001  ;;  %v2605_v43 = vmul.f32 %v4910_v36, %v2537_v33  ;;  %v2108_v25 = vmul.f32 %v5388_v42, %v5355_v18  ;;  %v1676_v21 = vsub.f32 %v5375_v13, %v4769_v22  ;;  %v2506_v37 = vmul.f32 %v1956_v9, %v6362_v59  ;;  %v5418_v22 = vld [vmem:[%s6005_s3] ss:$0 sm:$0xff] }
 0x31d   :  { %2705 = vst [vmem:[#allocation5 + $0x40] sm:$0xff] %v2641_v8  ;;  %v2241_v41 = vsub.f32 1.5, %v2240_v38  ;;  %v2278_v16 = vmul.f32 %v5394_v30, %v5357_v2  ;;  %v1708_v17 = vsub.f32 %v1496_v0, %v4774_v3  ;;  %v5411_v60 = vadd.f32 1e-05, %v1739_v31  ;;  %v6365_v38 = vld [vmem:[#allocation69_spill] sm:$0xff] }
 0x31e   :  { %v5407_v36 = vpop.eup %3003  ;;  %v2673_v61 = vadd.f32 %v4931_v34, %v2605_v43  ;;  %v2109_v57 = vmul.f32 %v5388_v42, %v2108_v25  ;;  %v5413_v46 = vadd.f32 1e-05, %v1756_v24  ;;  %v2574_v50 = vmul.f32 %v5418_v22, %v2506_v37 }
 0x31f   :  { %v2242_v7 = vmul.f32 %v5367_v12, %v2241_v41  ;;  %v2279_v3 = vmul.f32 %v5394_v30, %v2278_v16  ;;  %v2118_v34 = vmul.f32 %v5407_v36, %v5361_v29  ;;  %vm2114_vm9 = vweird.f32 %v5388_v42 }
 0x320   :  { %2737 = vst [vmem:[#allocation5 + $0x140] sm:$0xff] %v2673_v61  ;;  %v2110_v10 = vmul.f32 0.5, %v2109_v57  ;;  %vm2283_vm10 = vweird.f32 %v5357_v2  ;;  %3005 = vrsqrt.f32 %v5411_v60  ;;  %v2642_v5 = vadd.f32 %v5435_v19, %v2574_v50  ;;  %vm2115_vm12 = vmor %vm2113_vm7, %vm2114_vm9  ;;  %v6367_v61 = vld [vmem:[#allocation67_spill] sm:$0xff]  ;;  %v1466_v50 = vpop.xlane.xlu2 %1465 }
 0x321   :  { %v2246_v32 = vsel %vm2245_vm8, %v5367_v12, %v2242_v7  ;;  %v2280_v51 = vmul.f32 0.5, %v2279_v3  ;;  %v2119_v55 = vmul.f32 %v5407_v36, %v2118_v34  ;;  %vm2284_vm11 = vweird.f32 %v5394_v30  ;;  %v1500_v7 = vpop.xlane.xlu1 %1499 }
 0x322   :  { %v2535_v39 = vmul.f32 %v2246_v32, %v6363_v14  ;;  %v2111_v13 = vsub.f32 1.5, %v2110_v10  ;;  %3007 = vrsqrt.f32 %v5413_v46  ;;  %2706 = vst [vmem:[#allocation5 + $0x48] sm:$0xff] %v2642_v5  ;;  %v1740_v26 = vmul.f32 0.03125, %v1676_v21  ;;  %vm2285_vm14 = vmor %vm2283_vm10, %vm2284_vm11  ;;  %v1468_v14 = vpop.xlane.xlu0 %1467 }
 0x323   :  { %v2281_v47 = vsub.f32 1.5, %v2280_v51  ;;  %v2120_v15 = vmul.f32 0.5, %v2119_v55  ;;  %v1772_v20 = vmul.f32 0.03125, %v1708_v17  ;;  %v1677_v49 = vsub.f32 %v1434_v62, %v4784_v11 }
 0x324   :  { %v2603_v28 = vmul.f32 %v5418_v22, %v2535_v39  ;;  %v2112_v12 = vmul.f32 %v5388_v42, %v2111_v13  ;;  %v1706_v44 = vsub.f32 %v1492_v45, %v6364_v1  ;;  %vm2124_vm13 = vweird.f32 %v5407_v36 }
 0x325   :  { %v2282_v33 = vmul.f32 %v5394_v30, %v2281_v47  ;;  %v2121_v40 = vsub.f32 1.5, %v2120_v15  ;;  %v5453_v31 = vadd.f32 1e-05, %v1740_v26  ;;  %vm2123_vm15 = vweird.f32 %v5361_v29 }
 0x326   :  { %v5455_v0 = vpop.eup %3005  ;;  %v2671_v8 = vadd.f32 %v5435_v19, %v2603_v28  ;;  %v2116_v11 = vsel %vm2115_vm12, %v5388_v42, %v2112_v12  ;;  %v5464_v18 = vadd.f32 1e-05, %v1772_v20  ;;  %v6366_v42 = vld [vmem:[#allocation68_spill] sm:$0xff]  ;;  %vm2125_vm1 = vmor %vm2123_vm15, %vm2124_vm13  ;;  %v1741_v2 = vmul.f32 0.03125, %v1677_v49 }
 0x327   :  { %v2522_v24 = vmul.f32 %v2116_v11, %v6365_v38  ;;  %v2286_v43 = vsel %vm2285_vm14, %v5394_v30, %v2282_v33  ;;  %v2122_v9 = vmul.f32 %v5407_v36, %v2121_v40  ;;  %v1958_v25 = vmul.f32 %v5455_v0, %v5411_v60 }
 0x328   :  { %v5471_v21 = vpop.eup %3007  ;;  %2735 = vst [vmem:[#allocation5 + $0x130] sm:$0xff] %v2671_v8  ;;  %v2539_v59 = vmul.f32 %v2286_v43, %v6366_v42  ;;  %3009 = vrsqrt.f32 %v5453_v31  ;;  %v1770_v29 = vmul.f32 0.03125, %v1706_v44  ;;  %v5487_v3 = vmul.f32 %v5102_v54, %v4669_v27  ;;  %v6368_v44 = vld [vmem:[#allocation17_spill] sm:$0xff]  ;;  %v6369_v43 = vld [vmem:[#allocation76_spill] sm:$0xff] }
 0x329   :  { %v2590_v37 = vmul.f32 %v5418_v22, %v2522_v24  ;;  %v2126_v30 = vsel %vm2125_vm1, %v5407_v36, %v2122_v9  ;;  %v1959_v41 = vmul.f32 %v5455_v0, %v1958_v25  ;;  %v2128_v16 = vmul.f32 %v5471_v21, %v5413_v46 }
 0x32a   :  { %v2607_v17 = vmul.f32 %v5418_v22, %v2539_v59  ;;  %v2523_v57 = vmul.f32 %v2126_v30, %v6367_v61  ;;  %3011 = vrsqrt.f32 %v5464_v18  ;;  %vm1964_vm2 = vweird.f32 %v5455_v0  ;;  %v1436_v59 = vpop.xlane.xlu2 %1435 }
 0x32b   :  { %v2658_v34 = vadd.f32 %v5435_v19, %v2590_v37  ;;  %v1960_v36 = vmul.f32 0.5, %v1959_v41  ;;  %v2129_v10 = vmul.f32 %v5471_v21, %v2128_v16  ;;  %v5494_v32 = vadd.f32 1e-05, %v1741_v2 }
 0x32c   :  { %v2675_v62 = vadd.f32 %v5435_v19, %v2607_v17  ;;  %v2591_v5 = vmul.f32 %v5418_v22, %v2523_v57  ;;  %v5496_v51 = vadd.f32 1e-05, %v1770_v29  ;;  %v1693_v27 = vsub.f32 %v1466_v50, %v4787_v23 }
 0x32d   :  { %2722 = vst [vmem:[#allocation5 + $0xc8] sm:$0xff] %v2658_v34  ;;  %v1961_v55 = vsub.f32 1.5, %v1960_v36  ;;  %v2130_v45 = vmul.f32 0.5, %v2129_v10  ;;  %v1710_v54 = vsub.f32 %v1500_v7, %v4840_v63  ;;  %vm1963_vm3 = vweird.f32 %v5411_v60  ;;  %v1470_v7 = vpop.xlane.xlu1 %1469 }
 0x32e   :  { %v5500_v39 = vpop.eup %3009  ;;  %2739 = vst [vmem:[#allocation5 + $0x150] sm:$0xff] %v2675_v62  ;;  %v2659_v13 = vadd.f32 %v5435_v19, %v2591_v5  ;;  %vm2133_vm4 = vweird.f32 %v5413_v46  ;;  %3013 = vrsqrt.f32 %v5494_v32  ;;  %vm2134_vm0 = vweird.f32 %v5471_v21  ;;  %vm1965_vm5 = vmor %vm1963_vm3, %vm1964_vm2 }
 0x32f   :  { %v1962_v47 = vmul.f32 %v5455_v0, %v1961_v55  ;;  %v2131_v15 = vsub.f32 1.5, %v2130_v45  ;;  %v1968_v23 = vmul.f32 %v5500_v39, %v5453_v31  ;;  %3015 = vrsqrt.f32 %v5496_v51  ;;  %vm2135_vm6 = vmor %vm2133_vm4, %vm2134_vm0  ;;  %v6370_v55 = vld [vmem:[#allocation75_spill] sm:$0xff] }
 0x330   :  { %v5510_v63 = vpop.eup %3011  ;;  %2723 = vst [vmem:[#allocation5 + $0xd0] sm:$0xff] %v2659_v13  ;;  %v1757_v60 = vmul.f32 0.03125, %v1693_v27  ;;  %v1774_v26 = vmul.f32 0.03125, %v1710_v54  ;;  %v1694_v20 = vsub.f32 %v1468_v14, %v4849_v58  ;;  %vm1973_vm7 = vweird.f32 %v5453_v31 }
 0x331   :  { %v1966_v28 = vsel %vm1965_vm5, %v5455_v0, %v1962_v47  ;;  %v2132_v12 = vmul.f32 %v5471_v21, %v2131_v15  ;;  %v1969_v49 = vmul.f32 %v5500_v39, %v1968_v23  ;;  %v2288_v1 = vmul.f32 %v5510_v63, %v5464_v18  ;;  %v1438_v23 = vpop.xlane.xlu0 %1437 }
 0x332   :  { %v2507_v33 = vmul.f32 %v1966_v28, %v6368_v44  ;;  %v5525_v40 = vadd.f32 1e-05, %v1757_v60  ;;  %v5527_v8 = vadd.f32 1e-05, %v1774_v26  ;;  %vm2293_vm8 = vweird.f32 %v5464_v18  ;;  %v6371_v18 = vld [vmem:[#allocation21_spill] sm:$0xff] }
 0x333   :  { %v2136_v58 = vsel %vm2135_vm6, %v5471_v21, %v2132_v12  ;;  %v1970_v0 = vmul.f32 0.5, %v1969_v49  ;;  %v2289_v11 = vmul.f32 %v5510_v63, %v2288_v1  ;;  %v1758_v9 = vmul.f32 0.03125, %v1694_v20 }
 0x334   :  { %v5532_v38 = vpop.eup %3013  ;;  %v2575_v24 = vmul.f32 %v5418_v22, %v2507_v33  ;;  %v2524_v46 = vmul.f32 %v2136_v58, %v6369_v43  ;;  %3017 = vrsqrt.f32 %v5525_v40  ;;  %vm1974_vm9 = vweird.f32 %v5500_v39 }
 0x335   :  { %v1971_v25 = vsub.f32 1.5, %v1970_v0  ;;  %v2290_v42 = vmul.f32 0.5, %v2289_v11  ;;  %v1978_v21 = vmul.f32 %v5532_v38, %v5494_v32  ;;  %vm1983_vm10 = vweird.f32 %v5494_v32  ;;  %v5541_v2 = vpop.eup %3015  ;;  %vm1975_vm12 = vmor %vm1973_vm7, %vm1974_vm9  ;;  %v6372_v11 = vld [vmem:[#allocation22_spill] sm:$0xff] }
 0x336   :  { %v2643_v29 = vadd.f32 %v5435_v19, %v2575_v24  ;;  %v2592_v37 = vmul.f32 %v5418_v22, %v2524_v46  ;;  %vm2294_vm11 = vweird.f32 %v5510_v63  ;;  %3019 = vrsqrt.f32 %v5527_v8 }
 0x337   :  { %v1972_v30 = vmul.f32 %v5500_v39, %v1971_v25  ;;  %v2291_v41 = vsub.f32 1.5, %v2290_v42  ;;  %v1979_v16 = vmul.f32 %v5532_v38, %v1978_v21  ;;  %v2268_v17 = vmul.f32 %v5541_v2, %v5496_v51  ;;  %vm2295_vm14 = vmor %vm2293_vm8, %vm2294_vm11  ;;  %v1502_v25 = vpop.xlane.xlu2 %1501  ;;  %v6373_v21 = vld [vmem:[#allocation19_spill] sm:$0xff] }
 0x338   :  { %2707 = vst [vmem:[#allocation5 + $0x50] sm:$0xff] %v2643_v29  ;;  %v2660_v61 = vadd.f32 %v5435_v19, %v2592_v37  ;;  %vm2273_vm13 = vweird.f32 %v5496_v51  ;;  %v5557_v57 = vadd.f32 1e-05, %v1758_v9  ;;  %v1678_v50 = vsub.f32 %v1436_v59, %v4812_v52  ;;  %v1440_v29 = vpop.xlane.xlu1 %1439 }
 0x339   :  { %v1976_v34 = vsel %vm1975_vm12, %v5500_v39, %v1972_v30  ;;  %v2292_v36 = vmul.f32 %v5510_v63, %v2291_v41  ;;  %v1980_v10 = vmul.f32 0.5, %v1979_v16  ;;  %v2269_v62 = vmul.f32 %v5541_v2, %v2268_v17 }
 0x33a   :  { %v5563_v5 = vpop.eup %3017  ;;  %2724 = vst [vmem:[#allocation5 + $0xd8] sm:$0xff] %v2660_v61  ;;  %v2508_v31 = vmul.f32 %v1976_v34, %v6370_v55  ;;  %vm1984_vm15 = vweird.f32 %v5532_v38  ;;  %3021 = vrsqrt.f32 %v5557_v57  ;;  %v1742_v52 = vmul.f32 0.03125, %v1678_v50 }
 0x33b   :  { %v2296_v45 = vsel %vm2295_vm14, %v5510_v63, %v2292_v36  ;;  %v1981_v27 = vsub.f32 1.5, %v1980_v10  ;;  %v2270_v54 = vmul.f32 0.5, %v2269_v62  ;;  %v2138_v14 = vmul.f32 %v5563_v5, %v5525_v40  ;;  %vm1985_vm3 = vmor %vm1983_vm10, %vm1984_vm15  ;;  %v6374_v62 = vld [vmem:[#allocation23_spill] sm:$0xff] }
 0x33c   :  { %vm2143_vm1 = vweird.f32 %v5525_v40  ;;  %v5576_v39 = vpop.eup %3019  ;;  %v2576_v13 = vmul.f32 %v5418_v22, %v2508_v31  ;;  %v2540_v47 = vmul.f32 %v2296_v45, %v6371_v18  ;;  %vm2274_vm2 = vweird.f32 %v5541_v2  ;;  %v6375_v45 = vld [vmem:[#allocation28_spill] sm:$0xff] }
 0x33d   :  { %v5581_v15 = vadd.f32 1e-05, %v1742_v52  ;;  %v1982_v63 = vmul.f32 %v5532_v38, %v1981_v27  ;;  %v2271_v60 = vsub.f32 1.5, %v2270_v54  ;;  %v2139_v26 = vmul.f32 %v5563_v5, %v2138_v14  ;;  %vm2275_vm0 = vmor %vm2273_vm13, %vm2274_vm2 }
 0x33e   :  { %v2308_v20 = vmul.f32 %v5576_v39, %v5527_v8  ;;  %v2644_v28 = vadd.f32 %v5435_v19, %v2576_v13  ;;  %v2608_v12 = vmul.f32 %v5418_v22, %v2540_v47  ;;  %vm2313_vm4 = vweird.f32 %v5527_v8 }
 0x33f   :  { %3023 = vrsqrt.f32 %v5581_v15  ;;  %v1986_v49 = vsel %vm1985_vm3, %v5532_v38, %v1982_v63  ;;  %v2272_v1 = vmul.f32 %v5541_v2, %v2271_v60  ;;  %v2140_v44 = vmul.f32 0.5, %v2139_v26 }
 0x340   :  { %v2309_v33 = vmul.f32 %v5576_v39, %v2308_v20  ;;  %v5598_v58 = vpop.eup %3021  ;;  %2708 = vst [vmem:[#allocation5 + $0x58] sm:$0xff] %v2644_v28  ;;  %v2676_v0 = vadd.f32 %v5435_v19, %v2608_v12  ;;  %v2509_v24 = vmul.f32 %v1986_v49, %v6372_v11  ;;  %vm2144_vm5 = vweird.f32 %v5563_v5  ;;  %v6376_v49 = vld [vmem:[#allocation30_spill] sm:$0xff] }
 0x341   :  { %v1695_v32 = vsub.f32 %v1470_v7, %v4868_v35  ;;  %v2276_v38 = vsel %vm2275_vm0, %v5541_v2, %v2272_v1  ;;  %v2141_v43 = vsub.f32 1.5, %v2140_v44  ;;  %v2148_v9 = vmul.f32 %v5598_v58, %v5557_v57  ;;  %vm2145_vm8 = vmor %vm2143_vm1, %vm2144_vm5  ;;  %v1472_v44 = vpop.xlane.xlu2 %1471 }
 0x342   :  { %v2310_v46 = vmul.f32 0.5, %v2309_v33  ;;  %vm2153_vm6 = vweird.f32 %v5557_v57  ;;  %2740 = vst [vmem:[#allocation5 + $0x158] sm:$0xff] %v2676_v0  ;;  %v2577_v42 = vmul.f32 %v5418_v22, %v2509_v24  ;;  %v2538_v51 = vmul.f32 %v2276_v38, %v6373_v21  ;;  %v1506_v33 = vpop.xlane.xlu1 %1505 }
 0x343   :  { %vm2314_vm7 = vweird.f32 %v5576_v39  ;;  %v1759_v59 = vmul.f32 0.03125, %v1695_v32  ;;  %v2142_v35 = vmul.f32 %v5563_v5, %v2141_v43  ;;  %v2149_v37 = vmul.f32 %v5598_v58, %v2148_v9 }
 0x344   :  { %v2311_v2 = vsub.f32 1.5, %v2310_v46  ;;  %v1679_v30 = vsub.f32 %v1438_v23, %v4879_v53  ;;  %v2645_v16 = vadd.f32 %v5435_v19, %v2577_v42  ;;  %v2606_v17 = vmul.f32 %v5418_v22, %v2538_v51  ;;  %vm2315_vm9 = vmor %vm2313_vm4, %vm2314_vm7  ;;  %v6378_v46 = vld [vmem:[#allocation84_spill] sm:$0xff]  ;;  %v6379_v42 = vld [vmem:[#allocation25_spill] sm:$0xff] }
 0x345   :  { %v5618_v41 = vpop.eup %3023  ;;  %v5626_v61 = vadd.f32 1e-05, %v1759_v59  ;;  %v1711_v50 = vsub.f32 %v1502_v25, %v4926_v56  ;;  %v2146_v7 = vsel %vm2145_vm8, %v5563_v5, %v2142_v35  ;;  %v2150_v53 = vmul.f32 0.5, %v2149_v37  ;;  %v1498_v56 = vpop.xlane.xlu0 %1497  ;;  %v6380_v51 = vld [vmem:[#allocation26_spill] sm:$0xff] }
 0x346   :  { %v2312_v34 = vmul.f32 %v5576_v39, %v2311_v2  ;;  %v1988_v36 = vmul.f32 %v5618_v41, %v5581_v15  ;;  %2709 = vst [vmem:[#allocation5 + $0x60] sm:$0xff] %v2645_v16  ;;  %v2674_v10 = vadd.f32 %v5435_v19, %v2606_v17  ;;  %v2525_v55 = vmul.f32 %v2146_v7, %v6374_v62  ;;  %v6381_v2 = vld [vmem:[#allocation81_spill] sm:$0xff]  ;;  %v6382_v37 = vld [vmem:[#allocation38_spill] sm:$0xff] }
 0x347   :  { %vm2154_vm10 = vweird.f32 %v5598_v58  ;;  %3025 = vrsqrt.f32 %v5626_v61  ;;  %v2151_v5 = vsub.f32 1.5, %v2150_v53  ;;  %vm1994_vm11 = vweird.f32 %v5618_v41 }
 0x348   :  { %v2316_v40 = vsel %vm2315_vm9, %v5576_v39, %v2312_v34  ;;  %v1989_v31 = vmul.f32 %v5618_v41, %v1988_v36  ;;  %2738 = vst [vmem:[#allocation5 + $0x148] sm:$0xff] %v2674_v10  ;;  %v2593_v52 = vmul.f32 %v5418_v22, %v2525_v55  ;;  %v1743_v54 = vmul.f32 0.03125, %v1679_v30  ;;  %vm2155_vm12 = vmor %vm2153_vm6, %vm2154_vm10 }
 0x349   :  { %v2542_v27 = vmul.f32 %v2316_v40, %v6375_v45  ;;  %v1775_v8 = vmul.f32 0.03125, %v1711_v50  ;;  %v2152_v14 = vmul.f32 %v5598_v58, %v2151_v5  ;;  %v1680_v18 = vsub.f32 %v1440_v29, %v5487_v3 }
 0x34a   :  { %v1990_v13 = vmul.f32 0.5, %v1989_v31  ;;  %v1709_v47 = vsub.f32 %v1498_v56, %v4856_v48  ;;  %v2661_v39 = vadd.f32 %v5435_v19, %v2593_v52  ;;  %v5655_v63 = vadd.f32 1e-05, %v1743_v54  ;;  %v6383_v54 = vld [vmem:[#allocation88_spill] sm:$0xff] }
 0x34b   :  { %v2610_v23 = vmul.f32 %v5418_v22, %v2542_v27  ;;  %v5657_v60 = vadd.f32 1e-05, %v1775_v8  ;;  %v2156_v26 = vsel %vm2155_vm12, %v5598_v58, %v2152_v14  ;;  %v1744_v28 = vmul.f32 0.03125, %v1680_v18 }
 0x34c   :  { %v1991_v20 = vsub.f32 1.5, %v1990_v13  ;;  %v1773_v3 = vmul.f32 0.03125, %v1709_v47  ;;  %2725 = vst [vmem:[#allocation5 + $0xe0] sm:$0xff] %v2661_v39  ;;  %v2526_v1 = vmul.f32 %v2156_v26, %v6376_v49  ;;  %3027 = vrsqrt.f32 %v5655_v63 }
 0x34d   :  { %v5660_v12 = vpop.eup %3025  ;;  %v2678_v48 = vadd.f32 %v5435_v19, %v2610_v23  ;;  %v1632_v57 = vmul.f32 %v5298_v4, %v4756_v6  ;;  %vm1993_vm13 = vweird.f32 %v5581_v15  ;;  %3029 = vrsqrt.f32 %v5657_v60  ;;  %v6377_v4 = vld [vmem:[#allocation82_spill] sm:$0xff]  ;;  %v1504_v10 = vpop.xlane.xlu0 %1503 }
 0x34e   :  { %v1992_v0 = vmul.f32 %v5618_v41, %v1991_v20  ;;  %v2158_v58 = vmul.f32 %v5660_v12, %v5626_v61  ;;  %v2594_v11 = vmul.f32 %v5418_v22, %v2526_v1  ;;  %vm1995_vm14 = vmor %vm1993_vm13, %vm1994_vm11  ;;  %v5675_v24 = vadd.f32 1e-05, %v1744_v28  ;;  %v1508_v20 = vpop.xlane.xlu2 %1507 }
 0x34f   :  { %2742 = vst [vmem:[#allocation5 + $0x168] sm:$0xff] %v2678_v48  ;;  %v5677_v6 = vadd.f32 1e-05, %v1773_v3  ;;  %v1589_v32 = vmul.f32 96.0, %v6377_v4  ;;  %v1696_v43 = vsub.f32 %v1472_v44, %v1632_v57  ;;  %v1713_v9 = vsub.f32 %v1506_v33, %v6378_v46  ;;  %v6385_v48 = vld [vmem:[#allocation29_spill] sm:$0xff] }
 0x350   :  { %v1996_v38 = vsel %vm1995_vm14, %v5618_v41, %v1992_v0  ;;  %v2159_v15 = vmul.f32 %v5660_v12, %v2158_v58  ;;  %v2662_v25 = vadd.f32 %v5435_v19, %v2594_v11  ;;  %3031 = vrsqrt.f32 %v5675_v24 }
 0x351   :  { %v2510_v21 = vmul.f32 %v1996_v38, %v6379_v42  ;;  %v1584_v59 = vmul.f32 96.0, %v6380_v51  ;;  %3033 = vrsqrt.f32 %v5677_v6  ;;  %v1760_v35 = vmul.f32 0.03125, %v1696_v43  ;;  %v1512_v42 = vpop.xlane.xlu1 %1511 }
 0x352   :  { %v2160_v29 = vmul.f32 0.5, %v2159_v15  ;;  %v5690_v30 = vmul.f32 %v6382_v37, %v6381_v2  ;;  %v5692_v41 = vpop.eup %3027  ;;  %2726 = vst [vmem:[#allocation5 + $0xe8] sm:$0xff] %v2662_v25  ;;  %vm2163_vm15 = vweird.f32 %v5626_v61  ;;  %v1777_v17 = vmul.f32 0.03125, %v1713_v9  ;;  %v6384_v61 = vld [vmem:[#allocation31_spill] sm:$0xff]  ;;  %v6387_v2 = vld [vmem:[#allocation32_spill] sm:$0xff] }
 0x353   :  { %v2578_v16 = vmul.f32 %v5418_v22, %v2510_v21  ;;  %v5697_v50 = vmul.f32 %v1589_v32, %v6377_v4  ;;  %v5699_v7 = vpop.eup %3029  ;;  %vm2164_vm1 = vweird.f32 %v5660_v12  ;;  %v1998_v53 = vmul.f32 %v5692_v41, %v5655_v63  ;;  %v6386_v21 = vld [vmem:[#allocation97_spill] sm:$0xff] }
 0x354   :  { %v2161_v34 = vsub.f32 1.5, %v2160_v29  ;;  %vm2003_vm2 = vweird.f32 %v5655_v63  ;;  %v5705_v36 = vadd.f32 1e-05, %v1760_v35  ;;  %v2318_v55 = vmul.f32 %v5699_v7, %v5657_v60  ;;  %vm2165_vm4 = vmor %vm2163_vm15, %vm2164_vm1 }
 0x355   :  { %v2646_v62 = vadd.f32 %v5435_v19, %v2578_v16  ;;  %v5710_v56 = vadd.f32 1e-05, %v1777_v17  ;;  %v1648_v40 = vmul.f32 %v1584_v59, %v6380_v51  ;;  %v1999_v31 = vmul.f32 %v5692_v41, %v1998_v53 }
 0x356   :  { %v2162_v5 = vmul.f32 %v5660_v12, %v2161_v34  ;;  %vm2323_vm3 = vweird.f32 %v5657_v60  ;;  %3035 = vrsqrt.f32 %v5705_v36  ;;  %v5717_v52 = vpop.eup %3031  ;;  %v2319_v45 = vmul.f32 %v5699_v7, %v2318_v55 }
 0x357   :  { %2710 = vst [vmem:[#allocation5 + $0x68] sm:$0xff] %v2646_v62  ;;  %3037 = vrsqrt.f32 %v5710_v56  ;;  %v1712_v27 = vsub.f32 %v1504_v10, %v1648_v40  ;;  %v5726_v8 = vmul.f32 96.0, %v6383_v54  ;;  %v5728_v14 = vpop.eup %3033  ;;  %v2000_v18 = vmul.f32 0.5, %v1999_v31  ;;  %v6388_v62 = vld [vmem:[#allocation33_spill] sm:$0xff]  ;;  %v1510_v31 = vpop.xlane.xlu0 %1509 }
 0x358   :  { %v2166_v13 = vsel %vm2165_vm4, %v5660_v12, %v2162_v5  ;;  %vm2004_vm0 = vweird.f32 %v5692_v41  ;;  %v2008_v47 = vmul.f32 %v5717_v52, %v5675_v24  ;;  %vm2013_vm5 = vweird.f32 %v5675_v24 }
 0x359   :  { %v2527_v39 = vmul.f32 %v2166_v13, %v6384_v61  ;;  %v2320_v23 = vmul.f32 0.5, %v2319_v45  ;;  %vm2324_vm6 = vweird.f32 %v5699_v7  ;;  %v2298_v26 = vmul.f32 %v5728_v14, %v5677_v6  ;;  %vm2005_vm10 = vmor %vm2003_vm2, %vm2004_vm0 }
 0x35a   :  { %vm2303_vm7 = vweird.f32 %v5677_v6  ;;  %v2001_v28 = vsub.f32 1.5, %v2000_v18  ;;  %v2009_v3 = vmul.f32 %v5717_v52, %v2008_v47  ;;  %v1776_v12 = vmul.f32 0.03125, %v1712_v27  ;;  %vm2325_vm12 = vmor %vm2323_vm3, %vm2324_vm6  ;;  %v6389_v27 = vld [vmem:[#allocation27_spill] sm:$0xff] }
 0x35b   :  { %v1714_v49 = vsub.f32 %v1508_v20, %v6385_v48  ;;  %v2595_v1 = vmul.f32 %v5418_v22, %v2527_v39  ;;  %v2321_v57 = vsub.f32 1.5, %v2320_v23  ;;  %vm2014_vm8 = vweird.f32 %v5717_v52  ;;  %v6390_v39 = vld [vmem:[#allocation41_spill] sm:$0xff]  ;;  %v1514_v48 = vpop.xlane.xlu2 %1513 }
 0x35c   :  { %v2299_v44 = vmul.f32 %v5728_v14, %v2298_v26  ;;  %v5745_v33 = vpop.eup %3035  ;;  %v2002_v0 = vmul.f32 %v5692_v41, %v2001_v28  ;;  %v2010_v58 = vmul.f32 0.5, %v2009_v3  ;;  %vm2304_vm9 = vweird.f32 %v5728_v14  ;;  %vm2015_vm15 = vmor %vm2013_vm5, %vm2014_vm8 }
 0x35d   :  { %v5749_v11 = vadd.f32 1e-05, %v1776_v12  ;;  %v5751_v4 = vpop.eup %3037  ;;  %v2663_v32 = vadd.f32 %v5435_v19, %v2595_v1  ;;  %v2322_v38 = vmul.f32 %v5699_v7, %v2321_v57  ;;  %v2168_v43 = vmul.f32 %v5745_v33, %v5705_v36  ;;  %vm2305_vm1 = vmor %vm2303_vm7, %vm2304_vm9  ;;  %v6391_v1 = vld [vmem:[#allocation24_spill] sm:$0xff] }
 0x35e   :  { %v2300_v15 = vmul.f32 0.5, %v2299_v44  ;;  %vm2173_vm11 = vweird.f32 %v5705_v36  ;;  %v2006_v46 = vsel %vm2005_vm10, %v5692_v41, %v2002_v0  ;;  %v2011_v9 = vsub.f32 1.5, %v2010_v58  ;;  %v6392_v0 = vld [vmem:[#allocation8_spill] sm:$0xff] }
 0x35f   :  { %v2338_v63 = vmul.f32 %v5751_v4, %v5710_v56  ;;  %vm2343_vm13 = vweird.f32 %v5710_v56  ;;  %v1778_v25 = vmul.f32 0.03125, %v1714_v49  ;;  %2727 = vst [vmem:[#allocation5 + $0xf0] sm:$0xff] %v2663_v32  ;;  %v2511_v51 = vmul.f32 %v2006_v46, %v6386_v21 }
 0x360   :  { %v2326_v59 = vsel %vm2325_vm12, %v5699_v7, %v2322_v38  ;;  %v2301_v29 = vsub.f32 1.5, %v2300_v15  ;;  %v2169_v35 = vmul.f32 %v5745_v33, %v2168_v43  ;;  %v2012_v60 = vmul.f32 %v5717_v52, %v2011_v9 }
 0x361   :  { %v2543_v37 = vmul.f32 %v2326_v59, %v6387_v2  ;;  %vm2174_vm14 = vweird.f32 %v5745_v33  ;;  %v2339_v41 = vmul.f32 %v5751_v4, %v2338_v63  ;;  %v2579_v16 = vmul.f32 %v5418_v22, %v2511_v51  ;;  %v6394_v2 = vld [vmem:[#allocation89_spill] sm:$0xff] }
 0x362   :  { %v2302_v17 = vmul.f32 %v5728_v14, %v2301_v29  ;;  %v2170_v7 = vmul.f32 0.5, %v2169_v35  ;;  %3039 = vrsqrt.f32 %v5749_v11  ;;  %v2016_v53 = vsel %vm2015_vm15, %v5717_v52, %v2012_v60  ;;  %vm2175_vm3 = vmor %vm2173_vm11, %vm2174_vm14  ;;  %v6393_v29 = vld [vmem:[#allocation87_spill] sm:$0xff] }
 0x363   :  { %v2611_v34 = vmul.f32 %v5418_v22, %v2543_v37  ;;  %v2340_v10 = vmul.f32 0.5, %v2339_v41  ;;  %vm2344_vm2 = vweird.f32 %v5751_v4  ;;  %v2647_v24 = vadd.f32 %v5435_v19, %v2579_v16  ;;  %v1516_v16 = vpop.xlane.xlu0 %1515 }
 0x364   :  { %v2512_v55 = vmul.f32 %v2016_v53, %v6388_v62  ;;  %v2306_v40 = vsel %vm2305_vm1, %v5728_v14, %v2302_v17  ;;  %v2171_v5 = vsub.f32 1.5, %v2170_v7  ;;  %v5796_v18 = vadd.f32 1e-05, %v1778_v25  ;;  %vm2345_vm4 = vmor %vm2343_vm13, %vm2344_vm2 }
 0x365   :  { %v2679_v45 = vadd.f32 %v5435_v19, %v2611_v34  ;;  %v2541_v52 = vmul.f32 %v2306_v40, %v6389_v27  ;;  %v2341_v13 = vsub.f32 1.5, %v2340_v10  ;;  %2711 = vst [vmem:[#allocation5 + $0x70] sm:$0xff] %v2647_v24  ;;  %v1716_v61 = vsub.f32 %v1512_v42, %v5690_v30  ;;  %v1520_v10 = vpop.xlane.xlu2 %1519 }
 0x366   :  { %v2580_v6 = vmul.f32 %v5418_v22, %v2512_v55  ;;  %v2172_v47 = vmul.f32 %v5745_v33, %v2171_v5  ;;  %v1715_v23 = vsub.f32 %v1510_v31, %v6390_v39  ;;  %3041 = vrsqrt.f32 %v5796_v18  ;;  %v6395_v5 = vld [vmem:[#allocation34_spill] sm:$0xff] }
 0x367   :  { %2743 = vst [vmem:[#allocation5 + $0x170] sm:$0xff] %v2679_v45  ;;  %v2609_v14 = vmul.f32 %v5418_v22, %v2541_v52  ;;  %v2342_v26 = vmul.f32 %v5751_v4, %v2341_v13  ;;  %v1655_v20 = vmul.f32 %v5726_v8, %v6383_v54  ;;  %v1780_v12 = vmul.f32 0.03125, %v1716_v61  ;;  %v1518_v8 = vpop.xlane.xlu1 %1517 }
 0x368   :  { %v3040_v28 = vpop.eup %3039  ;;  %v2648_v30 = vadd.f32 %v5435_v19, %v2580_v6  ;;  %v2176_v3 = vsel %vm2175_vm3, %v5745_v33, %v2172_v47  ;;  %v1779_v36 = vmul.f32 0.03125, %v1715_v23  ;;  %v1717_v15 = vsub.f32 %v1514_v48, %v5697_v50  ;;  %v6396_v23 = vld [vmem:[#allocation92_spill] sm:$0xff] }
 0x369   :  { %v2677_v49 = vadd.f32 %v5435_v19, %v2609_v14  ;;  %v2528_v57 = vmul.f32 %v2176_v3, %v6391_v1  ;;  %v2346_v44 = vsel %vm2345_vm4, %v5751_v4, %v2342_v26  ;;  %v2328_v54 = vmul.f32 %v3040_v28, %v5749_v11  ;;  %v6397_v1 = vld [vmem:[#allocation9_spill] sm:$0xff] }
 0x36a   :  { %2712 = vst [vmem:[#allocation5 + $0x78] sm:$0xff] %v2648_v30  ;;  %v2545_v33 = vmul.f32 %v2346_v44, %v6392_v0  ;;  %v5822_v58 = vadd.f32 1e-05, %v1780_v12  ;;  %v5824_v32 = vadd.f32 1e-05, %v1779_v36  ;;  %v1719_v43 = vsub.f32 %v1518_v8, %v1655_v20 }
 0x36b   :  { %2741 = vst [vmem:[#allocation5 + $0x160] sm:$0xff] %v2677_v49  ;;  %v2596_v56 = vmul.f32 %v5418_v22, %v2528_v57  ;;  %v2329_v38 = vmul.f32 %v3040_v28, %v2328_v54  ;;  %v1781_v25 = vmul.f32 0.03125, %v1717_v15  ;;  %vm2334_vm0 = vweird.f32 %v3040_v28  ;;  %v6398_v54 = vld [vmem:[#allocation94_spill] sm:$0xff] }
 0x36c   :  { %v2613_v46 = vmul.f32 %v5418_v22, %v2545_v33  ;;  %3043 = vrsqrt.f32 %v5822_v58  ;;  %v3042_v4 = vpop.eup %3041  ;;  %v1783_v51 = vmul.f32 0.03125, %v1719_v43  ;;  %v1590_v35 = vmul.f32 96.0, %v6393_v29 }
 0x36d   :  { %v2664_v9 = vadd.f32 %v5435_v19, %v2596_v56  ;;  %v2330_v63 = vmul.f32 0.5, %v2329_v38  ;;  %3045 = vrsqrt.f32 %v5824_v32  ;;  %v2348_v21 = vmul.f32 %v3042_v4, %v5796_v18 }
 0x36e   :  { %v2681_v42 = vadd.f32 %v5435_v19, %v2613_v46  ;;  %v5834_v59 = vadd.f32 1e-05, %v1781_v25  ;;  %v1592_v37 = vmul.f32 96.0, %v6394_v2  ;;  %v5838_v41 = vadd.f32 1e-05, %v1783_v51 }
 0x36f   :  { %2728 = vst [vmem:[#allocation5 + $0xf8] sm:$0xff] %v2664_v9  ;;  %v2331_v50 = vsub.f32 1.5, %v2330_v63  ;;  %v2349_v60 = vmul.f32 %v3042_v4, %v2348_v21  ;;  %vm2333_vm5 = vweird.f32 %v5749_v11  ;;  %v1654_v7 = vmul.f32 %v1590_v35, %v6393_v29  ;;  %v1524_v63 = vpop.xlane.xlu1 %1523 }
 0x370   :  { %2745 = vst [vmem:[#allocation5 + $0x180] sm:$0xff] %v2681_v42  ;;  %3047 = vrsqrt.f32 %v5834_v59  ;;  %vm2335_vm6 = vmor %vm2333_vm5, %vm2334_vm0  ;;  %vm2353_vm7 = vweird.f32 %v5796_v18  ;;  %vm2373_vm8 = vweird.f32 %v5822_v58  ;;  %v1656_v40 = vmul.f32 %v1592_v37, %v6394_v2  ;;  %v1522_v2 = vpop.xlane.xlu0 %1521  ;;  %v6400_v37 = vld [vmem:[#allocation10_spill] sm:$0xff] }
 0x371   :  { %v2332_v17 = vmul.f32 %v3040_v28, %v2331_v50  ;;  %v2350_v53 = vmul.f32 0.5, %v2349_v60  ;;  %3049 = vrsqrt.f32 %v5838_v41  ;;  %v1718_v11 = vsub.f32 %v1516_v16, %v1654_v7  ;;  %v6399_v50 = vld [vmem:[#allocation11_spill] sm:$0xff] }
 0x372   :  { %v3044_v34 = vpop.eup %3043  ;;  %vm2354_vm9 = vweird.f32 %v3042_v4  ;;  %vm2363_vm10 = vweird.f32 %v5824_v32  ;;  %v1720_v6 = vsub.f32 %v1520_v10, %v1656_v40  ;;  %v1593_v14 = vmul.f32 96.0, %v6396_v23 }
 0x373   :  { %v3046_v24 = vpop.eup %3045  ;;  %v2336_v62 = vsel %vm2335_vm6, %v3040_v28, %v2332_v17  ;;  %v2368_v55 = vmul.f32 %v3044_v34, %v5822_v58  ;;  %v2351_v45 = vsub.f32 1.5, %v2350_v53  ;;  %v1782_v13 = vmul.f32 0.03125, %v1718_v11  ;;  %vm2355_vm11 = vmor %vm2353_vm7, %vm2354_vm9 }
 0x374   :  { %v2544_v31 = vmul.f32 %v2336_v62, %v6395_v5  ;;  %v2358_v27 = vmul.f32 %v3046_v24, %v5824_v32  ;;  %vm2374_vm12 = vweird.f32 %v3044_v34  ;;  %v1784_v30 = vmul.f32 0.03125, %v1720_v6 }
 0x375   :  { %v2369_v52 = vmul.f32 %v3044_v34, %v2368_v55  ;;  %v2352_v61 = vmul.f32 %v3042_v4, %v2351_v45  ;;  %v5858_v28 = vadd.f32 1e-05, %v1782_v13  ;;  %vm2383_vm13 = vweird.f32 %v5834_v59  ;;  %vm2375_vm15 = vmor %vm2373_vm8, %vm2374_vm12  ;;  %v6401_v55 = vld [vmem:[#allocation99_spill] sm:$0xff] }
 0x376   :  { %v2612_v47 = vmul.f32 %v5418_v22, %v2544_v31  ;;  %v2359_v39 = vmul.f32 %v3046_v24, %v2358_v27  ;;  %v5854_v26 = vpop.eup %3047  ;;  %v1594_v8 = vmul.f32 96.0, %v6398_v54  ;;  %vm2364_vm14 = vweird.f32 %v3046_v24  ;;  %v6402_v27 = vld [vmem:[#allocation12_spill] sm:$0xff] }
 0x377   :  { %v2370_v20 = vmul.f32 0.5, %v2369_v52  ;;  %v3050_v3 = vpop.eup %3049  ;;  %v2356_v36 = vsel %vm2355_vm11, %v3042_v4, %v2352_v61  ;;  %v2378_v49 = vmul.f32 %v5854_v26, %v5834_v59  ;;  %3051 = vrsqrt.f32 %v5858_v28  ;;  %vm2365_vm2 = vmor %vm2363_vm10, %vm2364_vm14 }
 0x378   :  { %v2680_v12 = vadd.f32 %v5435_v19, %v2612_v47  ;;  %v2360_v48 = vmul.f32 0.5, %v2359_v39  ;;  %v2546_v57 = vmul.f32 %v2356_v36, %v6397_v1  ;;  %v2398_v18 = vmul.f32 %v3050_v3, %v5838_v41  ;;  %v6403_v47 = vld [vmem:[#allocation14_spill] sm:$0xff] }
 0x379   :  { %v2371_v44 = vsub.f32 1.5, %v2370_v20  ;;  %v2379_v33 = vmul.f32 %v5854_v26, %v2378_v49  ;;  %v1657_v43 = vmul.f32 %v1593_v14, %v6396_v23  ;;  %vm2384_vm1 = vweird.f32 %v5854_v26 }
 0x37a   :  { %2744 = vst [vmem:[#allocation5 + $0x178] sm:$0xff] %v2680_v12  ;;  %v2361_v0 = vsub.f32 1.5, %v2360_v48  ;;  %v2614_v56 = vmul.f32 %v5418_v22, %v2546_v57  ;;  %v2399_v15 = vmul.f32 %v3050_v3, %v2398_v18  ;;  %v5875_v9 = vadd.f32 1e-05, %v1784_v30  ;;  %vm2385_vm0 = vmor %vm2383_vm13, %vm2384_vm1  ;;  %v1526_v30 = vpop.xlane.xlu2 %1525 }
 0x37b   :  { %v2372_v38 = vmul.f32 %v3044_v34, %v2371_v44  ;;  %v2380_v4 = vmul.f32 0.5, %v2379_v33  ;;  %v1658_v51 = vmul.f32 %v1594_v8, %v6398_v54  ;;  %vm2404_vm3 = vweird.f32 %v3050_v3  ;;  %v6404_v44 = vld [vmem:[#allocation108_spill] sm:$0xff]  ;;  %v1530_v8 = vpop.xlane.xlu1 %1529 }
 0x37c   :  { %v2362_v46 = vmul.f32 %v3046_v24, %v2361_v0  ;;  %v2682_v25 = vadd.f32 %v5435_v19, %v2614_v56  ;;  %v2400_v21 = vmul.f32 0.5, %v2399_v15  ;;  %3053 = vrsqrt.f32 %v5875_v9  ;;  %v6405_v15 = vld [vmem:[#allocation70_spill] sm:$0xff] }
 0x37d   :  { %v2376_v42 = vsel %vm2375_vm15, %v3044_v34, %v2372_v38  ;;  %v2381_v35 = vsub.f32 1.5, %v2380_v4  ;;  %v1722_v17 = vsub.f32 %v1524_v63, %v1658_v51  ;;  %v3052_v7 = vpop.eup %3051  ;;  %vm2403_vm4 = vweird.f32 %v5838_v41  ;;  %v1528_v51 = vpop.xlane.xlu0 %1527 }
 0x37e   :  { %v2548_v58 = vmul.f32 %v2376_v42, %v6399_v50  ;;  %v2366_v29 = vsel %vm2365_vm2, %v3046_v24, %v2362_v46  ;;  %2746 = vst [vmem:[#allocation5 + $0x188] sm:$0xff] %v2682_v25  ;;  %v2401_v16 = vsub.f32 1.5, %v2400_v21  ;;  %v1721_v53 = vsub.f32 %v1522_v2, %v1657_v43  ;;  %vm2405_vm5 = vmor %vm2403_vm4, %vm2404_vm3  ;;  %v6406_v46 = vld [vmem:[#allocation13_spill] sm:$0xff]  ;;  %v5925_v50 = vld [vmem:[%s6005_s3] ss:$0 sm:$0xff]  ;;  %s3132_s3 = smov [#allocation5]  }
 0x37f   :  { %v2547_v60 = vmul.f32 %v2366_v29, %v6400_v37  ;;  %v2382_v34 = vmul.f32 %v5854_v26, %v2381_v35  ;;  %v2388_v62 = vmul.f32 %v3052_v7, %v5858_v28  ;;  %v1595_v11 = vmul.f32 96.0, %v6401_v55 }
 0x380   :  { %v2616_v32 = vmul.f32 %v5418_v22, %v2548_v58  ;;  %v2402_v24 = vmul.f32 %v3050_v3, %v2401_v16  ;;  %v1786_v31 = vmul.f32 0.03125, %v1722_v17  ;;  %v1785_v41 = vmul.f32 0.03125, %v1721_v53  ;;  %v6407_v17 = vld [vmem:[#allocation15_spill] sm:$0xff] }
 0x381   :  { %v2615_v10 = vmul.f32 %v5418_v22, %v2547_v60  ;;  %v2386_v5 = vsel %vm2385_vm0, %v5854_v26, %v2382_v34  ;;  %v2389_v6 = vmul.f32 %v3052_v7, %v2388_v62  ;;  %vm2394_vm6 = vweird.f32 %v3052_v7  ;;  %v5934_v60 = vld [vmem:[%s6006_s4] ss:$0 sm:$0xff]  ;;  %s2765_s4 = sshll.u32 %s3132_s3, 4  ;;  %s2766_s4 = int_to_ptr.vmem [resolvable:$true] %s2765_s4 }
 0x382   :  { %v2684_v40 = vadd.f32 %v5435_v19, %v2616_v32  ;;  %v2549_v52 = vmul.f32 %v2386_v5, %v6402_v27  ;;  %v2406_v13 = vsel %vm2405_vm5, %v3050_v3, %v2402_v24  ;;  %v3054_v59 = vpop.eup %3053  ;;  %v5900_v39 = vadd.f32 1e-05, %v1786_v31  ;;  %v6408_v24 = vld [vmem:[#allocation66_spill] sm:$0xff]  ;;  %v1532_v5 = vpop.xlane.xlu2 %1531 }
 0x383   :  { %v2683_v45 = vadd.f32 %v5435_v19, %v2615_v10  ;;  %v2551_v61 = vmul.f32 %v2406_v13, %v6403_v47  ;;  %v5902_v23 = vadd.f32 1e-05, %v1785_v41  ;;  %v2390_v26 = vmul.f32 0.5, %v2389_v6  ;;  %v6409_v6 = vld [vmem:[#allocation73_spill] sm:$0xff] }
 0x384   :  { %2748 = vst [vmem:[#allocation5 + $0x198] sm:$0xff] %v2684_v40  ;;  %v2617_v14 = vmul.f32 %v5418_v22, %v2549_v52  ;;  %v2408_v20 = vmul.f32 %v3054_v59, %v5875_v9  ;;  %3055 = vrsqrt.f32 %v5900_v39  ;;  %v1659_v3 = vmul.f32 %v1595_v11, %v6401_v55 }
 0x385   :  { %2747 = vst [vmem:[#allocation5 + $0x190] sm:$0xff] %v2683_v45  ;;  %v2619_v12 = vmul.f32 %v5418_v22, %v2551_v61  ;;  %v2391_v48 = vsub.f32 1.5, %v2390_v26  ;;  %3057 = vrsqrt.f32 %v5902_v23  ;;  %v1597_v18 = vmul.f32 96.0, %v6404_v44  ;;  %v1536_v26 = vpop.xlane.xlu1 %1535 }
 0x386   :  { %v2685_v36 = vadd.f32 %v5435_v19, %v2617_v14  ;;  %v2409_v49 = vmul.f32 %v3054_v59, %v2408_v20  ;;  %v1723_v57 = vsub.f32 %v1526_v30, %v1659_v3  ;;  %vm2393_vm7 = vweird.f32 %v5858_v28 }
 0x387   :  { %v2687_v1 = vadd.f32 %v5435_v19, %v2619_v12  ;;  %v2392_v54 = vmul.f32 %v3052_v7, %v2391_v48  ;;  %vm2395_vm8 = vmor %vm2393_vm7, %vm2394_vm6  ;;  %v1661_v33 = vmul.f32 %v1597_v18, %v6404_v44  ;;  %vm2414_vm9 = vweird.f32 %v3054_v59 }
 0x388   :  { %2749 = vst [vmem:[#allocation5 + $0x1a0] sm:$0xff] %v2685_v36  ;;  %v2410_v22 = vmul.f32 0.5, %v2409_v49  ;;  %v1787_v0 = vmul.f32 0.03125, %v1723_v57  ;;  %v1596_v19 = vmul.f32 96.0, %v6405_v15  ;;  %vm2413_vm10 = vweird.f32 %v5875_v9  ;;  %v6411_v49 = vld [vmem:[#allocation18_spill] sm:$0xff] }
 0x389   :  { %2751 = vst [vmem:[#allocation5 + $0x1b0] sm:$0xff] %v2687_v1  ;;  %v2396_v56 = vsel %vm2395_vm8, %v3052_v7, %v2392_v54  ;;  %v1725_v25 = vsub.f32 %v1530_v8, %v1661_v33  ;;  %vm2415_vm11 = vmor %vm2413_vm10, %vm2414_vm9  ;;  %v1598_v62 = vmul.f32 96.0, %v6408_v24  ;;  %vm2433_vm14 = vweird.f32 %v5900_v39  ;;  %v6412_v54 = vld [vmem:[#allocation16_spill] sm:$0xff] }
 0x38a   :  { %v2411_v38 = vsub.f32 1.5, %v2410_v22  ;;  %v3056_v43 = vpop.eup %3055  ;;  %v2550_v4 = vmul.f32 %v2396_v56, %v6406_v46  ;;  %v5918_v63 = vadd.f32 1e-05, %v1787_v0  ;;  %v1660_v35 = vmul.f32 %v1596_v19, %v6405_v15  ;;  %v1534_v0 = vpop.xlane.xlu0 %1533 }
 0x38b   :  { %v3058_v28 = vpop.eup %3057  ;;  %v2428_v21 = vmul.f32 %v3056_v43, %v5900_v39  ;;  %v1789_v9 = vmul.f32 0.03125, %v1725_v25  ;;  %vm2434_vm12 = vweird.f32 %v3056_v43  ;;  %v1662_v41 = vmul.f32 %v1598_v62, %v6408_v24  ;;  %v6410_v39 = vld [vmem:[#allocation78_spill] sm:$0xff] }
 0x38c   :  { %v2412_v42 = vmul.f32 %v3054_v59, %v2411_v38  ;;  %v2618_v58 = vmul.f32 %v5925_v50, %v2550_v4  ;;  %v2418_v29 = vmul.f32 %v3058_v28, %v5902_v23  ;;  %3059 = vrsqrt.f32 %v5918_v63  ;;  %vm2435_vm15 = vmor %vm2433_vm14, %vm2434_vm12 }
 0x38d   :  { %v2429_v37 = vmul.f32 %v3056_v43, %v2428_v21  ;;  %v1724_v34 = vsub.f32 %v1528_v51, %v1660_v35  ;;  %v5938_v10 = vadd.f32 1e-05, %v1789_v9  ;;  %vm2424_vm13 = vweird.f32 %v3058_v28  ;;  %v6413_v9 = vld [vmem:[#allocation20_spill] sm:$0xff] }
 0x38e   :  { %v2416_v2 = vsel %vm2415_vm11, %v3054_v59, %v2412_v42  ;;  %v2686_v16 = vadd.f32 %v5934_v60, %v2618_v58  ;;  %v2419_v32 = vmul.f32 %v3058_v28, %v2418_v29  ;;  %v1600_v59 = vmul.f32 96.0, %v6409_v6 }
 0x38f   :  { %v2552_v7 = vmul.f32 %v2416_v2, %v6407_v17  ;;  %v2430_v53 = vmul.f32 0.5, %v2429_v37  ;;  %v1788_v40 = vmul.f32 0.03125, %v1724_v34  ;;  %3061 = vrsqrt.f32 %v5938_v10 }
 0x390   :  { %2750 = vst [vmem:[#allocation5 + $0x1a8] sm:$0xff] %v2686_v16  ;;  %v2420_v11 = vmul.f32 0.5, %v2419_v32  ;;  %v1726_v14 = vsub.f32 %v1532_v5, %v1662_v41  ;;  %vm2423_vm1 = vweird.f32 %v5902_v23  ;;  %v1664_v30 = vmul.f32 %v1600_v59, %v6409_v6 }
 0x391   :  { %v2620_v55 = vmul.f32 %v5925_v50, %v2552_v7  ;;  %v2431_v31 = vsub.f32 1.5, %v2430_v53  ;;  %v5945_v13 = vadd.f32 1e-05, %v1788_v40  ;;  %vm2425_vm2 = vmor %vm2423_vm1, %vm2424_vm13  ;;  %v1599_v48 = vmul.f32 96.0, %v6410_v39 }
 0x392   :  { %v3060_v45 = vpop.eup %3059  ;;  %v2421_v52 = vsub.f32 1.5, %v2420_v11  ;;  %v1790_v36 = vmul.f32 0.03125, %v1726_v14  ;;  %v1728_v44 = vsub.f32 %v1536_v26, %v1664_v30  ;;  %vm2443_vm4 = vweird.f32 %v5918_v63 }
 0x393   :  { %v2688_v27 = vadd.f32 %v5934_v60, %v2620_v55  ;;  %v2432_v47 = vmul.f32 %v3056_v43, %v2431_v31  ;;  %v2438_v61 = vmul.f32 %v3060_v45, %v5918_v63  ;;  %3063 = vrsqrt.f32 %v5945_v13  ;;  %v6414_v31 = vld [vmem:[#allocation72_spill] sm:$0xff] }
 0x394   :  { %v2422_v20 = vmul.f32 %v3058_v28, %v2421_v52  ;;  %v5958_v23 = vadd.f32 1e-05, %v1790_v36  ;;  %v1792_v38 = vmul.f32 0.03125, %v1728_v44  ;;  %v1663_v15 = vmul.f32 %v1599_v48, %v6410_v39 }
 0x395   :  { %2752 = vst [vmem:[#allocation5 + $0x1b8] sm:$0xff] %v2688_v27  ;;  %v2436_v12 = vsel %vm2435_vm15, %v3056_v43, %v2432_v47  ;;  %v2439_v3 = vmul.f32 %v3060_v45, %v2438_v61  ;;  %v3062_v18 = vpop.eup %3061  ;;  %vm2444_vm3 = vweird.f32 %v3060_v45  ;;  %vm2463_vm6 = vweird.f32 %v5938_v10  ;;  %v6415_v47 = vld [vmem:[#allocation77_spill] sm:$0xff] }
 0x396   :  { %v2554_v1 = vmul.f32 %v2436_v12, %v6411_v49  ;;  %v2426_v57 = vsel %vm2425_vm2, %v3058_v28, %v2422_v20  ;;  %v2458_v56 = vmul.f32 %v3062_v18, %v5938_v10  ;;  %3065 = vrsqrt.f32 %v5958_v23  ;;  %vm2445_vm0 = vmor %vm2443_vm4, %vm2444_vm3 }
 0x397   :  { %v2553_v22 = vmul.f32 %v2426_v57, %v6412_v54  ;;  %v2440_v8 = vmul.f32 0.5, %v2439_v3  ;;  %v5966_v28 = vadd.f32 1e-05, %v1792_v38  ;;  %v1727_v42 = vsub.f32 %v1534_v0, %v1663_v15 }
 0x398   :  { %v2622_v33 = vmul.f32 %v5925_v50, %v2554_v1  ;;  %v2459_v25 = vmul.f32 %v3062_v18, %v2458_v56  ;;  %vm2464_vm5 = vweird.f32 %v3062_v18  ;;  %vm2453_vm9 = vweird.f32 %v5945_v13  ;;  %v6416_v1 = vld [vmem:[#allocation71_spill] sm:$0xff] }
 0x399   :  { %v2621_v19 = vmul.f32 %v5925_v50, %v2553_v22  ;;  %v2441_v43 = vsub.f32 1.5, %v2440_v8  ;;  %v3064_v46 = vpop.eup %3063  ;;  %3067 = vrsqrt.f32 %v5966_v28  ;;  %v1791_v35 = vmul.f32 0.03125, %v1727_v42  ;;  %vm2465_vm7 = vmor %vm2463_vm6, %vm2464_vm5  ;;  %v6417_v8 = vld [vmem:[#allocation35_spill] sm:$0xff] }
 0x39a   :  { %v2690_v4 = vadd.f32 %v5934_v60, %v2622_v33  ;;  %v2448_v58 = vmul.f32 %v3064_v46, %v5945_v13  ;;  %v2460_v29 = vmul.f32 0.5, %v2459_v25  ;;  %vm2454_vm8 = vweird.f32 %v3064_v46 }
 0x39b   :  { %v2689_v21 = vadd.f32 %v5934_v60, %v2621_v19  ;;  %v2442_v51 = vmul.f32 %v3060_v45, %v2441_v43  ;;  %v1855_v7 = vadd.f32 1e-05, %v1791_v35  ;;  %vm2455_vm10 = vmor %vm2453_vm9, %vm2454_vm8  ;;  %vm2473_vm12 = vweird.f32 %v5958_v23  ;;  %v6418_v43 = vld [vmem:[#allocation74_spill] sm:$0xff] }
 0x39c   :  { %2754 = vst [vmem:[#allocation5 + $0x1c8] sm:$0xff] %v2690_v4  ;;  %v2449_v37 = vmul.f32 %v3064_v46, %v2448_v58  ;;  %v2461_v17 = vsub.f32 1.5, %v2460_v29  ;;  %v3066_v32 = vpop.eup %3065  ;;  %vm2493_vm15 = vweird.f32 %v5966_v28 }
 0x39d   :  { %2753 = vst [vmem:[#allocation5 + $0x1c0] sm:$0xff] %v2689_v21  ;;  %v2446_v2 = vsel %vm2445_vm0, %v3060_v45, %v2442_v51  ;;  %v2468_v24 = vmul.f32 %v3066_v32, %v5958_v23  ;;  %3069 = vrsqrt.f32 %v1855_v7  ;;  %vm2474_vm11 = vweird.f32 %v3066_v32 }
 0x39e   :  { %v2555_v16 = vmul.f32 %v2446_v2, %v6413_v9  ;;  %v2450_v34 = vmul.f32 0.5, %v2449_v37  ;;  %v2462_v53 = vmul.f32 %v3062_v18, %v2461_v17  ;;  %vm2475_vm13 = vmor %vm2473_vm12, %vm2474_vm11  ;;  %vm2483_vm3 = vweird.f32 %v1855_v7 }
 0x39f   :  { %v3068_v55 = vpop.eup %3067  ;;  %v2469_v5 = vmul.f32 %v3066_v32, %v2468_v24 }
 0x3a0   :  { %v2623_v63 = vmul.f32 %v5925_v50, %v2555_v16  ;;  %v2451_v62 = vsub.f32 1.5, %v2450_v34  ;;  %v2466_v40 = vsel %vm2465_vm7, %v3062_v18, %v2462_v53  ;;  %v2488_v27 = vmul.f32 %v3068_v55, %v5966_v28 }
 0x3a1   :  { %v2557_v41 = vmul.f32 %v2466_v40, %v6414_v31  ;;  %v2470_v10 = vmul.f32 0.5, %v2469_v5  ;;  %vm2494_vm14 = vweird.f32 %v3068_v55 }
 0x3a2   :  { %v2691_v11 = vadd.f32 %v5934_v60, %v2623_v63  ;;  %v2452_v45 = vmul.f32 %v3064_v46, %v2451_v62  ;;  %v2489_v59 = vmul.f32 %v3068_v55, %v2488_v27  ;;  %vm2495_vm1 = vmor %vm2493_vm15, %vm2494_vm14 }
 0x3a3   :  { %v2625_v52 = vmul.f32 %v5925_v50, %v2557_v41  ;;  %v2471_v14 = vsub.f32 1.5, %v2470_v10  ;;  %v3070_v26 = vpop.eup %3069 }
 0x3a4   :  { %2755 = vst [vmem:[#allocation5 + $0x1d0] sm:$0xff] %v2691_v11  ;;  %v2456_v6 = vsel %vm2455_vm10, %v3064_v46, %v2452_v45  ;;  %v2490_v30 = vmul.f32 0.5, %v2489_v59  ;;  %v2478_v3 = vmul.f32 %v3070_v26, %v1855_v7  ;;  %vm2484_vm2 = vweird.f32 %v3070_v26 }
 0x3a5   :  { %v2556_v61 = vmul.f32 %v2456_v6, %v6415_v47  ;;  %v2693_v20 = vadd.f32 %v5934_v60, %v2625_v52  ;;  %v2472_v13 = vmul.f32 %v3066_v32, %v2471_v14  ;;  %vm2485_vm4 = vmor %vm2483_vm3, %vm2484_vm2 }
 0x3a6   :  { %v2491_v36 = vsub.f32 1.5, %v2490_v30  ;;  %v2479_v49 = vmul.f32 %v3070_v26, %v2478_v3 }
 0x3a7   :  { %v2624_v12 = vmul.f32 %v5925_v50, %v2556_v61  ;;  %2757 = vst [vmem:[#allocation5 + $0x1e0] sm:$0xff] %v2693_v20  ;;  %v2476_v48 = vsel %vm2475_vm13, %v3066_v32, %v2472_v13 }
 0x3a8   :  { %v2558_v57 = vmul.f32 %v2476_v48, %v6416_v1  ;;  %v2492_v44 = vmul.f32 %v3068_v55, %v2491_v36  ;;  %v2480_v18 = vmul.f32 0.5, %v2479_v49 }
 0x3a9   :  { %v2692_v39 = vadd.f32 %v5934_v60, %v2624_v12 }
 0x3aa   :  { %v2626_v54 = vmul.f32 %v5925_v50, %v2558_v57  ;;  %v2496_v22 = vsel %vm2495_vm1, %v3068_v55, %v2492_v44  ;;  %v2481_v0 = vsub.f32 1.5, %v2480_v18 }
 0x3ab   :  { %2756 = vst [vmem:[#allocation5 + $0x1d8] sm:$0xff] %v2692_v39  ;;  %v2560_v23 = vmul.f32 %v2496_v22, %v6417_v8 }
 0x3ac   :  { %v2694_v33 = vadd.f32 %v5934_v60, %v2626_v54  ;;  %v2482_v38 = vmul.f32 %v3070_v26, %v2481_v0 }
 0x3ad   :  { %v2628_v56 = vmul.f32 %v5925_v50, %v2560_v23 }
 0x3ae   :  { %2758 = vst [vmem:[#allocation5 + $0x1e8] sm:$0xff] %v2694_v33  ;;  %v2486_v19 = vsel %vm2485_vm4, %v3070_v26, %v2482_v38 }
 0x3af   :  { %v2696_v15 = vadd.f32 %v5934_v60, %v2628_v56  ;;  %v2559_v46 = vmul.f32 %v2486_v19, %v6418_v43 }
 0x3b1   :  { %2760 = vst [vmem:[#allocation5 + $0x1f8] sm:$0xff] %v2696_v15  ;;  %v2627_v4 = vmul.f32 %v5925_v50, %v2559_v46 }
 0x3b3   :  { %v2695_v25 = vadd.f32 %v5934_v60, %v2627_v4 }
 0x3b5   :  { %2759 = vst [vmem:[#allocation5 + $0x1f0] sm:$0xff] %v2695_v25 }
 0x3b6   :  { %2773 = dma.vmem_to_hbm [thread:$0]  %s2766_s4, 8192, %s2768_s22, [#allocation4], %s3128_s23, %s3128_s23, %s3129_s24  }
 0x3b7   :  { %3125 = dma.done.wait [#allocation4], 8192  }
 0x3b8   :  { %3126 = vsyncadd [#allocation4], 4294959104 }
 0x3b9   :  { %2778 = vsyncpa [#allocation3], 1 }
 0x3ba   :  { %2779 = vsyncpa [#allocation4], 1 }

</bundles_post_ra>
